<compile_context>
chip_gen: v6e
topology: v6e:2x2x1
jax: 0.10.0
libtpu: 0.0.40
codegen_flags: <defaults>
</compile_context>

<pallas_src>
import functools

import jax
import jax.numpy as jnp
from jax.experimental import pallas as pl
from jax.experimental.pallas import tpu as pltpu


def _round_up(n: int, m: int) -> int:
    return ((n + m - 1) // m) * m


def _spectral_mul_kernel(xr_ref, xi_ref, wr_ref, wi_ref, or_ref, oi_ref,
                         *, n_mode_tiles: int):
    """One frequency tile.

    xr/xi: (TM, B_pad, Ci_pad)   wr/wi: (TM, Ci_pad, Co_pad)
    or/oi: (TM, B_pad, Co_pad)   (real / imaginary planes)

    Tiles below `n_mode_tiles` compute the complex per-mode matmul on the MXU;
    tiles at/after it are the zero-filled tail of the rfft spectrum.
    """
    k = pl.program_id(0)

    @pl.when(k < n_mode_tiles)
    def _compute():
        xr = xr_ref[...]
        xi = xi_ref[...]
        wr = wr_ref[...]
        wi = wi_ref[...]
        # Gauss 3-multiply complex product:
        #   t1 = (xr + xi) @ wr ; t2 = xr @ (wi - wr) ; t3 = xi @ (wr + wi)
        #   real = t1 - t3     ; imag = t1 + t2
        # The weight add/sub runs on the VPU (free slot under MXU-bound work).
        t1 = jnp.einsum('mbi,mio->mbo', xr + xi, wr,
                        preferred_element_type=jnp.float32)
        t2 = jnp.einsum('mbi,mio->mbo', xr, wi - wr,
                        preferred_element_type=jnp.float32)
        t3 = jnp.einsum('mbi,mio->mbo', xi, wr + wi,
                        preferred_element_type=jnp.float32)
        or_ref[...] = (t1 - t3).astype(or_ref.dtype)
        oi_ref[...] = (t1 + t2).astype(oi_ref.dtype)

    @pl.when(k >= n_mode_tiles)
    def _zero_tail():
        # Frequencies >= modes: spectrum is zero (fused zero-pad for irfft).
        or_ref[...] = jnp.zeros_like(or_ref)
        oi_ref[...] = jnp.zeros_like(oi_ref)


def spectral_mul_pallas(xr, xi, wr, wi, *, n_freq: int,
                        compute_dtype=jnp.float32, mode_tile: int = 8):
    """Complex spectral multiply on the MXU.

    xr/xi: (modes, B, Cin) real/imag planes of the truncated rfft spectrum.
    wr/wi: (modes, Cin, Cout) real/imag planes of the weights.
    Returns (out_re, out_im): (K_pad, B_pad, Cout_pad) float32, zero above
    `modes`, where n_freq (= N//2 + 1) <= K_pad.
    """
    modes, B, Cin = xr.shape
    Cout = wr.shape[2]

    TM = mode_tile
    M_pad = _round_up(modes, TM)                       # retained modes, padded
    K_pad = _round_up(max(n_freq, M_pad), TM)          # full rfft length, padded
    B_pad = _round_up(B, 8)                            # sublanes
    Ci_pad = _round_up(Cin, 128)                       # lanes (x) / sublanes (w)
    Co_pad = _round_up(Cout, 128)                      # lanes (w, out) -> lane-dense
    n_mode_tiles = M_pad // TM
    n_tiles = K_pad // TM

    cd = jnp.dtype(compute_dtype)

    def pad3(a, shape):
        return jnp.pad(a, [(0, shape[0] - a.shape[0]),
                           (0, shape[1] - a.shape[1]),
                           (0, shape[2] - a.shape[2])])

    xr_p = pad3(xr, (M_pad, B_pad, Ci_pad)).astype(cd)
    xi_p = pad3(xi, (M_pad, B_pad, Ci_pad)).astype(cd)
    wr_p = pad3(wr, (M_pad, Ci_pad, Co_pad)).astype(cd)
    wi_p = pad3(wi, (M_pad, Ci_pad, Co_pad)).astype(cd)

    # Tail tiles (>= modes) clamp their read index to a valid block; the data
    # is unused there (pl.when writes zeros).
    x_map = lambda k: (jnp.minimum(k, n_mode_tiles - 1), 0, 0)
    o_map = lambda k: (k, 0, 0)

    grid_spec = pltpu.PrefetchScalarGridSpec(
        num_scalar_prefetch=0,
        grid=(n_tiles,),
        in_specs=[
            pl.BlockSpec((TM, B_pad, Ci_pad), x_map),
            pl.BlockSpec((TM, B_pad, Ci_pad), x_map),
            pl.BlockSpec((TM, Ci_pad, Co_pad), x_map),
            pl.BlockSpec((TM, Ci_pad, Co_pad), x_map),
        ],
        out_specs=(
            pl.BlockSpec((TM, B_pad, Co_pad), o_map),
            pl.BlockSpec((TM, B_pad, Co_pad), o_map),
        ),
    )

    out_shape = (jax.ShapeDtypeStruct((K_pad, B_pad, Co_pad), jnp.float32),
                 jax.ShapeDtypeStruct((K_pad, B_pad, Co_pad), jnp.float32))

    # Advisory cost estimate (3 real matmuls per retained mode tile).
    flops = 2 * 3 * M_pad * B_pad * Ci_pad * Co_pad
    bytes_accessed = ((2 * M_pad * B_pad * Ci_pad
                       + 2 * M_pad * Ci_pad * Co_pad) * cd.itemsize
                      + 2 * K_pad * B_pad * Co_pad * 4)
    cost = pl.CostEstimate(flops=flops, transcendentals=0,
                           bytes_accessed=bytes_accessed)

    # VMEM budget: double-buffered input/weight/output tiles + slack, kept well
    # under the v7x (64 MiB physical / 32 MiB scoped) ceiling.
    block_bytes = ((2 * TM * B_pad * Ci_pad
                    + 2 * TM * Ci_pad * Co_pad) * cd.itemsize
                   + 2 * TM * B_pad * Co_pad * 4)
    vmem_limit = int(min(max(4 * block_bytes + (4 << 20), 32 << 20), 56 << 20))

    return pl.pallas_call(
        functools.partial(_spectral_mul_kernel, n_mode_tiles=n_mode_tiles),
        out_shape=out_shape,
        grid_spec=grid_spec,
        compiler_params=pltpu.CompilerParams(
            dimension_semantics=("parallel",),
            vmem_limit_bytes=vmem_limit),
        cost_estimate=cost,
    )(xr_p, xi_p, wr_p, wi_p)


class SpectralConv1d:
    """JAX/Pallas port of the PyTorch SpectralConv1d module."""

    def __init__(self, in_channels: int, out_channels: int, modes: int, key,
                 compute_dtype=jnp.float32):
        self.in_channels = in_channels
        self.out_channels = out_channels
        self.modes = modes
        self.scale = 1.0 / (in_channels * out_channels)
        self.compute_dtype = compute_dtype
        # torch.rand(..., dtype=cfloat): uniform [0,1) real & imag parts;
        # view_as_real stores them as a trailing dim of size 2.
        self.weights_1 = self.scale * jax.random.uniform(
            key, (in_channels, out_channels, modes, 2), dtype=jnp.float32)

    def __call__(self, x):
        # x: (B, C_in, N) float32
        B, _, N = x.shape
        K = N // 2 + 1
        m = self.modes

        x_ft = jnp.fft.rfft(x)                         # (B, Cin, K) complex64
        x_m = x_ft[:, :, :m]                           # keep first `modes` bins

        # Re-lay for the kernel: modes leading, channels on the minor dims.
        xr = jnp.transpose(jnp.real(x_m), (2, 0, 1))   # (modes, B, Cin)
        xi = jnp.transpose(jnp.imag(x_m), (2, 0, 1))
        wr = jnp.transpose(self.weights_1[..., 0], (2, 0, 1))  # (modes, Cin, Cout)
        wi = jnp.transpose(self.weights_1[..., 1], (2, 0, 1))

        out_re, out_im = spectral_mul_pallas(
            xr, xi, wr, wi, n_freq=K, compute_dtype=self.compute_dtype)

        # Kernel already produced the zero-filled tail, so no scatter needed:
        # just slice off the padding and run the inverse FFT along axis 0.
        out_ft = (out_re[:K, :B, :self.out_channels]
                  + 1j * out_im[:K, :B, :self.out_channels]).astype(jnp.complex64)
        y = jnp.fft.irfft(out_ft, n=N, axis=0)         # (N, B, Cout)
        return jnp.transpose(y, (1, 2, 0))             # (B, Cout, N)


if __name__ == "__main__":
    key = jax.random.PRNGKey(0)
    k_w, k_x = jax.random.split(key)

    B, C_IN, C_OUT, N, MODES = 2, 4, 6, 16, 8

    layer = SpectralConv1d(C_IN, C_OUT, MODES, k_w)
    x = jax.random.normal(k_x, (B, C_IN, N), dtype=jnp.float32)

    out = jax.block_until_ready(layer(x))

    # Pure-JAX reference (same math, no Pallas) for a sanity check.
    x_ft = jnp.fft.rfft(x)[:, :, :MODES]
    w_c = layer.weights_1[..., 0] + 1j * layer.weights_1[..., 1]
    ref_ft_m = jnp.einsum('bix,iox->box', x_ft, w_c,
                          precision=jax.lax.Precision.HIGHEST)
    ref_ft = jnp.zeros((B, C_OUT, N // 2 + 1), dtype=jnp.complex64)
    ref_ft = ref_ft.at[:, :, :MODES].set(ref_ft_m.astype(jnp.complex64))
    ref = jnp.fft.irfft(ref_ft, n=N)

    assert out.shape == (B, C_OUT, N), out.shape
    err = float(jnp.max(jnp.abs(out - ref)))
    assert jnp.allclose(out, ref, atol=1e-2, rtol=1e-2), err

    print("KERNEL_OK")
</pallas_src>

<mosaic_0001>
module attributes {stable_mosaic.version = 11 : i64} {
  func.func @_spectral_mul_kernel(%arg0: i32, %arg1: memref<8x8x128xf32, #tpu.memory_space<vmem>>, %arg2: memref<8x8x128xf32, #tpu.memory_space<vmem>>, %arg3: memref<8x128x128xf32, #tpu.memory_space<vmem>>, %arg4: memref<8x128x128xf32, #tpu.memory_space<vmem>>, %arg5: memref<8x8x128xf32, #tpu.memory_space<vmem>>, %arg6: memref<8x8x128xf32, #tpu.memory_space<vmem>>) attributes {dimension_semantics = [#tpu.dimension_semantics<parallel>], iteration_bounds = array<i64: 2>, scalar_prefetch = 0 : i64, scratch_operands = 0 : i64, tpu.core_type = #tpu.core_type<tc>, window_params = [{transform_indices = @transform_0, window_bounds = array<i64: 8, 8, 128>}, {transform_indices = @transform_1, window_bounds = array<i64: 8, 8, 128>}, {transform_indices = @transform_2, window_bounds = array<i64: 8, 128, 128>}, {transform_indices = @transform_3, window_bounds = array<i64: 8, 128, 128>}, {transform_indices = @transform_4, window_bounds = array<i64: 8, 8, 128>}, {transform_indices = @transform_5, window_bounds = array<i64: 8, 8, 128>}]} {
    %c1_i32 = arith.constant 1 : i32
    %0 = arith.cmpi slt, %arg0, %c1_i32 : i32
    %1 = arith.extui %0 : i1 to i32
    %c0_i32 = arith.constant 0 : i32
    %2 = arith.cmpi ne, %1, %c0_i32 : i32
    scf.if %2 {
      %c0 = arith.constant 0 : index
      %c0_2 = arith.constant 0 : index
      %c0_3 = arith.constant 0 : index
      %6 = vector.load %arg1[%c0, %c0_2, %c0_3] : memref<8x8x128xf32, #tpu.memory_space<vmem>>, vector<8x8x128xf32>
      %c0_4 = arith.constant 0 : index
      %c0_5 = arith.constant 0 : index
      %c0_6 = arith.constant 0 : index
      %7 = vector.load %arg2[%c0_4, %c0_5, %c0_6] : memref<8x8x128xf32, #tpu.memory_space<vmem>>, vector<8x8x128xf32>
      %c0_7 = arith.constant 0 : index
      %c0_8 = arith.constant 0 : index
      %c0_9 = arith.constant 0 : index
      %8 = vector.load %arg3[%c0_7, %c0_8, %c0_9] : memref<8x128x128xf32, #tpu.memory_space<vmem>>, vector<8x128x128xf32>
      %c0_10 = arith.constant 0 : index
      %c0_11 = arith.constant 0 : index
      %c0_12 = arith.constant 0 : index
      %9 = vector.load %arg4[%c0_10, %c0_11, %c0_12] : memref<8x128x128xf32, #tpu.memory_space<vmem>>, vector<8x128x128xf32>
      %10 = arith.addf %6, %7 : vector<8x8x128xf32>
      "tpu.trace_start"() <{level = 10 : i32, message = "mbi,mio->mbo"}> : () -> ()
      %cst = arith.constant dense<0.000000e+00> : vector<8x8x128xf32>
      %11 = tpu.matmul %10, %8, %cst {dimension_numbers = #tpu.dot_dimension_numbers<[2], [1], [1], [2], [0, 0, 0, 1, 1, 2], [0], [0]>} : vector<8x8x128xf32>, vector<8x128x128xf32>, vector<8x8x128xf32> -> vector<8x8x128xf32>
      "tpu.trace_stop"() : () -> ()
      %12 = arith.subf %9, %8 : vector<8x128x128xf32>
      "tpu.trace_start"() <{level = 10 : i32, message = "mbi,mio->mbo"}> : () -> ()
      %cst_13 = arith.constant dense<0.000000e+00> : vector<8x8x128xf32>
      %13 = tpu.matmul %6, %12, %cst_13 {dimension_numbers = #tpu.dot_dimension_numbers<[2], [1], [1], [2], [0, 0, 0, 1, 1, 2], [0], [0]>} : vector<8x8x128xf32>, vector<8x128x128xf32>, vector<8x8x128xf32> -> vector<8x8x128xf32>
      "tpu.trace_stop"() : () -> ()
      %14 = arith.addf %8, %9 : vector<8x128x128xf32>
      "tpu.trace_start"() <{level = 10 : i32, message = "mbi,mio->mbo"}> : () -> ()
      %cst_14 = arith.constant dense<0.000000e+00> : vector<8x8x128xf32>
      %15 = tpu.matmul %7, %14, %cst_14 {dimension_numbers = #tpu.dot_dimension_numbers<[2], [1], [1], [2], [0, 0, 0, 1, 1, 2], [0], [0]>} : vector<8x8x128xf32>, vector<8x128x128xf32>, vector<8x8x128xf32> -> vector<8x8x128xf32>
      "tpu.trace_stop"() : () -> ()
      %16 = arith.subf %11, %15 : vector<8x8x128xf32>
      %c0_15 = arith.constant 0 : index
      %c0_16 = arith.constant 0 : index
      %c0_17 = arith.constant 0 : index
      %17 = vector.load %arg5[%c0_15, %c0_16, %c0_17] : memref<8x8x128xf32, #tpu.memory_space<vmem>>, vector<8x8x128xf32>
      tpu.vector_store %arg5[%c0_15, %c0_16, %c0_17], %16 {strides = array<i32>} : memref<8x8x128xf32, #tpu.memory_space<vmem>>, vector<8x8x128xf32>,
      %18 = arith.addf %11, %13 : vector<8x8x128xf32>
      %c0_18 = arith.constant 0 : index
      %c0_19 = arith.constant 0 : index
      %c0_20 = arith.constant 0 : index
      %19 = vector.load %arg6[%c0_18, %c0_19, %c0_20] : memref<8x8x128xf32, #tpu.memory_space<vmem>>, vector<8x8x128xf32>
      tpu.vector_store %arg6[%c0_18, %c0_19, %c0_20], %18 {strides = array<i32>} : memref<8x8x128xf32, #tpu.memory_space<vmem>>, vector<8x8x128xf32>,
    } else {
    }
    %c1_i32_0 = arith.constant 1 : i32
    %3 = arith.cmpi sge, %arg0, %c1_i32_0 : i32
    %4 = arith.extui %3 : i1 to i32
    %c0_i32_1 = arith.constant 0 : i32
    %5 = arith.cmpi ne, %4, %c0_i32_1 : i32
    scf.if %5 {
      %cst = arith.constant 0.000000e+00 : f32
      %6 = vector.broadcast %cst : f32 to vector<8x8x128xf32>
      %c0 = arith.constant 0 : index
      %c0_2 = arith.constant 0 : index
      %c0_3 = arith.constant 0 : index
      %7 = vector.load %arg5[%c0, %c0_2, %c0_3] : memref<8x8x128xf32, #tpu.memory_space<vmem>>, vector<8x8x128xf32>
      tpu.vector_store %arg5[%c0, %c0_2, %c0_3], %6 {strides = array<i32>} : memref<8x8x128xf32, #tpu.memory_space<vmem>>, vector<8x8x128xf32>,
      %cst_4 = arith.constant 0.000000e+00 : f32
      %8 = vector.broadcast %cst_4 : f32 to vector<8x8x128xf32>
      %c0_5 = arith.constant 0 : index
      %c0_6 = arith.constant 0 : index
      %c0_7 = arith.constant 0 : index
      %9 = vector.load %arg6[%c0_5, %c0_6, %c0_7] : memref<8x8x128xf32, #tpu.memory_space<vmem>>, vector<8x8x128xf32>
      tpu.vector_store %arg6[%c0_5, %c0_6, %c0_7], %8 {strides = array<i32>} : memref<8x8x128xf32, #tpu.memory_space<vmem>>, vector<8x8x128xf32>,
    } else {
    }
    return
  }
  func.func @transform_0(%arg0: i32) -> (i32, i32, i32) {
    %c0_i32 = arith.constant 0 : i32
    %0 = arith.minsi %arg0, %c0_i32 : i32
    %c0_i32_0 = arith.constant 0 : i32
    %c0_i32_1 = arith.constant 0 : i32
    %c0_i32_2 = arith.constant 0 : i32
    return %0, %c0_i32_0, %c0_i32_1 : i32, i32, i32
  }
  func.func @transform_1(%arg0: i32) -> (i32, i32, i32) {
    %c0_i32 = arith.constant 0 : i32
    %0 = arith.minsi %arg0, %c0_i32 : i32
    %c0_i32_0 = arith.constant 0 : i32
    %c0_i32_1 = arith.constant 0 : i32
    %c0_i32_2 = arith.constant 0 : i32
    return %0, %c0_i32_0, %c0_i32_1 : i32, i32, i32
  }
  func.func @transform_2(%arg0: i32) -> (i32, i32, i32) {
    %c0_i32 = arith.constant 0 : i32
    %0 = arith.minsi %arg0, %c0_i32 : i32
    %c0_i32_0 = arith.constant 0 : i32
    %c0_i32_1 = arith.constant 0 : i32
    %c0_i32_2 = arith.constant 0 : i32
    return %0, %c0_i32_0, %c0_i32_1 : i32, i32, i32
  }
  func.func @transform_3(%arg0: i32) -> (i32, i32, i32) {
    %c0_i32 = arith.constant 0 : i32
    %0 = arith.minsi %arg0, %c0_i32 : i32
    %c0_i32_0 = arith.constant 0 : i32
    %c0_i32_1 = arith.constant 0 : i32
    %c0_i32_2 = arith.constant 0 : i32
    return %0, %c0_i32_0, %c0_i32_1 : i32, i32, i32
  }
  func.func @transform_4(%arg0: i32) -> (i32, i32, i32) {
    %c0_i32 = arith.constant 0 : i32
    %c0_i32_0 = arith.constant 0 : i32
    %c0_i32_1 = arith.constant 0 : i32
    return %arg0, %c0_i32, %c0_i32_0 : i32, i32, i32
  }
  func.func @transform_5(%arg0: i32) -> (i32, i32, i32) {
    %c0_i32 = arith.constant 0 : i32
    %c0_i32_0 = arith.constant 0 : i32
    %c0_i32_1 = arith.constant 0 : i32
    return %arg0, %c0_i32, %c0_i32_0 : i32, i32, i32
  }
}

</mosaic_0001>

<bundles_post_ra>
// kernel: tpu_custom_call.1
= control target key start
LH: loop header
LB: loop body
LE: loop exit
PB: predicated region body
PF: predicated region fallthrough
CT: control target
= control target key end

     0   :  { %s7065_s0 = inlined_call_operand.hbm [shape: f32[8,8,128], index: 0, kind: input, shape index: {}]   ;;  %s7066_s1 = inlined_call_operand.hbm [shape: f32[8,8,128], index: 1, kind: input, shape index: {}]   ;;  %s7067_s2 = inlined_call_operand.hbm [shape: f32[8,128,128], index: 2, kind: input, shape index: {}]   ;;  %s7068_s3 = inlined_call_operand.hbm [shape: f32[8,128,128], index: 3, kind: input, shape index: {}]   ;;  %s7069_s4 = inlined_call_operand.hbm [shape: f32[16,8,128], index: 4, kind: output, shape index: {0}]   ;;  %s7070_s5 = inlined_call_operand.hbm [shape: f32[16,8,128], index: 5, kind: output, shape index: {1}]  }
   0x1   :  { %7088 = sst [smem:[#allocation146_spill]] %s7065_s0 }
   0x2   :  { %7089 = sst [smem:[#allocation147_spill]] %s7066_s1 }
   0x3   :  { %11 = vsyncpa [#allocation3], 0 }
   0x4   :  { %13 = vsyncpa [#allocation3 + $0x1], 0 }
   0x5   :  { %14 = vsyncpa [#allocation6], 0 }
   0x6   :  { %16 = vsyncpa [#allocation6 + $0x1], 0 }
   0x7   :  { %17 = vsyncpa [#allocation9], 0 }
   0x8   :  { %19 = vsyncpa [#allocation9 + $0x1], 0 }
   0x9   :  { %20 = vsyncpa [#allocation4], 0 }
   0xa   :  { %22 = vsyncpa [#allocation4 + $0x1], 0 }
   0xb   :  { %23 = vsyncpa [#allocation12], 0 }
   0xc   :  { %25 = vsyncpa [#allocation12 + $0x1], 0  ;;  %s4806_s18 = smov 0   ;;  %s4808_s19 = smov 0  }
   0xd   :  { %s4810_s20 = smov 0   ;;  %s4812_s21 = smov 0  }
   0xe   :  { %s4814_s22 = smov 0   ;;  %s4816_s23 = smov 0  }
   0xf   :  { %s4818_s24 = smov 0  }
  0x10 LB: > { %7090 = sst [smem:[#allocation18_spill]] %s4745_s20  ;;  %s4840_s25 = sadd.s32 4294967295, %s4761_s24   ;;  %s4761_s24 = sphi %s4818_s24, %s7364_s24   ;;  %s4757_s23 = sphi %s4816_s23, %s7368_s23   ;;  %s4753_s22 = sphi %s4814_s22, %s7372_s22   ;;  %s4749_s21 = sphi %s4812_s21, %s7371_s21   ;;  %s4745_s20 = sphi %s4810_s20, %s7366_s20   ;;  %s4741_s19 = sphi %s4808_s19, %s7370_s19   ;;  %s4737_s18 = sphi %s4806_s18, %s7369_s18  }
  0x11   : > { %7091 = sst [smem:[#allocation19_spill]] %s4757_s23  ;;  %s2889_s26 = sadd.s32 4294967294, %s4761_s24  }
  0x12   : > { %7092 = sst [smem:[#allocation20_spill]] %s4761_s24  ;;  %s4844_s27 = sadd.s32 1, %s4761_s24  }
  0x13   : > { %7093 = sst [smem:[#allocation21_spill]] %s4844_s27  ;;  %p35_p0 = scmp.lt.s32.totalorder %s4761_s24, 0 }
  0x14   : > { %p37_p1 = scmp.lt.s32.totalorder %s4844_s27, 0  ;;  %s42_s28 = sadd.s32 1, %s4757_s23 }
  0x15   : > { %s4850_s29 = scalar_select %p35_p0, %s4761_s24, 0 }
  0x16   : > { %s38_s30 = scalar_select %p37_p1, %s4844_s27, 0 }
  0x17   : > { %p49_p2 = scmp.ne.s32.totalorder %s4757_s23, %s4753_s22  ;;  %p50_p3 = scmp.eq.s32.totalorder %s4761_s24, 0 }
  0x18   : > { %s39_s6 = ssub.s32 %s4850_s29, %s38_s30  ;;  %p55_p4 = scmp.ne.s32.totalorder %s4753_s22, %s4749_s21 }
  0x19   : > { %p40_p5 = scmp.eq.s32.totalorder %s39_s6, 0  ;;  %p4858_p6 = por %p50_p3, %p49_p2 }
  0x1a   : > { %p56_p7 = scmp.eq.s32.totalorder %s4840_s25, 0  ;;  %s155_s8 = ssub.s32 %s4761_s24, %s4844_s27 }
  0x1b   : > { %s4866_s9 = scalar_select %p40_p5, %s4757_s23, %s42_s28  }
  0x1c   : > { %p4868_p8 = por %p56_p7, %p55_p4  ;;  %p156_p9 = scmp.eq.s32.totalorder %s155_s8, 0 }
  0x1d   : > { %7095 = sst [smem:[#allocation22_spill]] %s4866_s9  ;;  %s158_s11 = sadd.s32 1, %s4745_s20 }
  0x1e   : > { %s7096_s10 = scalar_select %p4868_p8, 1, 0 }
  0x1f   : > { %p168_p10 = scmp.ne.s32.totalorder %s4745_s20, %s4741_s19  ;;  %p169_p11 = scmp.eq.s32.totalorder %s4840_s25, 1 }
  0x20   : > { %s4876_s12 = scalar_select %p156_p9, %s4745_s20, %s158_s11  }
  0x21   : > { %p174_p12 = scmp.ne.s32.totalorder %s4741_s19, %s4737_s18  ;;  %p175_p13 = scmp.eq.s32.totalorder %s2889_s26, 1 }
  0x22   : > { %7097 = sst [smem:[#allocation23_spill]] %s4876_s12  ;;  %p4882_p1 = por %p169_p11, %p168_p10 }
  0x23   : > { %p4211_p2 = scmp.lt.s32.totalorder %s4761_s24, 2  ;;  %p4887_p3 = por %p175_p13, %p174_p12 }
  0x24   : > { %s7098_s13 = scalar_select %p4882_p1, 1, 0 }
  0x25   : > { %s7099_s14 = scalar_select %p4887_p3, 1, 0 }
  0x26   : > { %s4892_s15 = sand.u32 1, %s4757_s23   ;;  %s7073_s17 = sshll.u32 %s4850_s29, 10 }
  0x27   : > { %s7072_s16 = sshll.u32 %s4892_s15, 6  ;;  %p4898_p4 = pnand %p4211_p2, %p4858_p6 }
  0x28   : > { %s244_s26 = sand.u32 1, %s4761_s24   ;;  %s7101_s1 = sld [smem:[#allocation147_spill]] }
  0x29   : > { %s248_s8 = scalar_lea.vmem [#allocation5], %s7072_s16  ;;  %s4916_s7 = scalar_lea.sflag [#allocation6], %s244_s26 }
  0x2a   : > { %s257_s11 = sshll.u32 %s248_s8, 4  ;;  %p4922_p9 = pneg %p4898_p4  ;;  %s4913_s11 = int_to_ptr.vmem [resolvable:$true] %s257_s11 }
  0x2e   : > { %s4908_s6 = scalar_lea.hbm %s7101_s1, %s7073_s17  ;;  %s4528_s8 = scalar_lea.hbm %s7101_s1, 1024 }
  0x2f   : > { %s4523_s9 = scalar_lea.hbm %s4908_s6, 1024  ;;  %p4529_p12 = scmp.lt.s32.totalorder %s4908_s6, %s7101_s1 }
  0x30   : > { %p4524_p7 = scmp.ne.s32.totalorder %s4908_s6, %s4523_s9  ;;  %p4530_p13 = scmp.lt.s32.totalorder %s4528_s8, %s4523_s9 }
  0x32   : > { %p4526_p10 = pnand %p4922_p9, %p4524_p7  ;;  %p4531_p2 = por %p4530_p13, %p4529_p12 }
  0x34   : > { %p4527_p11 = pneg %p4526_p10 }
  0x36   : > { %p4532_p0 = pnand %p4531_p2, %p4527_p11 }
  0x38   : > { %4535 = shalt.err (!%p4532_p0)
}
  0x39   : > { %s4536_s26 = scalar_lea.vmem %s4913_s11, 1024  ;;  %s4763_s12 = smov [#allocation5]  }
  0x3a   : > { %p4537_p5 = scmp.ne.s32.totalorder %s4913_s11, %s4536_s26  ;;  %s4541_s28 = sshll.u32 %s4763_s12, 4  ;;  %s4542_s28 = int_to_ptr.vmem [resolvable:$false] %s4541_s28 }
  0x3b   : > { %s4543_s30 = scalar_lea.vmem %s4542_s28, 2048  ;;  %p4544_p6 = scmp.lt.s32.totalorder %s4913_s11, %s4542_s28 }
  0x3c   : > { %p4539_p7 = pnand %p4537_p5, %p4922_p9  ;;  %p4545_p3 = scmp.lt.s32.totalorder %s4543_s30, %s4536_s26 }
  0x3e   : > { %p4540_p10 = pneg %p4539_p7  ;;  %p4546_p1 = por %p4545_p3, %p4544_p6 }
  0x40   : > { %p4547_p8 = pnand %p4546_p1, %p4540_p10 }
  0x42   : > { %4550 = shalt.err (!%p4547_p8)
}
  0x43   : > { %s7079_s9 = smov 128   ;;  %s7081_s12 = smov 8  }
  0x44   : > { %4197 = dma.hbm_to_vmem [thread:$0]  (!%p4898_p4), %s4908_s6, 1024, %s4913_s11, %s4916_s7, %s7079_s9, %s7079_s9, %s7081_s12  }
  0x45   : > { %p7103_p0 = scmp.lt.s32.totalorder %s4761_s24, 3  ;;  %p7104_p8 = scmp.ge.s32.totalorder %s4761_s24, 1 }
  0x46   : > { %s7106_s17 = sshll.u32 %s4850_s29, 10  ;;  %s7107_s0 = sld [smem:[#allocation146_spill]] }
  0x47   : > { %p4952_p1 = pnand %p7104_p8, %p7103_p0  ;;  %s7108_s30 = sshll.u32 %s4892_s15, 6 }
  0x48   : > { %s225_s1 = scalar_lea.vmem [#allocation2], %s7108_s30  ;;  %s7083_s27 = sshll.u32 %s4892_s15, 10 }
  0x49   : > { %s7105_s16 = scalar_select %p4952_p1, 1, 0 }
  0x4a   : > { %s234_s20 = sshll.u32 %s225_s1, 4  ;;  %s222_s6 = scalar_lea.sflag [#allocation3], %s4892_s15  ;;  %s4966_s20 = int_to_ptr.vmem [resolvable:$true] %s234_s20 }
  0x4c   : > { %s4961_s28 = scalar_lea.hbm %s7107_s0, %s7106_s17  ;;  %s4556_s17 = scalar_lea.hbm %s7107_s0, 1024 }
  0x4d   : > { %s4551_s11 = scalar_lea.hbm %s4961_s28, 1024  ;;  %p4557_p11 = scmp.lt.s32.totalorder %s4961_s28, %s7107_s0 }
  0x4e   : > { %p4552_p3 = scmp.ne.s32.totalorder %s4961_s28, %s4551_s11  ;;  %p4558_p12 = scmp.lt.s32.totalorder %s4556_s17, %s4551_s11 }
  0x50   : > { %p4554_p5 = pnand %p4552_p3, %p4922_p9  ;;  %p4559_p13 = por %p4558_p12, %p4557_p11 }
  0x52   : > { %p4555_p6 = pneg %p4554_p5 }
  0x54   : > { %p4560_p2 = pnand %p4559_p13, %p4555_p6 }
  0x56   : > { %4563 = shalt.err (!%p4560_p2)
}
  0x57   : > { %s4564_s1 = scalar_lea.vmem %s4966_s20, 1024  ;;  %s4766_s30 = smov [#allocation2]  }
  0x58   : > { %p4565_p7 = scmp.ne.s32.totalorder %s4966_s20, %s4564_s1  ;;  %s4569_s9 = sshll.u32 %s4766_s30, 4  ;;  %s4570_s9 = int_to_ptr.vmem [resolvable:$false] %s4569_s9 }
  0x59   : > { %s4571_s12 = scalar_lea.vmem %s4570_s9, 2048  ;;  %p4572_p8 = scmp.lt.s32.totalorder %s4966_s20, %s4570_s9 }
  0x5a   : > { %p4567_p10 = pnand %p4565_p7, %p4922_p9  ;;  %p4573_p3 = scmp.lt.s32.totalorder %s4571_s12, %s4564_s1 }
  0x5c   : > { %p4568_p0 = pneg %p4567_p10  ;;  %p4574_p5 = por %p4573_p3, %p4572_p8 }
  0x5e   : > { %p4575_p1 = pnand %p4574_p5, %p4568_p0 }
  0x60   : > { %4578 = shalt.err (!%p4575_p1)
}
  0x61   : > { %s7109_s11 = smov 8   ;;  %s7110_s17 = smov 128  }
  0x62   : > { %4194 = dma.hbm_to_vmem [thread:$0]  (!%p4898_p4), %s4961_s28, 1024, %s4966_s20, %s222_s6, %s7110_s17, %s7110_s17, %s7109_s11  }
  0x63   : > { %s7084_s8 = sshll.u32 %s4850_s29, 14  ;;  %s271_s26 = scalar_lea.vmem [#allocation7], %s7083_s27 }
  0x64   : > { %s281_s30 = sshll.u32 %s271_s26, 4  ;;  %s5000_s12 = scalar_lea.hbm %s7067_s2, %s7084_s8  ;;  %s282_s30 = int_to_ptr.vmem [resolvable:$true] %s281_s30 }
  0x65   : > { %s4579_s0 = scalar_lea.hbm %s5000_s12, 16384  ;;  %s4584_s6 = scalar_lea.hbm %s7067_s2, 16384 }
  0x66   : > { %p4580_p1 = scmp.ne.s32.totalorder %s5000_s12, %s4579_s0  ;;  %p4585_p12 = scmp.lt.s32.totalorder %s5000_s12, %s7067_s2 }
  0x67   : > { %p4586_p13 = scmp.lt.s32.totalorder %s4584_s6, %s4579_s0 }
  0x68   : > { %p4582_p6 = pnand %p4580_p1, %p4922_p9 }
  0x69   : > { %p4587_p2 = por %p4586_p13, %p4585_p12 }
  0x6a   : > { %p4583_p11 = pneg %p4582_p6 }
  0x6c   : > { %p4588_p7 = pnand %p4587_p2, %p4583_p11 }
  0x6e   : > { %4591 = shalt.err (!%p4588_p7)
}
  0x6f   : > { %s4592_s1 = scalar_lea.vmem %s282_s30, 16384  ;;  %s4767_s9 = smov [#allocation7]  }
  0x70   : > { %p4593_p10 = scmp.ne.s32.totalorder %s282_s30, %s4592_s1  ;;  %s4597_s8 = sshll.u32 %s4767_s9, 4  ;;  %s4598_s8 = int_to_ptr.vmem [resolvable:$false] %s4597_s8 }
  0x71   : > { %s4599_s24 = scalar_lea.vmem %s4598_s8, 32768  ;;  %p4600_p3 = scmp.lt.s32.totalorder %s282_s30, %s4598_s8 }
  0x72   : > { %p4595_p0 = pnand %p4593_p10, %p4922_p9  ;;  %p4601_p5 = scmp.lt.s32.totalorder %s4599_s24, %s4592_s1 }
  0x74   : > { %p4596_p8 = pneg %p4595_p0  ;;  %p4602_p1 = por %p4601_p5, %p4600_p3 }
  0x76   : > { %p4603_p6 = pnand %p4602_p1, %p4596_p8 }
  0x78   : > { %4606 = shalt.err (!%p4603_p6)
}
  0x79   : > { %4200 = dma.hbm_to_vmem [thread:$0]  (!%p4898_p4), %s5000_s12, 16384, %s282_s30, %s4916_s7, %s7110_s17, %s7110_s17, %s7109_s11  }
  0x7a   : > { %s7111_s0 = sshll.u32 %s4850_s29, 14  ;;  %s7112_s8 = sshll.u32 %s4892_s15, 10 }
  0x7b   : > { %s5027_s24 = scalar_lea.hbm %s7068_s3, %s7111_s0  ;;  %s295_s28 = scalar_lea.vmem [#allocation8], %s7112_s8 }
  0x7c   : > { %s305_s6 = sshll.u32 %s295_s28, 4  ;;  %s292_s26 = scalar_lea.sflag [#allocation9], %s4892_s15  ;;  %s5031_s6 = int_to_ptr.vmem [resolvable:$true] %s305_s6 }
  0x7d   : > { %s4607_s1 = scalar_lea.hbm %s5027_s24, 16384  ;;  %s4612_s30 = scalar_lea.hbm %s7068_s3, 16384 }
  0x7e   : > { %p4608_p11 = scmp.ne.s32.totalorder %s5027_s24, %s4607_s1  ;;  %p4613_p2 = scmp.lt.s32.totalorder %s5027_s24, %s7068_s3 }
  0x7f   : > { %p4614_p7 = scmp.lt.s32.totalorder %s4612_s30, %s4607_s1 }
  0x80   : > { %p4610_p12 = pnand %p4608_p11, %p4922_p9 }
  0x81   : > { %p4615_p10 = por %p4614_p7, %p4613_p2 }
  0x82   : > { %p4611_p13 = pneg %p4610_p12 }
  0x84   : > { %p4616_p0 = pnand %p4615_p10, %p4611_p13 }
  0x86   : > { %4619 = shalt.err (!%p4616_p0)
}
  0x87   : > { %s4620_s15 = scalar_lea.vmem %s5031_s6, 16384  ;;  %s4768_s0 = smov [#allocation8]  }
  0x88   : > { %p4621_p8 = scmp.ne.s32.totalorder %s5031_s6, %s4620_s15  ;;  %s4625_s27 = sshll.u32 %s4768_s0, 4  ;;  %s4626_s27 = int_to_ptr.vmem [resolvable:$false] %s4625_s27 }
  0x89   : > { %s4627_s20 = scalar_lea.vmem %s4626_s27, 32768  ;;  %p4628_p1 = scmp.lt.s32.totalorder %s5031_s6, %s4626_s27 }
  0x8a   : > { %p4623_p3 = pnand %p4621_p8, %p4922_p9  ;;  %p4629_p6 = scmp.lt.s32.totalorder %s4627_s20, %s4620_s15 }
  0x8c   : > { %p4624_p5 = pneg %p4623_p3  ;;  %p4630_p11 = por %p4629_p6, %p4628_p1 }
  0x8e   : > { %p4631_p12 = pnand %p4630_p11, %p4624_p5 }
  0x90   : > { %4634 = shalt.err (!%p4631_p12)
}
  0x91   : > { %4203 = dma.hbm_to_vmem [thread:$0]  (!%p4898_p4), %s5027_s24, 16384, %s5031_s6, %s292_s26, %s7110_s17, %s7110_s17, %s7109_s11  }
  0x92   : > { %p7113_p9 = scmp.ne.s32.totalorder %s7105_s16, 0 }
  0x93   : > { %s319_s23 = sand.u32 (!%p7113_p9), 1, %s4753_s22   ;;  %p7114_p13 = scmp.ne.s32.totalorder (!%p7113_p9), %s7096_s10, 0 }
  0x94   : > { %317 = sbr.rel (%p7113_p9) target bundleno = 844 (0x34c), region = 36  ;;  %s2907_s8 = sshll.u32 (!%p7113_p9), %s319_s23, 6 }
  0x95   : > { %s320_s28 = scalar_lea.sflag (!%p7113_p9), [#allocation3], %s319_s23  ;;  %s5060_s1 = scalar_lea.vmem (!%p7113_p9), [#allocation2], %s2907_s8 }
  0x99   : > { %4716 = dma.done.wait (%p7114_p13), %s320_s28, 1024  }
  0x9a   : > { %4718 = vsyncadd (%p7114_p13), %s320_s28, 4294966272  ;;  %s328_s21 = sand.u32 1, %s4840_s25   ;;  %s5067_s11 = scalar_lea.vmem [#allocation5], %s2907_s8 }
  0x9b   : > { %s329_s29 = scalar_lea.sflag [#allocation6], %s328_s21 }
  0x9c   : > { %4720 = dma.done.wait (%p7114_p13), %s329_s29, 17408  }
  0x9d   : > { %4722 = vsyncadd (%p7114_p13), %s329_s29, 4294949888  ;;  %s2909_s16 = sshll.u32 %s319_s23, 10  ;;  %s347_s24 = scalar_lea.sflag [#allocation9], %s319_s23 }
  0x9e   : > { %s5073_s17 = scalar_lea.vmem [#allocation7], %s2909_s16  ;;  %s5075_s6 = scalar_lea.vmem [#allocation8], %s2909_s16 }
  0x9f   : > { %4724 = dma.done.wait (%p7114_p13), %s347_s24, 16384  }
  0xa0   : > { %4726 = vsyncadd (%p7114_p13), %s347_s24, 4294950912  ;;  %s5082_s26 = sand.u32 1, %s4741_s19   ;;  %p2913_p4 = scmp.ge.s32.totalorder %s4840_s25, 1 }
  0xa1   : > { %s2911_s7 = sshll.u32 %s5082_s26, 6 }
  0xa2   : > { %s5085_s30 = scalar_lea.vmem [#allocation10], %s2911_s7  ;;  %s5087_s12 = scalar_lea.vmem [#allocation11], %s2911_s7 }
  0xa3   : > { %414 = sbr.rel (%p2913_p4) target bundleno = 780 (0x30c), region = 56 }
  0xa8   : > { %v446_v0 = vld [vmem:[%s5073_s17 + $0x78] sm:$0xff]  ;;  %v7086_v3 = vmov 0.0   ;;  %v445_v6 = vld [vmem:[%s5073_s17 + $0x70] sm:$0xff]  ;;  %v444_v13 = vld [vmem:[%s5073_s17 + $0x68] sm:$0xff]  ;;  %vm4770_vm0 = vmmov 0  }
  0xa9   : > { %v574_v1 = vld [vmem:[%s5075_s6 + $0x78] sm:$0xff]  ;;  %3339 = vmatprep.subr.mxu0 %v7086_v3  ;;  %3374 = vmatprep.subr.mxu1 %v7086_v3  ;;  %v573_v8 = vld [vmem:[%s5075_s6 + $0x70] sm:$0xff]  ;;  %v572_v14 = vld [vmem:[%s5075_s6 + $0x68] sm:$0xff] }
  0xaa   : > { %v462_v2 = vld [vmem:[%s5073_s17 + $0xf8] sm:$0xff]  ;;  %v5095_v4 = vadd.f32 %v574_v1, %v446_v0  ;;  %3340 = vmatpush3.msra.mxu0 %v446_v0  ;;  %v461_v9 = vld [vmem:[%s5073_s17 + $0xf0] sm:$0xff]  ;;  %v5106_v11 = vadd.f32 %v573_v8, %v445_v6  ;;  %v460_v15 = vld [vmem:[%s5073_s17 + $0xe8] sm:$0xff]  ;;  %v5113_v16 = vadd.f32 %v572_v14, %v444_v13 }
  0xab   : > { %v590_v5 = vld [vmem:[%s5075_s6 + $0xf8] sm:$0xff]  ;;  %3375 = vmatpush3.msra.mxu1 %v462_v2  ;;  %v589_v10 = vld [vmem:[%s5075_s6 + $0xf0] sm:$0xff]  ;;  %3341 = vmatprep.subr.mxu0 %v7086_v3  ;;  %v588_v17 = vld [vmem:[%s5075_s6 + $0xe8] sm:$0xff] }
  0xac   : > { %v5099_v7 = vadd.f32 %v590_v5, %v462_v2  ;;  %3376 = vmatprep.subr.mxu1 %v7086_v3  ;;  %v5108_v12 = vadd.f32 %v589_v10, %v461_v9  ;;  %3342 = vmatpush3.msra.mxu0 %v445_v6  ;;  %7115 = vst [vmem:[#allocation24_spill] sm:$0xff] %v5113_v16  ;;  %v443_v18 = vld [vmem:[%s5073_s17 + $0x60] sm:$0xff]  ;;  %v442_v24 = vld [vmem:[%s5073_s17 + $0x58] sm:$0xff]  ;;  %v441_v31 = vld [vmem:[%s5073_s17 + $0x50] sm:$0xff] }
  0xad   : > { %3377 = vmatpush3.msra.mxu1 %v461_v9  ;;  %v571_v19 = vld [vmem:[%s5075_s6 + $0x60] sm:$0xff]  ;;  %3343 = vmatprep.subr.mxu0 %v7086_v3  ;;  %v5120_v20 = vadd.f32 %v588_v17, %v460_v15  ;;  %v570_v26 = vld [vmem:[%s5075_s6 + $0x58] sm:$0xff]  ;;  %v569_v32 = vld [vmem:[%s5075_s6 + $0x50] sm:$0xff] }
  0xae   : > { %3378 = vmatprep.subr.mxu1 %v7086_v3  ;;  %v5122_v21 = vadd.f32 %v571_v19, %v443_v18  ;;  %v459_v22 = vld [vmem:[%s5073_s17 + $0xe0] sm:$0xff]  ;;  %3344 = vmatpush3.msra.mxu0 %v444_v13  ;;  %v458_v27 = vld [vmem:[%s5073_s17 + $0xd8] sm:$0xff]  ;;  %v5134_v29 = vadd.f32 %v570_v26, %v442_v24  ;;  %v457_v33 = vld [vmem:[%s5073_s17 + $0xd0] sm:$0xff]  ;;  %v5141_v34 = vadd.f32 %v569_v32, %v441_v31 }
  0xaf   : > { %7116 = vst [vmem:[#allocation25_spill] sm:$0xff] %v5120_v20  ;;  %v587_v23 = vld [vmem:[%s5075_s6 + $0xe0] sm:$0xff]  ;;  %3379 = vmatpush3.msra.mxu1 %v460_v15  ;;  %v586_v28 = vld [vmem:[%s5075_s6 + $0xd8] sm:$0xff]  ;;  %3345 = vmatprep.subr.mxu0 %v7086_v3  ;;  %v585_v35 = vld [vmem:[%s5075_s6 + $0xd0] sm:$0xff] }
  0xb0   : > { %7117 = vst [vmem:[#allocation26_spill] sm:$0xff] %v5122_v21  ;;  %v5127_v25 = vadd.f32 %v587_v23, %v459_v22  ;;  %3380 = vmatprep.subr.mxu1 %v7086_v3  ;;  %7119 = vst [vmem:[#allocation28_spill] sm:$0xff] %v5134_v29  ;;  %v5136_v30 = vadd.f32 %v586_v28, %v458_v27  ;;  %3346 = vmatpush3.msra.mxu0 %v443_v18  ;;  %v440_v36 = vld [vmem:[%s5073_s17 + $0x48] sm:$0xff]  ;;  %v439_v42 = vld [vmem:[%s5073_s17 + $0x40] sm:$0xff] }
  0xb1   : > { %3381 = vmatpush3.msra.mxu1 %v459_v22  ;;  %7121 = vst [vmem:[#allocation30_spill] sm:$0xff] %v5141_v34  ;;  %v568_v37 = vld [vmem:[%s5075_s6 + $0x48] sm:$0xff]  ;;  %3347 = vmatprep.subr.mxu0 %v7086_v3  ;;  %v5148_v38 = vadd.f32 %v585_v35, %v457_v33  ;;  %v567_v44 = vld [vmem:[%s5075_s6 + $0x40] sm:$0xff]  ;;  %v438_v49 = vld [vmem:[%s5073_s17 + $0x38] sm:$0xff] }
  0xb2   : > { %7118 = vst [vmem:[#allocation27_spill] sm:$0xff] %v5127_v25  ;;  %7120 = vst [vmem:[#allocation29_spill] sm:$0xff] %v5136_v30  ;;  %3382 = vmatprep.subr.mxu1 %v7086_v3  ;;  %v5150_v39 = vadd.f32 %v568_v37, %v440_v36  ;;  %v456_v40 = vld [vmem:[%s5073_s17 + $0xc8] sm:$0xff]  ;;  %3348 = vmatpush3.msra.mxu0 %v442_v24  ;;  %v455_v45 = vld [vmem:[%s5073_s17 + $0xc0] sm:$0xff]  ;;  %v5162_v47 = vadd.f32 %v567_v44, %v439_v42 }
  0xb3   : > { %7122 = vst [vmem:[#allocation31_spill] sm:$0xff] %v5148_v38  ;;  %v584_v41 = vld [vmem:[%s5075_s6 + $0xc8] sm:$0xff]  ;;  %3383 = vmatpush3.msra.mxu1 %v458_v27  ;;  %v583_v46 = vld [vmem:[%s5075_s6 + $0xc0] sm:$0xff]  ;;  %3349 = vmatprep.subr.mxu0 %v7086_v3  ;;  %v566_v50 = vld [vmem:[%s5075_s6 + $0x38] sm:$0xff] }
  0xb4   : > { %7123 = vst [vmem:[#allocation32_spill] sm:$0xff] %v5150_v39  ;;  %v5155_v43 = vadd.f32 %v584_v41, %v456_v40  ;;  %3384 = vmatprep.subr.mxu1 %v7086_v3  ;;  %7125 = vst [vmem:[#allocation34_spill] sm:$0xff] %v5162_v47  ;;  %v5164_v48 = vadd.f32 %v583_v46, %v455_v45  ;;  %v454_v51 = vld [vmem:[%s5073_s17 + $0xb8] sm:$0xff]  ;;  %3350 = vmatpush3.msra.mxu0 %v441_v31  ;;  %v437_v54 = vld [vmem:[%s5073_s17 + $0x30] sm:$0xff] }
  0xb5   : > { %3385 = vmatpush3.msra.mxu1 %v457_v33  ;;  %v5169_v52 = vadd.f32 %v566_v50, %v438_v49  ;;  %v582_v53 = vld [vmem:[%s5075_s6 + $0xb8] sm:$0xff]  ;;  %v565_v55 = vld [vmem:[%s5075_s6 + $0x30] sm:$0xff]  ;;  %3351 = vmatprep.subr.mxu0 %v7086_v3  ;;  %v436_v60 = vld [vmem:[%s5073_s17 + $0x28] sm:$0xff] }
  0xb6   : > { %7124 = vst [vmem:[#allocation33_spill] sm:$0xff] %v5155_v43  ;;  %7126 = vst [vmem:[#allocation35_spill] sm:$0xff] %v5164_v48  ;;  %3386 = vmatprep.subr.mxu1 %v7086_v3  ;;  %v5176_v56 = vadd.f32 %v582_v53, %v454_v51  ;;  %v5178_v57 = vadd.f32 %v565_v55, %v437_v54  ;;  %v453_v58 = vld [vmem:[%s5073_s17 + $0xb0] sm:$0xff]  ;;  %3352 = vmatpush3.msra.mxu0 %v440_v36  ;;  %v564_v62 = vld [vmem:[%s5075_s6 + $0x28] sm:$0xff] }
  0xb7   : > { %7127 = vst [vmem:[#allocation36_spill] sm:$0xff] %v5169_v52  ;;  %v581_v59 = vld [vmem:[%s5075_s6 + $0xb0] sm:$0xff]  ;;  %3387 = vmatpush3.msra.mxu1 %v456_v40  ;;  %v452_v63 = vld [vmem:[%s5073_s17 + $0xa8] sm:$0xff]  ;;  %3353 = vmatprep.subr.mxu0 %v7086_v3  ;;  %v5190_v1 = vadd.f32 %v564_v62, %v436_v60  ;;  %v435_v5 = vld [vmem:[%s5073_s17 + $0x20] sm:$0xff] }
  0xb8   : > { %7128 = vst [vmem:[#allocation37_spill] sm:$0xff] %v5176_v56  ;;  %7129 = vst [vmem:[#allocation38_spill] sm:$0xff] %v5178_v57  ;;  %v5183_v61 = vadd.f32 %v581_v59, %v453_v58  ;;  %v580_v0 = vld [vmem:[%s5075_s6 + $0xa8] sm:$0xff]  ;;  %3388 = vmatprep.subr.mxu1 %v7086_v3  ;;  %v563_v6 = vld [vmem:[%s5075_s6 + $0x20] sm:$0xff]  ;;  %3354 = vmatpush3.msra.mxu0 %v439_v42 }
  0xb9   : > { %7131 = vst [vmem:[#allocation40_spill] sm:$0xff] %v5190_v1  ;;  %v5192_v2 = vadd.f32 %v580_v0, %v452_v63  ;;  %v451_v8 = vld [vmem:[%s5073_s17 + $0xa0] sm:$0xff]  ;;  %3389 = vmatpush3.msra.mxu1 %v455_v45  ;;  %v5197_v9 = vadd.f32 %v563_v6, %v435_v5  ;;  %v434_v13 = vld [vmem:[%s5073_s17 + $0x18] sm:$0xff]  ;;  %3355 = vmatprep.subr.mxu0 %v7086_v3  ;;  %v5211_v22 = vld [vmem:[%s5073_s17 + $0x10] sm:$0xff] }
  0xba   : > { %7130 = vst [vmem:[#allocation39_spill] sm:$0xff] %v5183_v61  ;;  %v579_v10 = vld [vmem:[%s5075_s6 + $0xa0] sm:$0xff]  ;;  %v562_v14 = vld [vmem:[%s5075_s6 + $0x18] sm:$0xff]  ;;  %3390 = vmatprep.subr.mxu1 %v7086_v3  ;;  %3356 = vmatpush3.msra.mxu0 %v438_v49  ;;  %v561_v24 = vld [vmem:[%s5075_s6 + $0x10] sm:$0xff] }
  0xbb   : > { %7132 = vst [vmem:[#allocation41_spill] sm:$0xff] %v5192_v2  ;;  %7133 = vst [vmem:[#allocation42_spill] sm:$0xff] %v5197_v9  ;;  %v5204_v15 = vadd.f32 %v579_v10, %v451_v8  ;;  %v5206_v17 = vadd.f32 %v562_v14, %v434_v13  ;;  %v450_v18 = vld [vmem:[%s5073_s17 + $0x98] sm:$0xff]  ;;  %3391 = vmatpush3.msra.mxu1 %v454_v51  ;;  %v449_v26 = vld [vmem:[%s5073_s17 + $0x90] sm:$0xff]  ;;  %3357 = vmatprep.subr.mxu0 %v7086_v3 }
  0xbc   : > { %v578_v19 = vld [vmem:[%s5075_s6 + $0x98] sm:$0xff]  ;;  %v577_v27 = vld [vmem:[%s5075_s6 + $0x90] sm:$0xff]  ;;  %3392 = vmatprep.subr.mxu1 %v7086_v3  ;;  %v5221_v28 = vadd.f32 %v561_v24, %v5211_v22  ;;  %v5226_v32 = vld [vmem:[%s5073_s17 + $0x8] sm:$0xff]  ;;  %3358 = vmatpush3.msra.mxu0 %v437_v54 }
  0xbd   : > { %7134 = vst [vmem:[#allocation43_spill] sm:$0xff] %v5204_v15  ;;  %7135 = vst [vmem:[#allocation44_spill] sm:$0xff] %v5206_v17  ;;  %v5213_v23 = vadd.f32 %v578_v19, %v450_v18  ;;  %v5223_v31 = vadd.f32 %v577_v27, %v449_v26  ;;  %v560_v33 = vld [vmem:[%s5075_s6 + $0x8] sm:$0xff]  ;;  %3393 = vmatpush3.msra.mxu1 %v453_v58  ;;  %v5237_v40 = vld [vmem:[%s5073_s17] sm:$0xff]  ;;  %3359 = vmatprep.subr.mxu0 %v7086_v3 }
  0xbe   : > { %7137 = vst [vmem:[#allocation46_spill] sm:$0xff] %v5221_v28  ;;  %v5230_v35 = vld [vmem:[%s5073_s17 + $0x88] sm:$0xff]  ;;  %v5233_v36 = vadd.f32 %v560_v33, %v5226_v32  ;;  %v559_v41 = vld [vmem:[%s5075_s6] sm:$0xff]  ;;  %3394 = vmatprep.subr.mxu1 %v7086_v3  ;;  %3360 = vmatpush3.msra.mxu0 %v436_v60  ;;  %v5258_v50 = vld [vmem:[%s5073_s17 + $0x178] sm:$0xff] }
  0xbf   : > { %7136 = vst [vmem:[#allocation45_spill] sm:$0xff] %v5213_v23  ;;  %7138 = vst [vmem:[#allocation47_spill] sm:$0xff] %v5223_v31  ;;  %v576_v37 = vld [vmem:[%s5075_s6 + $0x88] sm:$0xff]  ;;  %v5246_v44 = vadd.f32 %v559_v41, %v5237_v40  ;;  %v5249_v45 = vld [vmem:[%s5073_s17 + $0x80] sm:$0xff]  ;;  %3395 = vmatpush3.msra.mxu1 %v452_v63  ;;  %3361 = vmatprep.subr.mxu0 %v7086_v3 }
  0xc0   : > { %7139 = vst [vmem:[#allocation48_spill] sm:$0xff] %v5233_v36  ;;  %v5243_v42 = vadd.f32 %v576_v37, %v5230_v35  ;;  %v575_v46 = vld [vmem:[%s5075_s6 + $0x80] sm:$0xff]  ;;  %3396 = vmatprep.subr.mxu1 %v7086_v3  ;;  %v606_v51 = vld [vmem:[%s5075_s6 + $0x178] sm:$0xff]  ;;  %3362 = vmatpush3.msra.mxu0 %v435_v5  ;;  %v5269_v58 = vld [vmem:[%s5073_s17 + $0x170] sm:$0xff] }
  0xc1   : > { %7141 = vst [vmem:[#allocation50_spill] sm:$0xff] %v5246_v44  ;;  %v5253_v49 = vadd.f32 %v575_v46, %v5249_v45  ;;  %v5262_v53 = vld [vmem:[%s5073_s17 + $0x1f8] sm:$0xff]  ;;  %3397 = vmatpush3.msra.mxu1 %v451_v8  ;;  %v5265_v54 = vadd.f32 %v606_v51, %v5258_v50  ;;  %v605_v59 = vld [vmem:[%s5075_s6 + $0x170] sm:$0xff]  ;;  %3363 = vmatprep.subr.mxu0 %v7086_v3  ;;  %v415_v60 = vld [vmem:[%s5060_s1] sm:$0xff] }
  0xc2   : > { %7140 = vst [vmem:[#allocation49_spill] sm:$0xff] %v5243_v42  ;;  %v622_v55 = vld [vmem:[%s5075_s6 + $0x1f8] sm:$0xff]  ;;  %3398 = vmatprep.subr.mxu1 %v7086_v3  ;;  %v423_v62 = vld [vmem:[%s5067_s11] sm:$0xff]  ;;  %v416_v63 = vld [vmem:[%s5060_s1 + $0x8] sm:$0xff]  ;;  %v5282_v6 = vadd.f32 %v605_v59, %v5269_v58  ;;  %3364 = vmatpush3.msra.mxu0 %v434_v13 }
  0xc3   : > { %7142 = vst [vmem:[#allocation51_spill] sm:$0xff] %v5253_v49  ;;  %7143 = vst [vmem:[#allocation52_spill] sm:$0xff] %v5265_v54  ;;  %v424_v0 = vld [vmem:[%s5067_s11 + $0x8] sm:$0xff]  ;;  %v5279_v5 = vadd.f32 %v622_v55, %v5262_v53  ;;  %v5285_v8 = vld [vmem:[%s5073_s17 + $0x1f0] sm:$0xff]  ;;  %3399 = vmatpush3.msra.mxu1 %v450_v18  ;;  %3365 = vmatprep.subr.mxu0 %v7086_v3 }
  0xc4   : > { %7145 = vst [vmem:[#allocation54_spill] sm:$0xff] %v5282_v6  ;;  %v621_v10 = vld [vmem:[%s5075_s6 + $0x1f0] sm:$0xff]  ;;  %v5289_v14 = vld [vmem:[%s5073_s17 + $0x168] sm:$0xff]  ;;  %3400 = vmatprep.subr.mxu1 %v7086_v3  ;;  %v5308_v18 = vld [vmem:[%s5073_s17 + $0x160] sm:$0xff]  ;;  %3366 = vmatpush3.msra.mxu0 %v5211_v22 }
  0xc5   : > { %7144 = vst [vmem:[#allocation53_spill] sm:$0xff] %v5279_v5  ;;  %v5292_v19 = vadd.f32 %v621_v10, %v5285_v8  ;;  %v604_v24 = vld [vmem:[%s5075_s6 + $0x168] sm:$0xff]  ;;  %v603_v41 = vld [vmem:[%s5075_s6 + $0x160] sm:$0xff]  ;;  %3401 = vmatpush3.msra.mxu1 %v449_v26  ;;  %v5320_v59 = vld [vmem:[%s5073_s17 + $0x158] sm:$0xff]  ;;  %3367 = vmatprep.subr.mxu0 %v7086_v3 }
  0xc6   : > { %v5296_v27 = vld [vmem:[%s5073_s17 + $0x1e8] sm:$0xff]  ;;  %v5302_v37 = vadd.f32 %v604_v24, %v5289_v14  ;;  %v5312_v46 = vld [vmem:[%s5073_s17 + $0x1e0] sm:$0xff]  ;;  %v5316_v51 = vadd.f32 %v603_v41, %v5308_v18  ;;  %v602_v10 = vld [vmem:[%s5075_s6 + $0x158] sm:$0xff]  ;;  %3402 = vmatprep.subr.mxu1 %v7086_v3  ;;  %3368 = vmatpush3.msra.mxu0 %v5226_v32  ;;  %v688_v3 = vadd.f32 %v424_v0, %v416_v63 }
  0xc7   : > { %7146 = vst [vmem:[#allocation55_spill] sm:$0xff] %v5292_v19  ;;  %v620_v33 = vld [vmem:[%s5075_s6 + $0x1e8] sm:$0xff]  ;;  %v619_v55 = vld [vmem:[%s5075_s6 + $0x1e0] sm:$0xff]  ;;  %v5329_v22 = vadd.f32 %v602_v10, %v5320_v59  ;;  %v5332_v26 = vld [vmem:[%s5073_s17 + $0x1d8] sm:$0xff]  ;;  %3403 = vmatpush3.msra.mxu1 %v5230_v35 }
  0xc8   : > { %7147 = vst [vmem:[#allocation56_spill] sm:$0xff] %v5302_v37  ;;  %v5305_v13 = vadd.f32 %v620_v33, %v5296_v27  ;;  %7149 = vst [vmem:[#allocation58_spill] sm:$0xff] %v5316_v51  ;;  %v5326_v24 = vadd.f32 %v619_v55, %v5312_v46  ;;  %v618_v33 = vld [vmem:[%s5075_s6 + $0x1d8] sm:$0xff]  ;;  %v5336_v41 = vld [vmem:[%s5073_s17 + $0x150] sm:$0xff]  ;;  %v687_v51 = vadd.f32 %v423_v62, %v415_v60 }
  0xc9   : > { %7151 = vst [vmem:[#allocation60_spill] sm:$0xff] %v5329_v22  ;;  %v5341_v55 = vadd.f32 %v618_v33, %v5332_v26  ;;  %v601_v10 = vld [vmem:[%s5075_s6 + $0x150] sm:$0xff]  ;;  %v5357_v60 = vld [vmem:[%s5073_s17 + $0x148] sm:$0xff]  ;;  %v5371_v33 = vld [vmem:[%s5073_s17 + $0x140] sm:$0xff] }
  0xca   : > { %7148 = vst [vmem:[#allocation57_spill] sm:$0xff] %v5305_v13  ;;  %7150 = vst [vmem:[#allocation59_spill] sm:$0xff] %v5326_v24  ;;  %v5345_v22 = vld [vmem:[%s5073_s17 + $0x1d0] sm:$0xff]  ;;  %v7153_v13 = vmov 0.0   ;;  %v5351_v32 = vadd.f32 %v601_v10, %v5336_v41  ;;  %v600_v62 = vld [vmem:[%s5075_s6 + $0x148] sm:$0xff] }
  0xcb   : > { %7152 = vst [vmem:[#allocation61_spill] sm:$0xff] %v5341_v55  ;;  %v617_v24 = vld [vmem:[%s5075_s6 + $0x1d0] sm:$0xff]  ;;  %3369 = vmatprep.subr.mxu0 %v7153_v13  ;;  %3404 = vmatprep.subr.mxu1 %v7153_v13  ;;  %v5361_v63 = vld [vmem:[%s5073_s17 + $0x1c8] sm:$0xff]  ;;  %v5367_v0 = vadd.f32 %v600_v62, %v5357_v60  ;;  %v599_v10 = vld [vmem:[%s5075_s6 + $0x140] sm:$0xff] }
  0xcc   : > { %7154 = vst [vmem:[#allocation62_spill] sm:$0xff] %v5351_v32  ;;  %v5354_v35 = vadd.f32 %v617_v24, %v5345_v22  ;;  %3370 = vmatpush3.msra.mxu0 %v5237_v40  ;;  %3371 = vmatprep.mubr.msk.f32.mxu0 %vm4770_vm0, %v7153_v13  ;;  %v616_v24 = vld [vmem:[%s5075_s6 + $0x1c8] sm:$0xff]  ;;  %v5384_v62 = vld [vmem:[%s5073_s17 + $0x1c0] sm:$0xff]  ;;  %v5388_v32 = vld [vmem:[%s5073_s17 + $0x138] sm:$0xff] }
  0xcd   : > { %7156 = vst [vmem:[#allocation64_spill] sm:$0xff] %v5367_v0  ;;  %3405 = vmatpush3.msra.mxu1 %v5249_v45  ;;  %3406 = vmatprep.mubr.msk.f32.mxu1 %vm4770_vm0, %v7153_v13  ;;  %v5378_v40 = vadd.f32 %v616_v24, %v5361_v63  ;;  %v615_v0 = vld [vmem:[%s5075_s6 + $0x1c0] sm:$0xff]  ;;  %v598_v24 = vld [vmem:[%s5075_s6 + $0x138] sm:$0xff]  ;;  %v5701_v28 = vld [vmem:[%s5073_s17 + $0x228] sm:$0xff] }
  0xce   : > { %7155 = vst [vmem:[#allocation63_spill] sm:$0xff] %v5354_v35  ;;  %v5381_v35 = vadd.f32 %v599_v10, %v5371_v33  ;;  %3372 = vmatmul.mubr.f32.vlgmr.msra.gmra.mxu0 %v687_v51  ;;  %3407 = vmatmul.mubr.f32.vlgmr.msra.gmra.mxu1 %v688_v3  ;;  %v5391_v45 = vadd.f32 %v615_v0, %v5384_v62  ;;  %v614_v55 = vld [vmem:[%s5075_s6 + $0x1b8] sm:$0xff]  ;;  %v5407_v51 = vld [vmem:[%s5073_s17 + $0x130] sm:$0xff]  ;;  %v5516_v5 = vld [vmem:[%s5073_s17 + $0x180] sm:$0xff] }
  0xcf   : > { %7157 = vst [vmem:[#allocation65_spill] sm:$0xff] %v5378_v40  ;;  %v5395_v40 = vld [vmem:[%s5073_s17 + $0x1b8] sm:$0xff]  ;;  %3409 = vmatprep.subr.mxu0 %v7153_v13  ;;  %3444 = vmatprep.subr.mxu1 %v7153_v13  ;;  %v5401_v10 = vadd.f32 %v598_v24, %v5388_v32  ;;  %v597_v0 = vld [vmem:[%s5075_s6 + $0x130] sm:$0xff]  ;;  %v628_v23 = vld [vmem:[%s5075_s6 + $0x228] sm:$0xff] }
  0xd0   : > { %7158 = vst [vmem:[#allocation66_spill] sm:$0xff] %v5381_v35  ;;  %7159 = vst [vmem:[#allocation67_spill] sm:$0xff] %v5391_v45  ;;  %v5404_v3 = vadd.f32 %v614_v55, %v5395_v40  ;;  %v5411_v45 = vld [vmem:[%s5073_s17 + $0x1b0] sm:$0xff]  ;;  %3410 = vmatpush3.msra.mxu0 %v5258_v50  ;;  %3445 = vmatpush3.msra.mxu1 %v5262_v53  ;;  %v5416_v35 = vadd.f32 %v597_v0, %v5407_v51  ;;  %v596_v55 = vld [vmem:[%s5075_s6 + $0x128] sm:$0xff] }
  0xd1   : > { %7160 = vst [vmem:[#allocation68_spill] sm:$0xff] %v5401_v10  ;;  %v613_v24 = vld [vmem:[%s5075_s6 + $0x1b0] sm:$0xff]  ;;  %v5420_v10 = vld [vmem:[%s5073_s17 + $0x128] sm:$0xff]  ;;  %3411 = vmatprep.subr.mxu0 %v7153_v13  ;;  %3446 = vmatprep.subr.mxu1 %v7153_v13  ;;  %v5691_v31 = vld [vmem:[%s5060_s1 + $0x18] sm:$0xff]  ;;  %v5710_v15 = vadd.f32 %v628_v23, %v5701_v28 }
  0xd2   : > { %7161 = vst [vmem:[#allocation69_spill] sm:$0xff] %v5404_v3  ;;  %7162 = vst [vmem:[#allocation70_spill] sm:$0xff] %v5416_v35  ;;  %v5426_v3 = vadd.f32 %v613_v24, %v5411_v45  ;;  %v5429_v50 = vadd.f32 %v596_v55, %v5420_v10  ;;  %v5432_v53 = vld [vmem:[%s5073_s17 + $0x1a8] sm:$0xff]  ;;  %v5436_v35 = vld [vmem:[%s5073_s17 + $0x120] sm:$0xff]  ;;  %3412 = vmatpush3.msra.mxu0 %v5269_v58  ;;  %3447 = vmatpush3.msra.mxu1 %v5285_v8 }
  0xd3   : > { %v612_v0 = vld [vmem:[%s5075_s6 + $0x1a8] sm:$0xff]  ;;  %v595_v24 = vld [vmem:[%s5075_s6 + $0x120] sm:$0xff]  ;;  %3413 = vmatprep.subr.mxu0 %v7153_v13  ;;  %3448 = vmatprep.subr.mxu1 %v7153_v13  ;;  %v5457_v8 = vld [vmem:[%s5073_s17 + $0x118] sm:$0xff]  ;;  %7196 = vst [vmem:[#allocation104_spill] sm:$0xff] %v5710_v15 }
  0xd4   : > { %7163 = vst [vmem:[#allocation71_spill] sm:$0xff] %v5426_v3  ;;  %7164 = vst [vmem:[#allocation72_spill] sm:$0xff] %v5429_v50  ;;  %v5441_v37 = vadd.f32 %v612_v0, %v5432_v53  ;;  %v5445_v3 = vld [vmem:[%s5073_s17 + $0x1a0] sm:$0xff]  ;;  %v5451_v50 = vadd.f32 %v595_v24, %v5436_v35  ;;  %v594_v0 = vld [vmem:[%s5075_s6 + $0x118] sm:$0xff]  ;;  %3414 = vmatpush3.msra.mxu0 %v5289_v14  ;;  %3449 = vmatpush3.msra.mxu1 %v5296_v27 }
  0xd5   : > { %v611_v55 = vld [vmem:[%s5075_s6 + $0x1a0] sm:$0xff]  ;;  %v5466_v19 = vadd.f32 %v594_v0, %v5457_v8  ;;  %v610_v24 = vld [vmem:[%s5075_s6 + $0x198] sm:$0xff]  ;;  %3415 = vmatprep.subr.mxu0 %v7153_v13  ;;  %3450 = vmatprep.subr.mxu1 %v7153_v13  ;;  %v5482_v27 = vld [vmem:[%s5073_s17 + $0x190] sm:$0xff] }
  0xd6   : > { %7165 = vst [vmem:[#allocation73_spill] sm:$0xff] %v5441_v37  ;;  %7166 = vst [vmem:[#allocation74_spill] sm:$0xff] %v5451_v50  ;;  %v5454_v58 = vadd.f32 %v611_v55, %v5445_v3  ;;  %v5461_v37 = vld [vmem:[%s5073_s17 + $0x198] sm:$0xff]  ;;  %v5470_v50 = vld [vmem:[%s5073_s17 + $0x110] sm:$0xff]  ;;  %3416 = vmatpush3.msra.mxu0 %v5308_v18  ;;  %3451 = vmatpush3.msra.mxu1 %v5312_v46 }
  0xd7   : > { %7168 = vst [vmem:[#allocation76_spill] sm:$0xff] %v5466_v19  ;;  %v593_v55 = vld [vmem:[%s5075_s6 + $0x110] sm:$0xff]  ;;  %v5486_v19 = vld [vmem:[%s5073_s17 + $0x108] sm:$0xff]  ;;  %3417 = vmatprep.subr.mxu0 %v7153_v13  ;;  %3452 = vmatprep.subr.mxu1 %v7153_v13  ;;  %v5507_v46 = vld [vmem:[%s5073_s17 + $0x100] sm:$0xff] }
  0xd8   : > { %7167 = vst [vmem:[#allocation75_spill] sm:$0xff] %v5454_v58  ;;  %v5476_v58 = vadd.f32 %v610_v24, %v5461_v37  ;;  %v5479_v14 = vadd.f32 %v593_v55, %v5470_v50  ;;  %v609_v0 = vld [vmem:[%s5075_s6 + $0x190] sm:$0xff]  ;;  %v592_v24 = vld [vmem:[%s5075_s6 + $0x108] sm:$0xff]  ;;  %3418 = vmatpush3.msra.mxu0 %v5320_v59  ;;  %3453 = vmatpush3.msra.mxu1 %v5332_v26  ;;  %v638_v59 = vld [vmem:[%s5075_s6 + $0x278] sm:$0xff] }
  0xd9   : > { %v5491_v6 = vadd.f32 %v609_v0, %v5482_v27  ;;  %v608_v55 = vld [vmem:[%s5075_s6 + $0x188] sm:$0xff]  ;;  %v591_v0 = vld [vmem:[%s5075_s6 + $0x100] sm:$0xff]  ;;  %3419 = vmatprep.subr.mxu0 %v7153_v13  ;;  %3454 = vmatprep.subr.mxu1 %v7153_v13  ;;  %v5730_v15 = vld [vmem:[%s5073_s17 + $0x218] sm:$0xff] }
  0xda   : > { %7169 = vst [vmem:[#allocation77_spill] sm:$0xff] %v5476_v58  ;;  %7170 = vst [vmem:[#allocation78_spill] sm:$0xff] %v5479_v14  ;;  %v5495_v58 = vld [vmem:[%s5073_s17 + $0x188] sm:$0xff]  ;;  %v5501_v14 = vadd.f32 %v592_v24, %v5486_v19  ;;  %v607_v24 = vld [vmem:[%s5075_s6 + $0x180] sm:$0xff]  ;;  %3420 = vmatpush3.msra.mxu0 %v5336_v41  ;;  %3455 = vmatpush3.msra.mxu1 %v5345_v22 }
  0xdb   : > { %7171 = vst [vmem:[#allocation79_spill] sm:$0xff] %v5491_v6  ;;  %v5504_v18 = vadd.f32 %v608_v55, %v5495_v58  ;;  %v5513_v6 = vadd.f32 %v591_v0, %v5507_v46  ;;  %v5522_v55 = vadd.f32 %v607_v24, %v5516_v5  ;;  %v5534_v0 = vld [vmem:[%s5073_s17 + $0x2f8] sm:$0xff]  ;;  %3421 = vmatprep.subr.mxu0 %v7153_v13  ;;  %v5543_v41 = vld [vmem:[%s5073_s17 + $0x270] sm:$0xff]  ;;  %v5705_v17 = vld [vmem:[%s5073_s17 + $0x2a8] sm:$0xff] }
  0xdc   : > { %7172 = vst [vmem:[#allocation80_spill] sm:$0xff] %v5501_v14  ;;  %3456 = vmatprep.subr.mxu1 %v7153_v13  ;;  %v5547_v22 = vld [vmem:[%s5073_s17 + $0x2f0] sm:$0xff]  ;;  %3422 = vmatpush3.msra.mxu0 %v5357_v60  ;;  %v5556_v14 = vld [vmem:[%s5073_s17 + $0x268] sm:$0xff]  ;;  %v5726_v23 = vld [vmem:[%s5073_s17 + $0x2a0] sm:$0xff] }
  0xdd   : > { %7173 = vst [vmem:[#allocation81_spill] sm:$0xff] %v5504_v18  ;;  %7174 = vst [vmem:[#allocation82_spill] sm:$0xff] %v5513_v6  ;;  %v5525_v18 = vld [vmem:[%s5073_s17 + $0x278] sm:$0xff]  ;;  %3457 = vmatpush3.msra.mxu1 %v5361_v63  ;;  %3423 = vmatprep.subr.mxu0 %v7153_v13  ;;  %v5568_v63 = vld [vmem:[%s5073_s17 + $0x2e8] sm:$0xff] }
  0xde   : > { %7175 = vst [vmem:[#allocation83_spill] sm:$0xff] %v5522_v55  ;;  %v5531_v26 = vadd.f32 %v638_v59, %v5525_v18  ;;  %v654_v6 = vld [vmem:[%s5075_s6 + $0x2f8] sm:$0xff]  ;;  %v637_v55 = vld [vmem:[%s5075_s6 + $0x270] sm:$0xff]  ;;  %3458 = vmatprep.subr.mxu1 %v7153_v13  ;;  %3424 = vmatpush3.msra.mxu0 %v5371_v33  ;;  %v624_v1 = vld [vmem:[%s5075_s6 + $0x208] sm:$0xff] }
  0xdf   : > { %v5540_v24 = vadd.f32 %v654_v6, %v5534_v0  ;;  %v5552_v59 = vadd.f32 %v637_v55, %v5543_v41  ;;  %v636_v6 = vld [vmem:[%s5075_s6 + $0x268] sm:$0xff]  ;;  %3459 = vmatpush3.msra.mxu1 %v5384_v62  ;;  %3425 = vmatprep.subr.mxu0 %v7153_v13  ;;  %v5593_v62 = vld [vmem:[%s5073_s17 + $0x258] sm:$0xff]  ;;  %v6029_v39 = vld [vmem:[%s5073_s17 + $0x310] sm:$0xff] }
  0xe0   : > { %7176 = vst [vmem:[#allocation84_spill] sm:$0xff] %v5531_v26  ;;  %v653_v26 = vld [vmem:[%s5075_s6 + $0x2f0] sm:$0xff]  ;;  %v5565_v60 = vadd.f32 %v636_v6, %v5556_v14  ;;  %v652_v55 = vld [vmem:[%s5075_s6 + $0x2e8] sm:$0xff]  ;;  %v651_v6 = vld [vmem:[%s5075_s6 + $0x2e0] sm:$0xff]  ;;  %3460 = vmatprep.subr.mxu1 %v7153_v13  ;;  %3426 = vmatpush3.msra.mxu0 %v5388_v32 }
  0xe1   : > { %7177 = vst [vmem:[#allocation85_spill] sm:$0xff] %v5540_v24  ;;  %7178 = vst [vmem:[#allocation86_spill] sm:$0xff] %v5552_v59  ;;  %v5562_v24 = vadd.f32 %v653_v26, %v5547_v22  ;;  %v5572_v59 = vld [vmem:[%s5073_s17 + $0x260] sm:$0xff]  ;;  %v5577_v54 = vadd.f32 %v652_v55, %v5568_v63  ;;  %v634_v55 = vld [vmem:[%s5075_s6 + $0x258] sm:$0xff]  ;;  %3461 = vmatpush3.msra.mxu1 %v5395_v40  ;;  %3427 = vmatprep.subr.mxu0 %v7153_v13 }
  0xe2   : > { %7180 = vst [vmem:[#allocation88_spill] sm:$0xff] %v5565_v60  ;;  %v635_v26 = vld [vmem:[%s5075_s6 + $0x260] sm:$0xff]  ;;  %v5602_v49 = vadd.f32 %v634_v55, %v5593_v62  ;;  %3462 = vmatprep.subr.mxu1 %v7153_v13  ;;  %v5618_v40 = vld [vmem:[%s5073_s17 + $0x2d0] sm:$0xff]  ;;  %3428 = vmatpush3.msra.mxu0 %v5407_v51  ;;  %v6026_v43 = vld [vmem:[%s5075_s6 + $0x398] sm:$0xff] }
  0xe3   : > { %7179 = vst [vmem:[#allocation87_spill] sm:$0xff] %v5562_v24  ;;  %7181 = vst [vmem:[#allocation89_spill] sm:$0xff] %v5577_v54  ;;  %v5581_v24 = vld [vmem:[%s5073_s17 + $0x2e0] sm:$0xff]  ;;  %v5587_v60 = vadd.f32 %v635_v26, %v5572_v59  ;;  %v5597_v54 = vld [vmem:[%s5073_s17 + $0x2d8] sm:$0xff]  ;;  %3463 = vmatpush3.msra.mxu1 %v5411_v45  ;;  %3429 = vmatprep.subr.mxu0 %v7153_v13 }
  0xe4   : > { %v5590_v33 = vadd.f32 %v651_v6, %v5581_v24  ;;  %7184 = vst [vmem:[#allocation92_spill] sm:$0xff] %v5602_v49  ;;  %v650_v26 = vld [vmem:[%s5075_s6 + $0x2d8] sm:$0xff]  ;;  %v633_v6 = vld [vmem:[%s5075_s6 + $0x250] sm:$0xff]  ;;  %v5622_v49 = vld [vmem:[%s5073_s17 + $0x248] sm:$0xff]  ;;  %3464 = vmatprep.subr.mxu1 %v7153_v13  ;;  %3430 = vmatpush3.msra.mxu0 %v5420_v10 }
  0xe5   : > { %7182 = vst [vmem:[#allocation90_spill] sm:$0xff] %v5587_v60  ;;  %v5606_v60 = vld [vmem:[%s5073_s17 + $0x250] sm:$0xff]  ;;  %v5643_v51 = vld [vmem:[%s5073_s17 + $0x240] sm:$0xff]  ;;  %3465 = vmatpush3.msra.mxu1 %v5432_v53  ;;  %3431 = vmatprep.subr.mxu0 %v7153_v13  ;;  %v6060_v30 = vld [vmem:[%s5075_s6 + $0x308] sm:$0xff] }
  0xe6   : > { %7183 = vst [vmem:[#allocation91_spill] sm:$0xff] %v5590_v33  ;;  %v5612_v33 = vadd.f32 %v650_v26, %v5597_v54  ;;  %v5615_v32 = vadd.f32 %v633_v6, %v5606_v60  ;;  %v649_v55 = vld [vmem:[%s5075_s6 + $0x2d0] sm:$0xff]  ;;  %v632_v26 = vld [vmem:[%s5075_s6 + $0x248] sm:$0xff]  ;;  %3466 = vmatprep.subr.mxu1 %v7153_v13  ;;  %3432 = vmatpush3.msra.mxu0 %v5436_v35  ;;  %v6075_v21 = vld [vmem:[%s5073_s17 + $0x300] sm:$0xff] }
  0xe7   : > { %v5627_v44 = vadd.f32 %v649_v55, %v5618_v40  ;;  %v648_v6 = vld [vmem:[%s5075_s6 + $0x2c8] sm:$0xff]  ;;  %v631_v55 = vld [vmem:[%s5075_s6 + $0x240] sm:$0xff]  ;;  %3467 = vmatpush3.msra.mxu1 %v5445_v3  ;;  %3433 = vmatprep.subr.mxu0 %v7153_v13  ;;  %v425_v35 = vld [vmem:[%s5067_s11 + $0x10] sm:$0xff] }
  0xe8   : > { %7185 = vst [vmem:[#allocation93_spill] sm:$0xff] %v5612_v33  ;;  %7186 = vst [vmem:[#allocation94_spill] sm:$0xff] %v5615_v32  ;;  %v5631_v33 = vld [vmem:[%s5073_s17 + $0x2c8] sm:$0xff]  ;;  %v5637_v32 = vadd.f32 %v632_v26, %v5622_v49  ;;  %v5652_v42 = vadd.f32 %v631_v55, %v5643_v51  ;;  %v647_v26 = vld [vmem:[%s5075_s6 + $0x2c0] sm:$0xff]  ;;  %3468 = vmatprep.subr.mxu1 %v7153_v13  ;;  %3434 = vmatpush3.msra.mxu0 %v5457_v8 }
  0xe9   : > { %7187 = vst [vmem:[#allocation95_spill] sm:$0xff] %v5627_v44  ;;  %v5640_v45 = vadd.f32 %v648_v6, %v5631_v33  ;;  %v5647_v44 = vld [vmem:[%s5073_s17 + $0x2c0] sm:$0xff]  ;;  %v630_v6 = vld [vmem:[%s5075_s6 + $0x238] sm:$0xff]  ;;  %3469 = vmatpush3.msra.mxu1 %v5461_v37  ;;  %3435 = vmatprep.subr.mxu0 %v7153_v13  ;;  %v6038_v38 = vld [vmem:[%s5075_s6 + $0x310] sm:$0xff] }
  0xea   : > { %7188 = vst [vmem:[#allocation96_spill] sm:$0xff] %v5637_v32  ;;  %7190 = vst [vmem:[#allocation98_spill] sm:$0xff] %v5652_v42  ;;  %v5656_v32 = vld [vmem:[%s5073_s17 + $0x238] sm:$0xff]  ;;  %v5662_v10 = vadd.f32 %v647_v26, %v5647_v44  ;;  %v629_v26 = vld [vmem:[%s5075_s6 + $0x230] sm:$0xff]  ;;  %3470 = vmatprep.subr.mxu1 %v7153_v13  ;;  %3436 = vmatpush3.msra.mxu0 %v5470_v50 }
  0xeb   : > { %7189 = vst [vmem:[#allocation97_spill] sm:$0xff] %v5640_v45  ;;  %v5665_v53 = vadd.f32 %v630_v6, %v5656_v32  ;;  %v5668_v55 = vld [vmem:[%s5073_s17 + $0x2b8] sm:$0xff]  ;;  %v5672_v45 = vld [vmem:[%s5073_s17 + $0x230] sm:$0xff]  ;;  %v643_v8 = vld [vmem:[%s5075_s6 + $0x2a0] sm:$0xff]  ;;  %3471 = vmatpush3.msra.mxu1 %v5482_v27  ;;  %3437 = vmatprep.subr.mxu0 %v7153_v13 }
  0xec   : > { %7191 = vst [vmem:[#allocation99_spill] sm:$0xff] %v5662_v10  ;;  %v646_v42 = vld [vmem:[%s5075_s6 + $0x2b8] sm:$0xff]  ;;  %v5681_v10 = vld [vmem:[%s5073_s17 + $0x2b0] sm:$0xff]  ;;  %v5735_v9 = vadd.f32 %v643_v8, %v5726_v23  ;;  %3472 = vmatprep.subr.mxu1 %v7153_v13  ;;  %3438 = vmatpush3.msra.mxu0 %v5486_v19  ;;  %v6063_v29 = vld [vmem:[%s5073_s17 + $0x388] sm:$0xff] }
  0xed   : > { %7192 = vst [vmem:[#allocation100_spill] sm:$0xff] %v5665_v53  ;;  %v5677_v36 = vadd.f32 %v646_v42, %v5668_v55  ;;  %v645_v6 = vld [vmem:[%s5075_s6 + $0x2b0] sm:$0xff]  ;;  %v426_v3 = vld [vmem:[%s5067_s11 + $0x18] sm:$0xff]  ;;  %v5695_v42 = vadd.f32 %v629_v26, %v5672_v45  ;;  %v644_v26 = vld [vmem:[%s5075_s6 + $0x2a8] sm:$0xff]  ;;  %3473 = vmatpush3.msra.mxu1 %v5495_v58  ;;  %3439 = vmatprep.subr.mxu0 %v7153_v13 }
  0xee   : > { %v5687_v53 = vld [vmem:[%s5060_s1 + $0x10] sm:$0xff]  ;;  %7199 = vst [vmem:[#allocation107_spill] sm:$0xff] %v5735_v9  ;;  %3474 = vmatprep.subr.mxu1 %v7153_v13  ;;  %3440 = vmatpush3.msra.mxu0 %v5507_v46  ;;  %v6078_v20 = vld [vmem:[%s5075_s6 + $0x300] sm:$0xff] }
  0xef   : > { %7193 = vst [vmem:[#allocation101_spill] sm:$0xff] %v5677_v36  ;;  %7194 = vst [vmem:[#allocation102_spill] sm:$0xff] %v5695_v42  ;;  %v5698_v36 = vadd.f32 %v645_v6, %v5681_v10  ;;  %v5714_v42 = vld [vmem:[%s5073_s17 + $0x220] sm:$0xff]  ;;  %v5751_v27 = vld [vmem:[%s5073_s17 + $0x210] sm:$0xff]  ;;  %v689_v2 = vadd.f32 %v425_v35, %v5687_v53  ;;  %3441 = vmatprep.mubr.msk.f32.mxu0 %vm4770_vm0, %v7153_v13  ;;  %3475 = vmatpush3.msra.mxu1 %v5516_v5 }
  0xf0   : > { %v627_v6 = vld [vmem:[%s5075_s6 + $0x220] sm:$0xff]  ;;  %v625_v8 = vld [vmem:[%s5075_s6 + $0x210] sm:$0xff]  ;;  %v5778_v35 = vld [vmem:[%s5073_s17 + $0x288] sm:$0xff]  ;;  %3476 = vmatprep.mubr.msk.f32.mxu1 %vm4770_vm0, %v7153_v13  ;;  %3479 = vmatprep.subr.mxu0 %v7153_v13 }
  0xf1   : > { %7195 = vst [vmem:[#allocation103_spill] sm:$0xff] %v5698_v36  ;;  %v5720_v36 = vadd.f32 %v644_v26, %v5705_v17  ;;  %v5723_v37 = vadd.f32 %v627_v6, %v5714_v42  ;;  %v626_v26 = vld [vmem:[%s5075_s6 + $0x218] sm:$0xff]  ;;  %v5755_v9 = vld [vmem:[%s5073_s17 + $0x290] sm:$0xff]  ;;  %3442 = vmatmul.mubr.f32.vlgmr.msra.gmra.mxu0 %v689_v2  ;;  %3514 = vmatprep.subr.mxu1 %v7153_v13 }
  0xf2   : > { %v642_v6 = vld [vmem:[%s5075_s6 + $0x298] sm:$0xff]  ;;  %3480 = vmatpush3.msra.mxu0 %v5525_v18  ;;  %v6044_v34 = vld [vmem:[%s5075_s6 + $0x390] sm:$0xff]  ;;  %3511 = vmatprep.mubr.msk.f32.mxu0 %vm4770_vm0, %v7153_v13 }
  0xf3   : > { %7197 = vst [vmem:[#allocation105_spill] sm:$0xff] %v5720_v36  ;;  %7198 = vst [vmem:[#allocation106_spill] sm:$0xff] %v5723_v37  ;;  %v5739_v36 = vld [vmem:[%s5073_s17 + $0x298] sm:$0xff]  ;;  %v5745_v37 = vadd.f32 %v626_v26, %v5730_v15  ;;  %v690_v26 = vadd.f32 %v426_v3, %v5691_v31  ;;  %v640_v3 = vld [vmem:[%s5075_s6 + $0x288] sm:$0xff]  ;;  %3481 = vmatprep.subr.mxu0 %v7153_v13 }
  0xf4   : > { %v5748_v50 = vadd.f32 %v642_v6, %v5739_v36  ;;  %v5762_v6 = vadd.f32 %v625_v8, %v5751_v27  ;;  %v5782_v8 = vld [vmem:[%s5073_s17 + $0x200] sm:$0xff]  ;;  %3482 = vmatpush3.msra.mxu0 %v5543_v41 }
  0xf5   : > { %7200 = vst [vmem:[#allocation108_spill] sm:$0xff] %v5745_v37  ;;  %v5766_v37 = vld [vmem:[%s5073_s17 + $0x208] sm:$0xff]  ;;  %3477 = vmatmul.mubr.f32.vlgmr.msra.gmra.mxu1 %v690_v26  ;;  %v669_v26 = vld [vmem:[%s5075_s6 + $0x370] sm:$0xff]  ;;  %3483 = vmatprep.subr.mxu0 %v7153_v13 }
  0xf6   : > { %7201 = vst [vmem:[#allocation109_spill] sm:$0xff] %v5748_v50  ;;  %7202 = vst [vmem:[#allocation110_spill] sm:$0xff] %v5762_v6  ;;  %v641_v50 = vld [vmem:[%s5075_s6 + $0x290] sm:$0xff]  ;;  %v5775_v58 = vadd.f32 %v624_v1, %v5766_v37  ;;  %v5788_v6 = vadd.f32 %v640_v3, %v5778_v35  ;;  %v5792_v1 = vld [vmem:[%s5073_s17 + $0x280] sm:$0xff]  ;;  %3515 = vmatpush3.msra.mxu1 %v5534_v0  ;;  %3484 = vmatpush3.msra.mxu0 %v5556_v14 }
  0xf7   : > { %v5772_v19 = vadd.f32 %v641_v50, %v5755_v9  ;;  %v623_v50 = vld [vmem:[%s5075_s6 + $0x200] sm:$0xff]  ;;  %v5805_v3 = vld [vmem:[%s5073_s17 + $0x378] sm:$0xff]  ;;  %3516 = vmatprep.subr.mxu1 %v7153_v13  ;;  %v5839_v0 = vld [vmem:[%s5073_s17 + $0x368] sm:$0xff]  ;;  %3485 = vmatprep.subr.mxu0 %v7153_v13 }
  0xf8   : > { %7204 = vst [vmem:[#allocation112_spill] sm:$0xff] %v5775_v58  ;;  %7205 = vst [vmem:[#allocation113_spill] sm:$0xff] %v5788_v6  ;;  %v639_v58 = vld [vmem:[%s5075_s6 + $0x280] sm:$0xff]  ;;  %v5799_v46 = vadd.f32 %v623_v50, %v5782_v8  ;;  %v670_v6 = vld [vmem:[%s5075_s6 + $0x378] sm:$0xff]  ;;  %3517 = vmatpush3.msra.mxu1 %v5547_v22  ;;  %3486 = vmatpush3.msra.mxu0 %v5572_v59 }
  0xf9   : > { %7203 = vst [vmem:[#allocation111_spill] sm:$0xff] %v5772_v19  ;;  %v5802_v19 = vadd.f32 %v639_v58, %v5792_v1  ;;  %v5811_v5 = vadd.f32 %v670_v6, %v5805_v3  ;;  %v5814_v50 = vld [vmem:[%s5073_s17 + $0x3f8] sm:$0xff]  ;;  %v685_v6 = vld [vmem:[%s5075_s6 + $0x3f0] sm:$0xff]  ;;  %3518 = vmatprep.subr.mxu1 %v7153_v13  ;;  %v5864_v22 = vld [vmem:[%s5073_s17 + $0x3e0] sm:$0xff]  ;;  %3487 = vmatprep.subr.mxu0 %v7153_v13 }
  0xfa   : > { %7206 = vst [vmem:[#allocation114_spill] sm:$0xff] %v5799_v46  ;;  %v686_v58 = vld [vmem:[%s5075_s6 + $0x3f8] sm:$0xff]  ;;  %v5827_v46 = vld [vmem:[%s5073_s17 + $0x3f0] sm:$0xff]  ;;  %3519 = vmatpush3.msra.mxu1 %v5568_v63  ;;  %v5914_v59 = vld [vmem:[%s5073_s17 + $0x3c8] sm:$0xff]  ;;  %3488 = vmatpush3.msra.mxu0 %v5593_v62 }
  0xfb   : > { %7207 = vst [vmem:[#allocation115_spill] sm:$0xff] %v5802_v19  ;;  %7208 = vst [vmem:[#allocation116_spill] sm:$0xff] %v5811_v5  ;;  %v5818_v19 = vld [vmem:[%s5073_s17 + $0x370] sm:$0xff]  ;;  %v5823_v2 = vadd.f32 %v686_v58, %v5814_v50  ;;  %v5836_v18 = vadd.f32 %v685_v6, %v5827_v46  ;;  %v668_v58 = vld [vmem:[%s5075_s6 + $0x368] sm:$0xff]  ;;  %3520 = vmatprep.subr.mxu1 %v7153_v13  ;;  %3489 = vmatprep.subr.mxu0 %v7153_v13 }
  0xfc   : > { %v5833_v5 = vadd.f32 %v669_v26, %v5818_v19  ;;  %v5848_v61 = vadd.f32 %v668_v58, %v5839_v0  ;;  %v684_v26 = vld [vmem:[%s5075_s6 + $0x3e8] sm:$0xff]  ;;  %v667_v6 = vld [vmem:[%s5075_s6 + $0x360] sm:$0xff]  ;;  %v5889_v63 = vld [vmem:[%s5073_s17 + $0x350] sm:$0xff]  ;;  %3521 = vmatpush3.msra.mxu1 %v5581_v24  ;;  %3490 = vmatpush3.msra.mxu0 %v5606_v60 }
  0xfd   : > { %7209 = vst [vmem:[#allocation117_spill] sm:$0xff] %v5823_v2  ;;  %7211 = vst [vmem:[#allocation119_spill] sm:$0xff] %v5836_v18  ;;  %v5843_v2 = vld [vmem:[%s5073_s17 + $0x3e8] sm:$0xff]  ;;  %v683_v58 = vld [vmem:[%s5075_s6 + $0x3e0] sm:$0xff]  ;;  %3522 = vmatprep.subr.mxu1 %v7153_v13  ;;  %3491 = vmatprep.subr.mxu0 %v7153_v13 }
  0xfe   : > { %7210 = vst [vmem:[#allocation118_spill] sm:$0xff] %v5833_v5  ;;  %7212 = vst [vmem:[#allocation120_spill] sm:$0xff] %v5848_v61  ;;  %v5852_v5 = vld [vmem:[%s5073_s17 + $0x360] sm:$0xff]  ;;  %v5858_v18 = vadd.f32 %v684_v26, %v5843_v2  ;;  %v5868_v61 = vld [vmem:[%s5073_s17 + $0x358] sm:$0xff]  ;;  %v5873_v57 = vadd.f32 %v683_v58, %v5864_v22  ;;  %3523 = vmatpush3.msra.mxu1 %v5597_v54  ;;  %3492 = vmatpush3.msra.mxu0 %v5622_v49 }
  0xff   : > { %v5861_v41 = vadd.f32 %v667_v6, %v5852_v5  ;;  %v666_v26 = vld [vmem:[%s5075_s6 + $0x358] sm:$0xff]  ;;  %v665_v58 = vld [vmem:[%s5075_s6 + $0x350] sm:$0xff]  ;;  %3524 = vmatprep.subr.mxu1 %v7153_v13  ;;  %3493 = vmatprep.subr.mxu0 %v7153_v13 }
 0x100   : > { %7213 = vst [vmem:[#allocation121_spill] sm:$0xff] %v5858_v18  ;;  %7215 = vst [vmem:[#allocation123_spill] sm:$0xff] %v5873_v57  ;;  %v5877_v18 = vld [vmem:[%s5073_s17 + $0x3d8] sm:$0xff]  ;;  %v5893_v57 = vld [vmem:[%s5073_s17 + $0x3d0] sm:$0xff]  ;;  %v5898_v56 = vadd.f32 %v665_v58, %v5889_v63  ;;  %3525 = vmatpush3.msra.mxu1 %v5618_v40  ;;  %3494 = vmatpush3.msra.mxu0 %v5643_v51 }
 0x101   : > { %7214 = vst [vmem:[#allocation122_spill] sm:$0xff] %v5861_v41  ;;  %v682_v6 = vld [vmem:[%s5075_s6 + $0x3d8] sm:$0xff]  ;;  %v5883_v41 = vadd.f32 %v666_v26, %v5868_v61  ;;  %v681_v26 = vld [vmem:[%s5075_s6 + $0x3d0] sm:$0xff]  ;;  %v680_v58 = vld [vmem:[%s5075_s6 + $0x3c8] sm:$0xff]  ;;  %3526 = vmatprep.subr.mxu1 %v7153_v13  ;;  %3495 = vmatprep.subr.mxu0 %v7153_v13 }
 0x102   : > { %v5886_v14 = vadd.f32 %v682_v6, %v5877_v18  ;;  %7218 = vst [vmem:[#allocation126_spill] sm:$0xff] %v5898_v56  ;;  %v664_v6 = vld [vmem:[%s5075_s6 + $0x348] sm:$0xff]  ;;  %v5918_v56 = vld [vmem:[%s5073_s17 + $0x340] sm:$0xff]  ;;  %v5923_v52 = vadd.f32 %v680_v58, %v5914_v59  ;;  %v5939_v62 = vld [vmem:[%s5073_s17 + $0x338] sm:$0xff]  ;;  %3527 = vmatpush3.msra.mxu1 %v5631_v33  ;;  %3496 = vmatpush3.msra.mxu0 %v5656_v32 }
 0x103   : > { %7216 = vst [vmem:[#allocation124_spill] sm:$0xff] %v5883_v41  ;;  %v5902_v41 = vld [vmem:[%s5073_s17 + $0x348] sm:$0xff]  ;;  %v662_v58 = vld [vmem:[%s5075_s6 + $0x338] sm:$0xff]  ;;  %v5964_v40 = vld [vmem:[%s5073_s17 + $0x3b0] sm:$0xff]  ;;  %3528 = vmatprep.subr.mxu1 %v7153_v13  ;;  %3497 = vmatprep.subr.mxu0 %v7153_v13  ;;  %v6050_v32 = vadd.f32 %v6038_v38, %v6029_v39 }
 0x104   : > { %7217 = vst [vmem:[#allocation125_spill] sm:$0xff] %v5886_v14  ;;  %v5908_v14 = vadd.f32 %v681_v26, %v5893_v57  ;;  %v5911_v24 = vadd.f32 %v664_v6, %v5902_v41  ;;  %7221 = vst [vmem:[#allocation129_spill] sm:$0xff] %v5923_v52  ;;  %v663_v26 = vld [vmem:[%s5075_s6 + $0x340] sm:$0xff]  ;;  %v5943_v52 = vld [vmem:[%s5073_s17 + $0x3b8] sm:$0xff]  ;;  %v5948_v48 = vadd.f32 %v662_v58, %v5939_v62  ;;  %3529 = vmatpush3.msra.mxu1 %v5647_v44 }
 0x105   : > { %v679_v6 = vld [vmem:[%s5075_s6 + $0x3c0] sm:$0xff]  ;;  %v677_v58 = vld [vmem:[%s5075_s6 + $0x3b0] sm:$0xff]  ;;  %3530 = vmatprep.subr.mxu1 %v7153_v13  ;;  %7234 = vst [vmem:[#allocation142_spill] sm:$0xff] %v6050_v32  ;;  %3498 = vmatpush3.msra.mxu0 %v5672_v45  ;;  %v6072_v32 = vld [vmem:[%s5075_s6 + $0x388] sm:$0xff] }
 0x106   : > { %7219 = vst [vmem:[#allocation127_spill] sm:$0xff] %v5908_v14  ;;  %7220 = vst [vmem:[#allocation128_spill] sm:$0xff] %v5911_v24  ;;  %v5927_v14 = vld [vmem:[%s5073_s17 + $0x3c0] sm:$0xff]  ;;  %v5933_v24 = vadd.f32 %v663_v26, %v5918_v56  ;;  %v678_v26 = vld [vmem:[%s5075_s6 + $0x3b8] sm:$0xff]  ;;  %v5973_v47 = vadd.f32 %v677_v58, %v5964_v40  ;;  %3531 = vmatpush3.msra.mxu1 %v5668_v55  ;;  %3499 = vmatprep.subr.mxu0 %v7153_v13 }
 0x107   : > { %v5936_v54 = vadd.f32 %v679_v6, %v5927_v14  ;;  %7224 = vst [vmem:[#allocation132_spill] sm:$0xff] %v5948_v48  ;;  %v661_v6 = vld [vmem:[%s5075_s6 + $0x330] sm:$0xff]  ;;  %v5968_v48 = vld [vmem:[%s5073_s17 + $0x328] sm:$0xff]  ;;  %v5989_v33 = vld [vmem:[%s5073_s17 + $0x320] sm:$0xff]  ;;  %3532 = vmatprep.subr.mxu1 %v7153_v13  ;;  %v6084_v45 = vadd.f32 %v6072_v32, %v6063_v29  ;;  %3500 = vmatpush3.msra.mxu0 %v5701_v28 }
 0x108   : > { %7222 = vst [vmem:[#allocation130_spill] sm:$0xff] %v5933_v24  ;;  %v5952_v24 = vld [vmem:[%s5073_s17 + $0x330] sm:$0xff]  ;;  %7227 = vst [vmem:[#allocation135_spill] sm:$0xff] %v5973_v47  ;;  %v5992_v58 = vld [vmem:[%s5075_s6 + $0x320] sm:$0xff]  ;;  %3533 = vmatpush3.msra.mxu1 %v5681_v10  ;;  %v6088_v10 = vadd.f32 %v6078_v20, %v6075_v21  ;;  %3501 = vmatprep.subr.mxu0 %v7153_v13 }
 0x109   : > { %7223 = vst [vmem:[#allocation131_spill] sm:$0xff] %v5936_v54  ;;  %v5958_v54 = vadd.f32 %v678_v26, %v5943_v52  ;;  %v5961_v60 = vadd.f32 %v661_v6, %v5952_v24  ;;  %v660_v26 = vld [vmem:[%s5075_s6 + $0x328] sm:$0xff]  ;;  %v5995_v47 = vld [vmem:[%s5073_s17 + $0x3a0] sm:$0xff]  ;;  %3534 = vmatprep.subr.mxu1 %v7153_v13  ;;  %3502 = vmatpush3.msra.mxu0 %v5714_v42 }
 0x10a   : > { %v676_v6 = vld [vmem:[%s5075_s6 + $0x3a8] sm:$0xff]  ;;  %3535 = vmatpush3.msra.mxu1 %v5705_v17  ;;  %3503 = vmatprep.subr.mxu0 %v7153_v13  ;;  %v6111_v17 = vld [vmem:[%s5060_s1 + $0x20] sm:$0xff] }
 0x10b   : > { %7225 = vst [vmem:[#allocation133_spill] sm:$0xff] %v5958_v54  ;;  %7226 = vst [vmem:[#allocation134_spill] sm:$0xff] %v5961_v60  ;;  %v5977_v54 = vld [vmem:[%s5073_s17 + $0x3a8] sm:$0xff]  ;;  %v5983_v60 = vadd.f32 %v660_v26, %v5968_v48  ;;  %v6001_v26 = vadd.f32 %v5992_v58, %v5989_v33  ;;  %3536 = vmatprep.subr.mxu1 %v7153_v13  ;;  %3504 = vmatpush3.msra.mxu0 %v5730_v15  ;;  %v427_v28 = vld [vmem:[%s5067_s11 + $0x20] sm:$0xff] }
 0x10c   : > { %v5986_v49 = vadd.f32 %v676_v6, %v5977_v54  ;;  %v6004_v6 = vld [vmem:[%s5075_s6 + $0x3a0] sm:$0xff]  ;;  %3537 = vmatpush3.msra.mxu1 %v5726_v23  ;;  %3505 = vmatprep.subr.mxu0 %v7153_v13  ;;  %v428_v42 = vld [vmem:[%s5067_s11 + $0x28] sm:$0xff]  ;;  %v691_v15 = vadd.f32 %v427_v28, %v6111_v17  ;;  %v4277_v23 = vld [vmem:[%s5075_s6 + $0x78] sm:$0xff] }
 0x10d   : > { %7228 = vst [vmem:[#allocation136_spill] sm:$0xff] %v5983_v60  ;;  %7230 = vst [vmem:[#allocation138_spill] sm:$0xff] %v6001_v26  ;;  %v6010_v60 = vld [vmem:[%s5075_s6 + $0x318] sm:$0xff]  ;;  %v6016_v44 = vadd.f32 %v6004_v6, %v5995_v47  ;;  %3538 = vmatprep.subr.mxu1 %v7153_v13  ;;  %3506 = vmatpush3.msra.mxu0 %v5751_v27 }
 0x10e   : > { %7229 = vst [vmem:[#allocation137_spill] sm:$0xff] %v5986_v49  ;;  %v6007_v49 = vld [vmem:[%s5073_s17 + $0x318] sm:$0xff]  ;;  %3539 = vmatpush3.msra.mxu1 %v5739_v36  ;;  %3507 = vmatprep.subr.mxu0 %v7153_v13 }
 0x10f   : > { %7231 = vst [vmem:[#allocation139_spill] sm:$0xff] %v6016_v44  ;;  %v6020_v51 = vadd.f32 %v6010_v60, %v6007_v49  ;;  %v6023_v26 = vld [vmem:[%s5073_s17 + $0x398] sm:$0xff]  ;;  %3540 = vmatprep.subr.mxu1 %v7153_v13  ;;  %3508 = vmatpush3.msra.mxu0 %v5766_v37 }
 0x110   : > { %v6035_v44 = vadd.f32 %v6026_v43, %v6023_v26  ;;  %3541 = vmatpush3.msra.mxu1 %v5755_v9  ;;  %3509 = vmatprep.subr.mxu0 %v7153_v13  ;;  %v4276_v37 = vld [vmem:[%s5073_s17 + $0x78] sm:$0xff] }
 0x111   : > { %7232 = vst [vmem:[#allocation140_spill] sm:$0xff] %v6020_v51  ;;  %v6041_v51 = vld [vmem:[%s5073_s17 + $0x390] sm:$0xff]  ;;  %3542 = vmatprep.subr.mxu1 %v7153_v13  ;;  %3510 = vmatpush3.msra.mxu0 %v5782_v8  ;;  %v1270_v27 = vsub.f32 %v4277_v23, %v4276_v37  ;;  %v4292_v28 = vld [vmem:[%s5073_s17 + $0x58] sm:$0xff] }
 0x112   : > { %7233 = vst [vmem:[#allocation141_spill] sm:$0xff] %v6035_v44  ;;  %v6054_v55 = vadd.f32 %v6044_v34, %v6041_v51  ;;  %v6057_v44 = vld [vmem:[%s5073_s17 + $0x308] sm:$0xff]  ;;  %3543 = vmatpush3.msra.mxu1 %v5778_v35  ;;  %3546 = vmatprep.mubr.msk.f32.mxu1 %vm4770_vm0, %v7153_v13  ;;  %v4279_v35 = vld [vmem:[%s5075_s6 + $0xf8] sm:$0xff]  ;;  %v4298_v23 = vld [vmem:[%s5073_s17 + $0xd0] sm:$0xff] }
 0x113   : > { %v6069_v25 = vadd.f32 %v6060_v30, %v6057_v44  ;;  %3544 = vmatprep.subr.mxu1 %v7153_v13  ;;  %3512 = vmatmul.mubr.f32.vlgmr.msra.gmra.mxu0 %v691_v15 }
 0x114   : > { %7235 = vst [vmem:[#allocation143_spill] sm:$0xff] %v6054_v55  ;;  %v6094_v55 = vld [vmem:[%s5075_s6 + $0x380] sm:$0xff]  ;;  %3545 = vmatpush3.msra.mxu1 %v5792_v1  ;;  %3549 = vmatprep.subr.mxu0 %v7153_v13  ;;  %v4280_v1 = vld [vmem:[%s5073_s17 + $0x70] sm:$0xff] }
 0x115   : > { %7236 = vst [vmem:[#allocation144_spill] sm:$0xff] %v6069_v25  ;;  %v6091_v25 = vld [vmem:[%s5073_s17 + $0x380] sm:$0xff]  ;;  %3584 = vmatprep.subr.mxu1 %v7153_v13  ;;  %3550 = vmatpush3.msra.mxu0 %v5805_v3 }
 0x116   : > { %v6100_v16 = vadd.f32 %v6094_v55, %v6091_v25  ;;  %3551 = vmatprep.subr.mxu0 %v7153_v13  ;;  %3581 = vmatprep.mubr.msk.f32.mxu0 %vm4770_vm0, %v7153_v13 }
 0x117   : > { %3552 = vmatpush3.msra.mxu0 %v5818_v19  ;;  %v4278_v19 = vld [vmem:[%s5073_s17 + $0xf8] sm:$0xff] }
 0x118   : > { %7237 = vst [vmem:[#allocation145_spill] sm:$0xff] %v6100_v16  ;;  %v6117_v16 = vld [vmem:[%s5060_s1 + $0x28] sm:$0xff]  ;;  %3553 = vmatprep.subr.mxu0 %v7153_v13  ;;  %v1286_v8 = vsub.f32 %v4279_v35, %v4278_v19 }
 0x119   : > { %v692_v36 = vadd.f32 %v428_v42, %v6117_v16  ;;  %3554 = vmatpush3.msra.mxu0 %v5839_v0  ;;  %v4285_v0 = vld [vmem:[%s5075_s6 + $0x68] sm:$0xff]  ;;  %v4293_v42 = vld [vmem:[%s5075_s6 + $0x58] sm:$0xff] }
 0x11a   : > { %3555 = vmatprep.subr.mxu0 %v7153_v13  ;;  %v1266_v15 = vsub.f32 %v4293_v42, %v4292_v28  ;;  %v4300_v35 = vld [vmem:[%s5073_s17 + $0x48] sm:$0xff]  ;;  %v4314_v42 = vld [vmem:[%s5073_s17 + $0xb0] sm:$0xff] }
 0x11b   : > { %3547 = vmatmul.mubr.f32.vlgmr.msra.gmra.mxu1 %v692_v36  ;;  %3556 = vmatpush3.msra.mxu0 %v5852_v5  ;;  %v4282_v5 = vld [vmem:[%s5073_s17 + $0xf0] sm:$0xff]  ;;  %v4294_v36 = vld [vmem:[%s5073_s17 + $0xd8] sm:$0xff] }
 0x11c   : > { %3585 = vmatpush3.msra.mxu1 %v5814_v50  ;;  %3557 = vmatprep.subr.mxu0 %v7153_v13  ;;  %v4283_v50 = vld [vmem:[%s5075_s6 + $0xf0] sm:$0xff] }
 0x11d   : > { %3586 = vmatprep.subr.mxu1 %v7153_v13  ;;  %3558 = vmatpush3.msra.mxu0 %v5868_v61 }
 0x11e   : > { %3587 = vmatpush3.msra.mxu1 %v5827_v46  ;;  %3559 = vmatprep.subr.mxu0 %v7153_v13  ;;  %v4281_v46 = vld [vmem:[%s5075_s6 + $0x70] sm:$0xff] }
 0x11f   : > { %3588 = vmatprep.subr.mxu1 %v7153_v13  ;;  %3560 = vmatpush3.msra.mxu0 %v5889_v63  ;;  %v1269_v3 = vsub.f32 %v4281_v46, %v4280_v1  ;;  %v4302_v46 = vld [vmem:[%s5073_s17 + $0xc8] sm:$0xff] }
 0x120   : > { %3589 = vmatpush3.msra.mxu1 %v5843_v2  ;;  %3561 = vmatprep.subr.mxu0 %v7153_v13  ;;  %v1285_v2 = vsub.f32 %v4283_v50, %v4282_v5  ;;  %v4304_v50 = vld [vmem:[%s5073_s17 + $0x40] sm:$0xff] }
 0x121   : > { %3590 = vmatprep.subr.mxu1 %v7153_v13  ;;  %3562 = vmatpush3.msra.mxu0 %v5902_v41 }
 0x122   : > { %3591 = vmatpush3.msra.mxu1 %v5864_v22  ;;  %3563 = vmatprep.subr.mxu0 %v7153_v13  ;;  %v4286_v22 = vld [vmem:[%s5073_s17 + $0xe8] sm:$0xff] }
 0x123   : > { %3592 = vmatprep.subr.mxu1 %v7153_v13  ;;  %3564 = vmatpush3.msra.mxu0 %v5918_v56  ;;  %v6195_v56 = vld [vmem:[%s5060_s1 + $0x38] sm:$0xff] }
 0x124   : > { %3593 = vmatpush3.msra.mxu1 %v5877_v18  ;;  %3565 = vmatprep.subr.mxu0 %v7153_v13  ;;  %v4284_v18 = vld [vmem:[%s5073_s17 + $0x68] sm:$0xff] }
 0x125   : > { %3594 = vmatprep.subr.mxu1 %v7153_v13  ;;  %3566 = vmatpush3.msra.mxu0 %v5939_v62  ;;  %v1268_v41 = vsub.f32 %v4285_v0, %v4284_v18  ;;  %v4290_v62 = vld [vmem:[%s5073_s17 + $0xe0] sm:$0xff] }
 0x126   : > { %3595 = vmatpush3.msra.mxu1 %v5893_v57  ;;  %3567 = vmatprep.subr.mxu0 %v7153_v13  ;;  %v430_v57 = vld [vmem:[%s5067_s11 + $0x38] sm:$0xff]  ;;  %v4306_v0 = vld [vmem:[%s5073_s17 + $0xc0] sm:$0xff] }
 0x127   : > { %3596 = vmatprep.subr.mxu1 %v7153_v13  ;;  %3568 = vmatpush3.msra.mxu0 %v5952_v24  ;;  %v694_v9 = vadd.f32 %v430_v57, %v6195_v56  ;;  %v4288_v24 = vld [vmem:[%s5073_s17 + $0x60] sm:$0xff] }
 0x128   : > { %3597 = vmatpush3.msra.mxu1 %v5914_v59  ;;  %3569 = vmatprep.subr.mxu0 %v7153_v13  ;;  %v4289_v59 = vld [vmem:[%s5075_s6 + $0x60] sm:$0xff] }
 0x129   : > { %3598 = vmatprep.subr.mxu1 %v7153_v13  ;;  %3570 = vmatpush3.msra.mxu0 %v5968_v48  ;;  %v429_v48 = vld [vmem:[%s5067_s11 + $0x30] sm:$0xff] }
 0x12a   : > { %3599 = vmatpush3.msra.mxu1 %v5927_v14  ;;  %3571 = vmatprep.subr.mxu0 %v7153_v13  ;;  %v4287_v14 = vld [vmem:[%s5075_s6 + $0xe8] sm:$0xff] }
 0x12b   : > { %3600 = vmatprep.subr.mxu1 %v7153_v13  ;;  %3572 = vmatpush3.msra.mxu0 %v5989_v33  ;;  %v1284_v63 = vsub.f32 %v4287_v14, %v4286_v22  ;;  %v4308_v14 = vld [vmem:[%s5073_s17 + $0x38] sm:$0xff] }
 0x12c   : > { %3601 = vmatpush3.msra.mxu1 %v5943_v52  ;;  %3573 = vmatprep.subr.mxu0 %v7153_v13  ;;  %v6189_v52 = vld [vmem:[%s5060_s1 + $0x30] sm:$0xff] }
 0x12d   : > { %3602 = vmatprep.subr.mxu1 %v7153_v13  ;;  %3574 = vmatpush3.msra.mxu0 %v6007_v49  ;;  %v693_v61 = vadd.f32 %v429_v48, %v6189_v52  ;;  %v4295_v48 = vld [vmem:[%s5075_s6 + $0xd8] sm:$0xff] }
 0x12e   : > { %3603 = vmatpush3.msra.mxu1 %v5964_v40  ;;  %3575 = vmatprep.subr.mxu0 %v7153_v13  ;;  %v4291_v40 = vld [vmem:[%s5075_s6 + $0xe0] sm:$0xff]  ;;  %v1282_v57 = vsub.f32 %v4295_v48, %v4294_v36  ;;  %v4316_v48 = vld [vmem:[%s5073_s17 + $0x28] sm:$0xff] }
 0x12f   : > { %3604 = vmatprep.subr.mxu1 %v7153_v13  ;;  %3576 = vmatpush3.msra.mxu0 %v6029_v39  ;;  %v1283_v33 = vsub.f32 %v4291_v40, %v4290_v62  ;;  %v4312_v40 = vld [vmem:[%s5073_s17 + $0x30] sm:$0xff] }
 0x130   : > { %3605 = vmatpush3.msra.mxu1 %v5977_v54  ;;  %3577 = vmatprep.subr.mxu0 %v7153_v13  ;;  %v1267_v54 = vsub.f32 %v4289_v59, %v4288_v24  ;;  %v4310_v59 = vld [vmem:[%s5073_s17 + $0xb8] sm:$0xff] }
 0x131   : > { %3606 = vmatprep.subr.mxu1 %v7153_v13  ;;  %3578 = vmatpush3.msra.mxu0 %v6057_v44 }
 0x132   : > { %3607 = vmatpush3.msra.mxu1 %v5995_v47  ;;  %3579 = vmatprep.subr.mxu0 %v7153_v13 }
 0x133   : > { %3608 = vmatprep.subr.mxu1 %v7153_v13  ;;  %3580 = vmatpush3.msra.mxu0 %v6075_v21 }
 0x134   : > { %3609 = vmatpush3.msra.mxu1 %v6023_v26  ;;  %3616 = vmatprep.mubr.msk.f32.mxu1 %vm4770_vm0, %v7153_v13 }
 0x135   : > { %3610 = vmatprep.subr.mxu1 %v7153_v13  ;;  %3582 = vmatmul.mubr.f32.vlgmr.msra.gmra.mxu0 %v693_v61  ;;  %v4296_v61 = vld [vmem:[%s5073_s17 + $0x50] sm:$0xff] }
 0x136   : > { %3611 = vmatpush3.msra.mxu1 %v6041_v51  ;;  %3619 = vmatprep.subr.mxu0 %v7153_v13 }
 0x137   : > { %3612 = vmatprep.subr.mxu1 %v7153_v13  ;;  %3620 = vmatpush3.msra.mxu0 %v1270_v27  ;;  %v4299_v27 = vld [vmem:[%s5075_s6 + $0xd0] sm:$0xff] }
 0x138   : > { %3613 = vmatpush3.msra.mxu1 %v6063_v29  ;;  %3621 = vmatprep.subr.mxu0 %v7153_v13  ;;  %v1281_v19 = vsub.f32 %v4299_v27, %v4298_v23  ;;  %v4320_v27 = vld [vmem:[%s5073_s17 + $0x20] sm:$0xff] }
 0x139   : > { %3614 = vmatprep.subr.mxu1 %v7153_v13  ;;  %3622 = vmatpush3.msra.mxu0 %v1269_v3  ;;  %v4303_v3 = vld [vmem:[%s5075_s6 + $0xc8] sm:$0xff] }
 0x13a   : > { %3615 = vmatpush3.msra.mxu1 %v6091_v25  ;;  %3623 = vmatprep.subr.mxu0 %v7153_v13  ;;  %v1280_v5 = vsub.f32 %v4303_v3, %v4302_v46  ;;  %v4324_v3 = vld [vmem:[%s5073_s17 + $0x18] sm:$0xff] }
 0x13b   : > { %3617 = vmatmul.mubr.f32.vlgmr.msra.gmra.mxu1 %v694_v9  ;;  %3654 = vmatprep.subr.mxu1 %v7153_v13  ;;  %v4297_v9 = vld [vmem:[%s5075_s6 + $0x50] sm:$0xff] }
 0x13c   : > { %3655 = vmatpush3.msra.mxu1 %v1286_v8  ;;  %3624 = vmatpush3.msra.mxu0 %v1268_v41  ;;  %v1265_v37 = vsub.f32 %v4297_v9, %v4296_v61  ;;  %v4301_v8 = vld [vmem:[%s5075_s6 + $0x48] sm:$0xff]  ;;  %v4307_v41 = vld [vmem:[%s5075_s6 + $0xc0] sm:$0xff] }
 0x13d   : > { %3656 = vmatprep.subr.mxu1 %v7153_v13  ;;  %3625 = vmatprep.subr.mxu0 %v7153_v13  ;;  %v1264_v1 = vsub.f32 %v4301_v8, %v4300_v35  ;;  %v1279_v22 = vsub.f32 %v4307_v41, %v4306_v0  ;;  %v4318_v9 = vld [vmem:[%s5073_s17 + $0xa8] sm:$0xff]  ;;  %v4322_v8 = vld [vmem:[%s5073_s17 + $0xa0] sm:$0xff]  ;;  %v4328_v41 = vld [vmem:[%s5073_s17 + $0x10] sm:$0xff] }
 0x13e   : > { %3657 = vmatpush3.msra.mxu1 %v1285_v2  ;;  %3626 = vmatpush3.msra.mxu0 %v1267_v54  ;;  %v4305_v2 = vld [vmem:[%s5075_s6 + $0x40] sm:$0xff]  ;;  %v4311_v54 = vld [vmem:[%s5075_s6 + $0xb8] sm:$0xff] }
 0x13f   : > { %3658 = vmatprep.subr.mxu1 %v7153_v13  ;;  %3627 = vmatprep.subr.mxu0 %v7153_v13  ;;  %v1263_v18 = vsub.f32 %v4305_v2, %v4304_v50  ;;  %v1278_v62 = vsub.f32 %v4311_v54, %v4310_v59  ;;  %v4326_v2 = vld [vmem:[%s5073_s17 + $0x98] sm:$0xff]  ;;  %v4332_v54 = vld [vmem:[%s5073_s17 + $0x8] sm:$0xff] }
 0x140   : > { %3659 = vmatpush3.msra.mxu1 %v1284_v63  ;;  %3628 = vmatpush3.msra.mxu0 %v1266_v15  ;;  %v4309_v63 = vld [vmem:[%s5075_s6 + $0x38] sm:$0xff]  ;;  %v4315_v15 = vld [vmem:[%s5075_s6 + $0xb0] sm:$0xff] }
 0x141   : > { %3660 = vmatprep.subr.mxu1 %v7153_v13  ;;  %3629 = vmatprep.subr.mxu0 %v7153_v13  ;;  %v1262_v24 = vsub.f32 %v4309_v63, %v4308_v14  ;;  %v1277_v36 = vsub.f32 %v4315_v15, %v4314_v42  ;;  %v4330_v63 = vld [vmem:[%s5073_s17 + $0x90] sm:$0xff]  ;;  %v4336_v15 = vld [vmem:[%s5073_s17] sm:$0xff] }
 0x142   : > { %3661 = vmatpush3.msra.mxu1 %v1283_v33  ;;  %3630 = vmatpush3.msra.mxu0 %v1265_v37  ;;  %v4313_v33 = vld [vmem:[%s5075_s6 + $0x30] sm:$0xff]  ;;  %v4319_v37 = vld [vmem:[%s5075_s6 + $0xa8] sm:$0xff] }
 0x143   : > { %3662 = vmatprep.subr.mxu1 %v7153_v13  ;;  %3631 = vmatprep.subr.mxu0 %v7153_v13  ;;  %v1261_v28 = vsub.f32 %v4313_v33, %v4312_v40  ;;  %v1276_v23 = vsub.f32 %v4319_v37, %v4318_v9  ;;  %v4334_v33 = vld [vmem:[%s5073_s17 + $0x88] sm:$0xff]  ;;  %v4340_v37 = vld [vmem:[%s5073_s17 + $0x178] sm:$0xff] }
 0x144   : > { %3663 = vmatpush3.msra.mxu1 %v1282_v57  ;;  %3632 = vmatpush3.msra.mxu0 %v1264_v1  ;;  %v4317_v57 = vld [vmem:[%s5075_s6 + $0x28] sm:$0xff]  ;;  %v4323_v1 = vld [vmem:[%s5075_s6 + $0xa0] sm:$0xff] }
 0x145   : > { %3664 = vmatprep.subr.mxu1 %v7153_v13  ;;  %3633 = vmatprep.subr.mxu0 %v7153_v13  ;;  %v1260_v61 = vsub.f32 %v4317_v57, %v4316_v48  ;;  %v1275_v46 = vsub.f32 %v4323_v1, %v4322_v8  ;;  %v4338_v57 = vld [vmem:[%s5073_s17 + $0x80] sm:$0xff]  ;;  %v4344_v1 = vld [vmem:[%s5073_s17 + $0x170] sm:$0xff] }
 0x146   : > { %3665 = vmatpush3.msra.mxu1 %v1281_v19  ;;  %3634 = vmatpush3.msra.mxu0 %v1263_v18  ;;  %v4321_v19 = vld [vmem:[%s5075_s6 + $0x20] sm:$0xff]  ;;  %v4327_v18 = vld [vmem:[%s5075_s6 + $0x98] sm:$0xff] }
 0x147   : > { %3666 = vmatprep.subr.mxu1 %v7153_v13  ;;  %3635 = vmatprep.subr.mxu0 %v7153_v13  ;;  %v1259_v35 = vsub.f32 %v4321_v19, %v4320_v27  ;;  %v1274_v0 = vsub.f32 %v4327_v18, %v4326_v2  ;;  %v4342_v19 = vld [vmem:[%s5073_s17 + $0x1f8] sm:$0xff]  ;;  %v4348_v18 = vld [vmem:[%s5060_s1] sm:$0xff] }
 0x148   : > { %3667 = vmatpush3.msra.mxu1 %v1280_v5  ;;  %3636 = vmatpush3.msra.mxu0 %v1262_v24  ;;  %v4325_v5 = vld [vmem:[%s5075_s6 + $0x18] sm:$0xff]  ;;  %v4331_v24 = vld [vmem:[%s5075_s6 + $0x90] sm:$0xff] }
 0x149   : > { %3668 = vmatprep.subr.mxu1 %v7153_v13  ;;  %3637 = vmatprep.subr.mxu0 %v7153_v13  ;;  %v1258_v50 = vsub.f32 %v4325_v5, %v4324_v3  ;;  %v1273_v59 = vsub.f32 %v4331_v24, %v4330_v63  ;;  %v4346_v5 = vld [vmem:[%s5073_s17 + $0x1f0] sm:$0xff]  ;;  %v4352_v63 = vld [vmem:[%s5073_s17 + $0x1e8] sm:$0xff] }
 0x14a   : > { %3669 = vmatpush3.msra.mxu1 %v1279_v22  ;;  %3638 = vmatpush3.msra.mxu0 %v1261_v28  ;;  %v4329_v22 = vld [vmem:[%s5075_s6 + $0x10] sm:$0xff]  ;;  %v4335_v28 = vld [vmem:[%s5075_s6 + $0x88] sm:$0xff] }
 0x14b   : > { %3670 = vmatprep.subr.mxu1 %v7153_v13  ;;  %3639 = vmatprep.subr.mxu0 %v7153_v13  ;;  %v1257_v14 = vsub.f32 %v4329_v22, %v4328_v41  ;;  %v1272_v42 = vsub.f32 %v4335_v28, %v4334_v33  ;;  %v4350_v41 = vld [vmem:[%s5073_s17 + $0x168] sm:$0xff]  ;;  %v4356_v33 = vld [vmem:[%s5073_s17 + $0x1e0] sm:$0xff] }
 0x14c   : > { %3671 = vmatpush3.msra.mxu1 %v1278_v62  ;;  %3640 = vmatpush3.msra.mxu0 %v1260_v61  ;;  %v4333_v62 = vld [vmem:[%s5075_s6 + $0x8] sm:$0xff]  ;;  %v4339_v61 = vld [vmem:[%s5075_s6 + $0x80] sm:$0xff] }
 0x14d   : > { %3672 = vmatprep.subr.mxu1 %v7153_v13  ;;  %3641 = vmatprep.subr.mxu0 %v7153_v13  ;;  %v1256_v40 = vsub.f32 %v4333_v62, %v4332_v54  ;;  %v1271_v9 = vsub.f32 %v4339_v61, %v4338_v57  ;;  %v4351_v22 = vld [vmem:[%s5075_s6 + $0x168] sm:$0xff]  ;;  %v4354_v54 = vld [vmem:[%s5073_s17 + $0x160] sm:$0xff]  ;;  %v4360_v57 = vld [vmem:[%s5073_s17 + $0x1d8] sm:$0xff] }
 0x14e   : > { %3673 = vmatpush3.msra.mxu1 %v1277_v36  ;;  %3642 = vmatpush3.msra.mxu0 %v1259_v35  ;;  %v4337_v36 = vld [vmem:[%s5075_s6] sm:$0xff]  ;;  %v4343_v35 = vld [vmem:[%s5075_s6 + $0x1f8] sm:$0xff]  ;;  %v4353_v24 = vld [vmem:[%s5075_s6 + $0x1e8] sm:$0xff] }
 0x14f   : > { %3674 = vmatprep.subr.mxu1 %v7153_v13  ;;  %3643 = vmatprep.subr.mxu0 %v7153_v13  ;;  %v1255_v48 = vsub.f32 %v4337_v36, %v4336_v15  ;;  %v1318_v8 = vsub.f32 %v4343_v35, %v4342_v19  ;;  %v4355_v62 = vld [vmem:[%s5075_s6 + $0x160] sm:$0xff]  ;;  %v4358_v15 = vld [vmem:[%s5073_s17 + $0x158] sm:$0xff]  ;;  %v4364_v19 = vld [vmem:[%s5073_s17 + $0x1d0] sm:$0xff] }
 0x150   : > { %3675 = vmatpush3.msra.mxu1 %v1276_v23  ;;  %3644 = vmatpush3.msra.mxu0 %v1258_v50  ;;  %v4341_v23 = vld [vmem:[%s5075_s6 + $0x178] sm:$0xff]  ;;  %v4347_v50 = vld [vmem:[%s5075_s6 + $0x1f0] sm:$0xff]  ;;  %v4357_v28 = vld [vmem:[%s5075_s6 + $0x1e0] sm:$0xff] }
 0x151   : > { %3676 = vmatprep.subr.mxu1 %v7153_v13  ;;  %3645 = vmatprep.subr.mxu0 %v7153_v13  ;;  %v1302_v27 = vsub.f32 %v4341_v23, %v4340_v37  ;;  %v1317_v2 = vsub.f32 %v4347_v50, %v4346_v5  ;;  %v4359_v36 = vld [vmem:[%s5075_s6 + $0x158] sm:$0xff]  ;;  %v4362_v37 = vld [vmem:[%s5073_s17 + $0x150] sm:$0xff]  ;;  %v4368_v5 = vld [vmem:[%s5073_s17 + $0x1c8] sm:$0xff] }
 0x152   : > { %3677 = vmatpush3.msra.mxu1 %v1275_v46  ;;  %3646 = vmatpush3.msra.mxu0 %v1257_v14  ;;  %v4345_v46 = vld [vmem:[%s5075_s6 + $0x170] sm:$0xff]  ;;  %v1300_v14 = vsub.f32 %v4351_v22, %v4350_v41  ;;  %v4361_v61 = vld [vmem:[%s5075_s6 + $0x1d8] sm:$0xff]  ;;  %v4369_v50 = vld [vmem:[%s5075_s6 + $0x1c8] sm:$0xff] }
 0x153   : > { %3678 = vmatprep.subr.mxu1 %v7153_v13  ;;  %3647 = vmatprep.subr.mxu0 %v7153_v13  ;;  %v1301_v3 = vsub.f32 %v4345_v46, %v4344_v1  ;;  %v4363_v23 = vld [vmem:[%s5075_s6 + $0x150] sm:$0xff]  ;;  %v4366_v1 = vld [vmem:[%s5073_s17 + $0x148] sm:$0xff]  ;;  %v4372_v22 = vld [vmem:[%s5073_s17 + $0x1c0] sm:$0xff] }
 0x154   : > { %3679 = vmatpush3.msra.mxu1 %v1274_v0  ;;  %3648 = vmatpush3.msra.mxu0 %v1256_v40  ;;  %v4349_v0 = vld [vmem:[%s5060_s1 + $0x8] sm:$0xff]  ;;  %v1299_v40 = vsub.f32 %v4355_v62, %v4354_v54  ;;  %v4365_v35 = vld [vmem:[%s5075_s6 + $0x1d0] sm:$0xff]  ;;  %v4376_v62 = vld [vmem:[%s5073_s17 + $0x1b8] sm:$0xff] }
 0x155   : > { %3680 = vmatprep.subr.mxu1 %v7153_v13  ;;  %3649 = vmatprep.subr.mxu0 %v7153_v13  ;;  %v4367_v46 = vld [vmem:[%s5075_s6 + $0x148] sm:$0xff] }
 0x156   : > { %3681 = vmatpush3.msra.mxu1 %v1273_v59  ;;  %3650 = vmatpush3.msra.mxu0 %v1255_v48  ;;  %v1316_v59 = vsub.f32 %v4353_v24, %v4352_v63  ;;  %v1298_v48 = vsub.f32 %v4359_v36, %v4358_v15  ;;  %v4374_v24 = vld [vmem:[%s5073_s17 + $0x138] sm:$0xff]  ;;  %v4380_v36 = vld [vmem:[%s5073_s17 + $0x1b0] sm:$0xff] }
 0x157   : > { %3682 = vmatprep.subr.mxu1 %v7153_v13  ;;  %3651 = vmatprep.mubr.msk.f32.mxu0 %vm4770_vm0, %v7153_v13 }
 0x158   : > { %3683 = vmatpush3.msra.mxu1 %v1272_v42  ;;  %3686 = vmatprep.mubr.msk.f32.mxu1 %vm4770_vm0, %v7153_v13  ;;  %v1315_v42 = vsub.f32 %v4357_v28, %v4356_v33  ;;  %v4378_v28 = vld [vmem:[%s5073_s17 + $0x130] sm:$0xff] }
 0x159   : > { %3684 = vmatprep.subr.mxu1 %v7153_v13  ;;  %3652 = vmatmul.mubr.f32.vlgmr.msra.gmra.mxu0 %v4348_v18  ;;  %v4370_v18 = vld [vmem:[%s5073_s17 + $0x140] sm:$0xff] }
 0x15a   : > { %3685 = vmatpush3.msra.mxu1 %v1271_v9  ;;  %3689 = vmatprep.subr.mxu0 %v7153_v13  ;;  %v1314_v9 = vsub.f32 %v4361_v61, %v4360_v57  ;;  %v4382_v61 = vld [vmem:[%s5073_s17 + $0x128] sm:$0xff] }
 0x15b   : > { %3687 = vmatmul.mubr.f32.vlgmr.msra.gmra.mxu1 %v4349_v0  ;;  %3724 = vmatprep.subr.mxu1 %v7153_v13  ;;  %v4371_v0 = vld [vmem:[%s5075_s6 + $0x140] sm:$0xff] }
 0x15c   : > { %3690 = vmatpush3.msra.mxu0 %v1302_v27  ;;  %3725 = vmatpush3.msra.mxu1 %v1318_v8  ;;  %v1297_v27 = vsub.f32 %v4363_v23, %v4362_v37  ;;  %v1313_v8 = vsub.f32 %v4365_v35, %v4364_v19  ;;  %v1295_v41 = vsub.f32 %v4371_v0, %v4370_v18  ;;  %v4384_v23 = vld [vmem:[%s5073_s17 + $0x1a8] sm:$0xff]  ;;  %v4386_v35 = vld [vmem:[%s5073_s17 + $0x120] sm:$0xff]  ;;  %v4392_v0 = vld [vmem:[%s5073_s17 + $0x198] sm:$0xff] }
 0x15d   : > { %3691 = vmatprep.subr.mxu0 %v7153_v13  ;;  %3726 = vmatprep.subr.mxu1 %v7153_v13 }
 0x15e   : > { %3692 = vmatpush3.msra.mxu0 %v1301_v3  ;;  %3727 = vmatpush3.msra.mxu1 %v1317_v2  ;;  %v1296_v3 = vsub.f32 %v4367_v46, %v4366_v1  ;;  %v1312_v2 = vsub.f32 %v4369_v50, %v4368_v5  ;;  %v4388_v46 = vld [vmem:[%s5073_s17 + $0x1a0] sm:$0xff]  ;;  %v4390_v50 = vld [vmem:[%s5073_s17 + $0x118] sm:$0xff] }
 0x15f   : > { %3693 = vmatprep.subr.mxu0 %v7153_v13  ;;  %3728 = vmatprep.subr.mxu1 %v7153_v13 }
 0x160   : > { %3694 = vmatpush3.msra.mxu0 %v1300_v14  ;;  %3729 = vmatpush3.msra.mxu1 %v1316_v59  ;;  %v4373_v14 = vld [vmem:[%s5075_s6 + $0x1c0] sm:$0xff]  ;;  %v4375_v59 = vld [vmem:[%s5075_s6 + $0x138] sm:$0xff] }
 0x161   : > { %3695 = vmatprep.subr.mxu0 %v7153_v13  ;;  %3730 = vmatprep.subr.mxu1 %v7153_v13  ;;  %v1311_v63 = vsub.f32 %v4373_v14, %v4372_v22  ;;  %v1294_v54 = vsub.f32 %v4375_v59, %v4374_v24  ;;  %v4394_v14 = vld [vmem:[%s5073_s17 + $0x110] sm:$0xff] }
 0x162   : > { %3696 = vmatpush3.msra.mxu0 %v1299_v40  ;;  %3731 = vmatpush3.msra.mxu1 %v1315_v42  ;;  %v4377_v40 = vld [vmem:[%s5075_s6 + $0x1b8] sm:$0xff]  ;;  %v4379_v42 = vld [vmem:[%s5075_s6 + $0x130] sm:$0xff] }
 0x163   : > { %3697 = vmatprep.subr.mxu0 %v7153_v13  ;;  %3732 = vmatprep.subr.mxu1 %v7153_v13  ;;  %v1310_v33 = vsub.f32 %v4377_v40, %v4376_v62  ;;  %v1293_v15 = vsub.f32 %v4379_v42, %v4378_v28  ;;  %v4396_v59 = vld [vmem:[%s5073_s17 + $0x190] sm:$0xff]  ;;  %v4398_v40 = vld [vmem:[%s5073_s17 + $0x108] sm:$0xff] }
 0x164   : > { %3698 = vmatpush3.msra.mxu0 %v1298_v48  ;;  %3733 = vmatpush3.msra.mxu1 %v1314_v9  ;;  %v4381_v48 = vld [vmem:[%s5075_s6 + $0x1b0] sm:$0xff]  ;;  %v4383_v9 = vld [vmem:[%s5075_s6 + $0x128] sm:$0xff] }
 0x165   : > { %3699 = vmatprep.subr.mxu0 %v7153_v13  ;;  %3734 = vmatprep.subr.mxu1 %v7153_v13  ;;  %v1309_v57 = vsub.f32 %v4381_v48, %v4380_v36  ;;  %v1292_v37 = vsub.f32 %v4383_v9, %v4382_v61  ;;  %v4400_v42 = vld [vmem:[%s5073_s17 + $0x188] sm:$0xff]  ;;  %v4402_v48 = vld [vmem:[%s5073_s17 + $0x100] sm:$0xff] }
 0x166   : > { %3700 = vmatpush3.msra.mxu0 %v1297_v27  ;;  %3735 = vmatpush3.msra.mxu1 %v1313_v8  ;;  %v4385_v27 = vld [vmem:[%s5075_s6 + $0x1a8] sm:$0xff]  ;;  %v4387_v8 = vld [vmem:[%s5075_s6 + $0x120] sm:$0xff] }
 0x167   : > { %3701 = vmatprep.subr.mxu0 %v7153_v13  ;;  %3736 = vmatprep.subr.mxu1 %v7153_v13  ;;  %v1308_v19 = vsub.f32 %v4385_v27, %v4384_v23  ;;  %v1291_v1 = vsub.f32 %v4387_v8, %v4386_v35  ;;  %v4404_v9 = vld [vmem:[%s5073_s17 + $0x180] sm:$0xff]  ;;  %v4406_v27 = vld [vmem:[%s5073_s17 + $0x278] sm:$0xff] }
 0x168   : > { %3702 = vmatpush3.msra.mxu0 %v1296_v3  ;;  %3737 = vmatpush3.msra.mxu1 %v1312_v2  ;;  %v4389_v3 = vld [vmem:[%s5075_s6 + $0x1a0] sm:$0xff]  ;;  %v4391_v2 = vld [vmem:[%s5075_s6 + $0x118] sm:$0xff] }
 0x169   : > { %3703 = vmatprep.subr.mxu0 %v7153_v13  ;;  %3738 = vmatprep.subr.mxu1 %v7153_v13  ;;  %v1307_v5 = vsub.f32 %v4389_v3, %v4388_v46  ;;  %v1290_v18 = vsub.f32 %v4391_v2, %v4390_v50  ;;  %v4408_v8 = vld [vmem:[%s5073_s17 + $0x2f8] sm:$0xff]  ;;  %v4410_v3 = vld [vmem:[%s5073_s17 + $0x270] sm:$0xff] }
 0x16a   : > { %3704 = vmatpush3.msra.mxu0 %v1295_v41  ;;  %3739 = vmatpush3.msra.mxu1 %v1311_v63  ;;  %v4393_v41 = vld [vmem:[%s5075_s6 + $0x198] sm:$0xff]  ;;  %v4395_v63 = vld [vmem:[%s5075_s6 + $0x110] sm:$0xff] }
 0x16b   : > { %3705 = vmatprep.subr.mxu0 %v7153_v13  ;;  %3740 = vmatprep.subr.mxu1 %v7153_v13  ;;  %v1306_v22 = vsub.f32 %v4393_v41, %v4392_v0  ;;  %v1289_v24 = vsub.f32 %v4395_v63, %v4394_v14  ;;  %v4412_v2 = vld [vmem:[%s5073_s17 + $0x2f0] sm:$0xff]  ;;  %v4414_v41 = vld [vmem:[%s5073_s17 + $0x268] sm:$0xff] }
 0x16c   : > { %3706 = vmatpush3.msra.mxu0 %v1294_v54  ;;  %3741 = vmatpush3.msra.mxu1 %v1310_v33  ;;  %v4397_v54 = vld [vmem:[%s5075_s6 + $0x190] sm:$0xff]  ;;  %v4399_v33 = vld [vmem:[%s5075_s6 + $0x108] sm:$0xff] }
 0x16d   : > { %3707 = vmatprep.subr.mxu0 %v7153_v13  ;;  %3742 = vmatprep.subr.mxu1 %v7153_v13  ;;  %v1305_v62 = vsub.f32 %v4397_v54, %v4396_v59  ;;  %v1288_v28 = vsub.f32 %v4399_v33, %v4398_v40  ;;  %v4416_v63 = vld [vmem:[%s5073_s17 + $0x2e8] sm:$0xff]  ;;  %v4421_v40 = vld [vmem:[%s5075_s6 + $0x2e0] sm:$0xff] }
 0x16e   : > { %3708 = vmatpush3.msra.mxu0 %v1293_v15  ;;  %3743 = vmatpush3.msra.mxu1 %v1309_v57  ;;  %v4401_v15 = vld [vmem:[%s5075_s6 + $0x188] sm:$0xff]  ;;  %v4403_v57 = vld [vmem:[%s5075_s6 + $0x100] sm:$0xff] }
 0x16f   : > { %3709 = vmatprep.subr.mxu0 %v7153_v13  ;;  %3744 = vmatprep.subr.mxu1 %v7153_v13  ;;  %v1304_v36 = vsub.f32 %v4401_v15, %v4400_v42  ;;  %v1287_v61 = vsub.f32 %v4403_v57, %v4402_v48  ;;  %v4423_v42 = vld [vmem:[%s5075_s6 + $0x258] sm:$0xff] }
 0x170   : > { %3710 = vmatpush3.msra.mxu0 %v1292_v37  ;;  %3745 = vmatpush3.msra.mxu1 %v1308_v19  ;;  %v4405_v37 = vld [vmem:[%s5075_s6 + $0x180] sm:$0xff]  ;;  %v4407_v19 = vld [vmem:[%s5075_s6 + $0x278] sm:$0xff] }
 0x171   : > { %3711 = vmatprep.subr.mxu0 %v7153_v13  ;;  %3746 = vmatprep.subr.mxu1 %v7153_v13  ;;  %v1303_v23 = vsub.f32 %v4405_v37, %v4404_v9  ;;  %v1334_v35 = vsub.f32 %v4407_v19, %v4406_v27  ;;  %v4425_v48 = vld [vmem:[%s5075_s6 + $0x2d8] sm:$0xff]  ;;  %v4427_v9 = vld [vmem:[%s5075_s6 + $0x250] sm:$0xff] }
 0x172   : > { %3712 = vmatpush3.msra.mxu0 %v1291_v1  ;;  %3747 = vmatpush3.msra.mxu1 %v1307_v5  ;;  %v4409_v1 = vld [vmem:[%s5075_s6 + $0x2f8] sm:$0xff]  ;;  %v4411_v5 = vld [vmem:[%s5075_s6 + $0x270] sm:$0xff] }
 0x173   : > { %3713 = vmatprep.subr.mxu0 %v7153_v13  ;;  %3748 = vmatprep.subr.mxu1 %v7153_v13  ;;  %v1350_v46 = vsub.f32 %v4409_v1, %v4408_v8  ;;  %v1333_v50 = vsub.f32 %v4411_v5, %v4410_v3  ;;  %v4429_v27 = vld [vmem:[%s5075_s6 + $0x2d0] sm:$0xff]  ;;  %v4431_v8 = vld [vmem:[%s5075_s6 + $0x248] sm:$0xff] }
 0x174   : > { %3714 = vmatpush3.msra.mxu0 %v1290_v18  ;;  %3749 = vmatpush3.msra.mxu1 %v1306_v22  ;;  %v4413_v18 = vld [vmem:[%s5075_s6 + $0x2f0] sm:$0xff]  ;;  %v4415_v22 = vld [vmem:[%s5075_s6 + $0x268] sm:$0xff] }
 0x175   : > { %3715 = vmatprep.subr.mxu0 %v7153_v13  ;;  %3750 = vmatprep.subr.mxu1 %v7153_v13  ;;  %v1349_v0 = vsub.f32 %v4413_v18, %v4412_v2  ;;  %v1332_v14 = vsub.f32 %v4415_v22, %v4414_v41  ;;  %v4433_v3 = vld [vmem:[%s5075_s6 + $0x2c8] sm:$0xff]  ;;  %v4435_v2 = vld [vmem:[%s5075_s6 + $0x240] sm:$0xff] }
 0x176   : > { %3716 = vmatpush3.msra.mxu0 %v1289_v24  ;;  %3751 = vmatpush3.msra.mxu1 %v1305_v62  ;;  %v4417_v24 = vld [vmem:[%s5075_s6 + $0x2e8] sm:$0xff]  ;;  %v4420_v62 = vld [vmem:[%s5073_s17 + $0x2e0] sm:$0xff] }
 0x177   : > { %3717 = vmatprep.subr.mxu0 %v7153_v13  ;;  %3752 = vmatprep.subr.mxu1 %v7153_v13  ;;  %v1348_v59 = vsub.f32 %v4417_v24, %v4416_v63  ;;  %v1347_v33 = vsub.f32 %v4421_v40, %v4420_v62  ;;  %v4437_v41 = vld [vmem:[%s5075_s6 + $0x2c0] sm:$0xff]  ;;  %v4439_v63 = vld [vmem:[%s5075_s6 + $0x238] sm:$0xff]  ;;  %v4443_v62 = vld [vmem:[%s5075_s6 + $0x230] sm:$0xff] }
 0x178   : > { %3718 = vmatpush3.msra.mxu0 %v1288_v28  ;;  %3753 = vmatpush3.msra.mxu1 %v1304_v36  ;;  %v4422_v28 = vld [vmem:[%s5073_s17 + $0x258] sm:$0xff] }
 0x179   : > { %3719 = vmatprep.subr.mxu0 %v7153_v13  ;;  %3754 = vmatprep.subr.mxu1 %v7153_v13  ;;  %v1330_v15 = vsub.f32 %v4423_v42, %v4422_v28  ;;  %v4424_v36 = vld [vmem:[%s5073_s17 + $0x2d8] sm:$0xff]  ;;  %v4445_v28 = vld [vmem:[%s5075_s6 + $0x2b0] sm:$0xff] }
 0x17a   : > { %3720 = vmatpush3.msra.mxu0 %v1287_v61  ;;  %3721 = vmatprep.mubr.msk.f32.mxu0 %vm4770_vm0, %v7153_v13  ;;  %v1346_v57 = vsub.f32 %v4425_v48, %v4424_v36  ;;  %v4426_v61 = vld [vmem:[%s5073_s17 + $0x250] sm:$0xff]  ;;  %v4447_v36 = vld [vmem:[%s5075_s6 + $0x228] sm:$0xff] }
 0x17b   : > { %3755 = vmatpush3.msra.mxu1 %v1303_v23  ;;  %3756 = vmatprep.mubr.msk.f32.mxu1 %vm4770_vm0, %v7153_v13  ;;  %v1329_v37 = vsub.f32 %v4427_v9, %v4426_v61  ;;  %v4428_v23 = vld [vmem:[%s5073_s17 + $0x2d0] sm:$0xff]  ;;  %v4449_v61 = vld [vmem:[%s5075_s6 + $0x2a8] sm:$0xff] }
 0x17c   : > { %3722 = vmatmul.mubr.f32.vlgmr.msra.gmra.mxu0 %v5687_v53  ;;  %3757 = vmatmul.mubr.f32.vlgmr.msra.gmra.mxu1 %v5691_v31  ;;  %v4418_v31 = vld [vmem:[%s5073_s17 + $0x260] sm:$0xff]  ;;  %v1345_v19 = vsub.f32 %v4429_v27, %v4428_v23 }
 0x17d   : > { %3759 = vmatprep.subr.mxu0 %v7153_v13  ;;  %3794 = vmatprep.subr.mxu1 %v7153_v13  ;;  %v4419_v53 = vld [vmem:[%s5075_s6 + $0x260] sm:$0xff] }
 0x17e   : > { %3760 = vmatpush3.msra.mxu0 %v1334_v35  ;;  %3795 = vmatpush3.msra.mxu1 %v1350_v46  ;;  %v1331_v54 = vsub.f32 %v4419_v53, %v4418_v31  ;;  %v4430_v35 = vld [vmem:[%s5073_s17 + $0x248] sm:$0xff]  ;;  %v4441_v31 = vld [vmem:[%s5075_s6 + $0x2b8] sm:$0xff]  ;;  %v4451_v23 = vld [vmem:[%s5075_s6 + $0x220] sm:$0xff] }
 0x17f   : > { %3761 = vmatprep.subr.mxu0 %v7153_v13  ;;  %3796 = vmatprep.subr.mxu1 %v7153_v13  ;;  %v1328_v1 = vsub.f32 %v4431_v8, %v4430_v35  ;;  %v4432_v46 = vld [vmem:[%s5073_s17 + $0x2c8] sm:$0xff]  ;;  %v4453_v35 = vld [vmem:[%s5075_s6 + $0x2a0] sm:$0xff] }
 0x180   : > { %3762 = vmatpush3.msra.mxu0 %v1333_v50  ;;  %3797 = vmatpush3.msra.mxu1 %v1349_v0  ;;  %v1344_v5 = vsub.f32 %v4433_v3, %v4432_v46  ;;  %v4434_v50 = vld [vmem:[%s5073_s17 + $0x240] sm:$0xff]  ;;  %v4455_v46 = vld [vmem:[%s5075_s6 + $0x218] sm:$0xff] }
 0x181   : > { %3763 = vmatprep.subr.mxu0 %v7153_v13  ;;  %3798 = vmatprep.subr.mxu1 %v7153_v13  ;;  %v1327_v18 = vsub.f32 %v4435_v2, %v4434_v50  ;;  %v4436_v0 = vld [vmem:[%s5073_s17 + $0x2c0] sm:$0xff]  ;;  %v4457_v50 = vld [vmem:[%s5075_s6 + $0x298] sm:$0xff] }
 0x182   : > { %3764 = vmatpush3.msra.mxu0 %v1332_v14  ;;  %3799 = vmatpush3.msra.mxu1 %v1348_v59  ;;  %v1343_v22 = vsub.f32 %v4437_v41, %v4436_v0  ;;  %v4438_v14 = vld [vmem:[%s5073_s17 + $0x238] sm:$0xff]  ;;  %v4458_v41 = vld [vmem:[%s5073_s17 + $0x210] sm:$0xff] }
 0x183   : > { %3765 = vmatprep.subr.mxu0 %v7153_v13  ;;  %3800 = vmatprep.subr.mxu1 %v7153_v13  ;;  %v1326_v24 = vsub.f32 %v4439_v63, %v4438_v14  ;;  %v4440_v59 = vld [vmem:[%s5073_s17 + $0x2b8] sm:$0xff]  ;;  %v4460_v63 = vld [vmem:[%s5073_s17 + $0x290] sm:$0xff] }
 0x184   : > { %3766 = vmatpush3.msra.mxu0 %v1331_v54  ;;  %3801 = vmatpush3.msra.mxu1 %v1347_v33  ;;  %v1342_v53 = vsub.f32 %v4441_v31, %v4440_v59  ;;  %v4442_v54 = vld [vmem:[%s5073_s17 + $0x230] sm:$0xff] }
 0x185   : > { %3767 = vmatprep.subr.mxu0 %v7153_v13  ;;  %3802 = vmatprep.subr.mxu1 %v7153_v13  ;;  %v1325_v40 = vsub.f32 %v4443_v62, %v4442_v54  ;;  %v4444_v33 = vld [vmem:[%s5073_s17 + $0x2b0] sm:$0xff]  ;;  %v4462_v54 = vld [vmem:[%s5073_s17 + $0x208] sm:$0xff] }
 0x186   : > { %3768 = vmatpush3.msra.mxu0 %v1330_v15  ;;  %3803 = vmatpush3.msra.mxu1 %v1346_v57  ;;  %v1341_v42 = vsub.f32 %v4445_v28, %v4444_v33  ;;  %v4446_v15 = vld [vmem:[%s5073_s17 + $0x228] sm:$0xff] }
 0x187   : > { %3769 = vmatprep.subr.mxu0 %v7153_v13  ;;  %3804 = vmatprep.subr.mxu1 %v7153_v13  ;;  %v1324_v48 = vsub.f32 %v4447_v36, %v4446_v15  ;;  %v4448_v57 = vld [vmem:[%s5073_s17 + $0x2a8] sm:$0xff]  ;;  %v4466_v15 = vld [vmem:[%s5073_s17 + $0x200] sm:$0xff] }
 0x188   : > { %3770 = vmatpush3.msra.mxu0 %v1329_v37  ;;  %3805 = vmatpush3.msra.mxu1 %v1345_v19  ;;  %v1340_v9 = vsub.f32 %v4449_v61, %v4448_v57  ;;  %v4450_v37 = vld [vmem:[%s5073_s17 + $0x220] sm:$0xff]  ;;  %v4463_v62 = vld [vmem:[%s5075_s6 + $0x208] sm:$0xff] }
 0x189   : > { %3771 = vmatprep.subr.mxu0 %v7153_v13  ;;  %3806 = vmatprep.subr.mxu1 %v7153_v13  ;;  %v1323_v27 = vsub.f32 %v4451_v23, %v4450_v37  ;;  %v4452_v19 = vld [vmem:[%s5073_s17 + $0x2a0] sm:$0xff]  ;;  %v4464_v33 = vld [vmem:[%s5073_s17 + $0x288] sm:$0xff]  ;;  %v4470_v37 = vld [vmem:[%s5073_s17 + $0x378] sm:$0xff] }
 0x18a   : > { %3772 = vmatpush3.msra.mxu0 %v1328_v1  ;;  %3807 = vmatpush3.msra.mxu1 %v1344_v5  ;;  %v1339_v8 = vsub.f32 %v4453_v35, %v4452_v19  ;;  %v4454_v1 = vld [vmem:[%s5073_s17 + $0x218] sm:$0xff]  ;;  %v4465_v28 = vld [vmem:[%s5075_s6 + $0x288] sm:$0xff]  ;;  %v4467_v36 = vld [vmem:[%s5075_s6 + $0x200] sm:$0xff] }
 0x18b   : > { %3773 = vmatprep.subr.mxu0 %v7153_v13  ;;  %3808 = vmatprep.subr.mxu1 %v7153_v13  ;;  %v1322_v3 = vsub.f32 %v4455_v46, %v4454_v1  ;;  %v4456_v5 = vld [vmem:[%s5073_s17 + $0x298] sm:$0xff]  ;;  %v4468_v57 = vld [vmem:[%s5073_s17 + $0x280] sm:$0xff]  ;;  %v4474_v1 = vld [vmem:[%s5073_s17 + $0x370] sm:$0xff] }
 0x18c   : > { %3774 = vmatpush3.msra.mxu0 %v1327_v18  ;;  %3809 = vmatpush3.msra.mxu1 %v1343_v22  ;;  %v1338_v2 = vsub.f32 %v4457_v50, %v4456_v5  ;;  %v4459_v22 = vld [vmem:[%s5075_s6 + $0x210] sm:$0xff]  ;;  %v4469_v61 = vld [vmem:[%s5075_s6 + $0x280] sm:$0xff]  ;;  %v4471_v23 = vld [vmem:[%s5075_s6 + $0x378] sm:$0xff] }
 0x18d   : > { %3775 = vmatprep.subr.mxu0 %v7153_v13  ;;  %3810 = vmatprep.subr.mxu1 %v7153_v13  ;;  %v1321_v14 = vsub.f32 %v4459_v22, %v4458_v41  ;;  %v4472_v19 = vld [vmem:[%s5073_s17 + $0x3f8] sm:$0xff]  ;;  %v4475_v46 = vld [vmem:[%s5075_s6 + $0x370] sm:$0xff]  ;;  %v4478_v41 = vld [vmem:[%s5073_s17 + $0x368] sm:$0xff] }
 0x18e   : > { %3776 = vmatpush3.msra.mxu0 %v1326_v24  ;;  %3811 = vmatpush3.msra.mxu1 %v1342_v53  ;;  %v6492_v18 = vpop.f32.mrf.mxu0  ;;  %v6494_v0 = vpop.f32.mrf.mxu1  ;;  %v4461_v24 = vld [vmem:[%s5075_s6 + $0x290] sm:$0xff]  ;;  %v4473_v35 = vld [vmem:[%s5075_s6 + $0x3f8] sm:$0xff]  ;;  %v4479_v22 = vld [vmem:[%s5075_s6 + $0x368] sm:$0xff] }
 0x18f   : > { %3777 = vmatprep.subr.mxu0 %v7153_v13  ;;  %3812 = vmatprep.subr.mxu1 %v7153_v13  ;;  %v1337_v59 = vsub.f32 %v4461_v24, %v4460_v63  ;;  %v4476_v5 = vld [vmem:[%s5073_s17 + $0x3f0] sm:$0xff]  ;;  %v4480_v63 = vld [vmem:[%s5073_s17 + $0x3e8] sm:$0xff] }
 0x190   : > { %3778 = vmatpush3.msra.mxu0 %v1325_v40  ;;  %3813 = vmatpush3.msra.mxu1 %v1341_v42  ;;  %v3373_v31 = vpop.f32.mrf.mxu0  ;;  %v3408_v53 = vpop.f32.mrf.mxu1  ;;  %v1320_v40 = vsub.f32 %v4463_v62, %v4462_v54  ;;  %v1336_v42 = vsub.f32 %v4465_v28, %v4464_v33  ;;  %v4477_v50 = vld [vmem:[%s5075_s6 + $0x3f0] sm:$0xff]  ;;  %v4481_v24 = vld [vmem:[%s5075_s6 + $0x3e8] sm:$0xff]  ;;  %v4485_v54 = vld [vmem:[%s5075_s6 + $0x3e0] sm:$0xff] }
 0x191   : > { %3779 = vmatprep.subr.mxu0 %v7153_v13  ;;  %3814 = vmatprep.subr.mxu1 %v7153_v13  ;;  %v4484_v53 = vld [vmem:[%s5073_s17 + $0x3e0] sm:$0xff]  ;;  %v4487_v33 = vld [vmem:[%s5075_s6 + $0x358] sm:$0xff] }
 0x192   : > { %3780 = vmatpush3.msra.mxu0 %v1324_v48  ;;  %3815 = vmatpush3.msra.mxu1 %v1340_v9  ;;  %v1319_v48 = vsub.f32 %v4467_v36, %v4466_v15  ;;  %v1335_v9 = vsub.f32 %v4469_v61, %v4468_v57  ;;  %v1379_v62 = vsub.f32 %v4485_v54, %v4484_v53  ;;  %v4489_v15 = vld [vmem:[%s5075_s6 + $0x3d8] sm:$0xff]  ;;  %v4491_v57 = vld [vmem:[%s5075_s6 + $0x350] sm:$0xff] }
 0x193   : > { %3781 = vmatprep.subr.mxu0 %v7153_v13  ;;  %3816 = vmatprep.subr.mxu1 %v7153_v13  ;;  %v4507_v53 = vld [vmem:[%s5075_s6 + $0x330] sm:$0xff] }
 0x194   : > { %3782 = vmatpush3.msra.mxu0 %v1323_v27  ;;  %3817 = vmatpush3.msra.mxu1 %v1339_v8  ;;  %v1366_v27 = vsub.f32 %v4471_v23, %v4470_v37  ;;  %v1382_v8 = vsub.f32 %v4473_v35, %v4472_v19  ;;  %v4493_v37 = vld [vmem:[%s5075_s6 + $0x3d0] sm:$0xff]  ;;  %v4495_v19 = vld [vmem:[%s5075_s6 + $0x348] sm:$0xff] }
 0x195   : > { %3783 = vmatprep.subr.mxu0 %v7153_v13  ;;  %3818 = vmatprep.subr.mxu1 %v7153_v13 }
 0x196   : > { %3784 = vmatpush3.msra.mxu0 %v1322_v3  ;;  %3819 = vmatpush3.msra.mxu1 %v1338_v2  ;;  %v1365_v3 = vsub.f32 %v4475_v46, %v4474_v1  ;;  %v1381_v2 = vsub.f32 %v4477_v50, %v4476_v5  ;;  %v4497_v1 = vld [vmem:[%s5075_s6 + $0x3c8] sm:$0xff]  ;;  %v4499_v5 = vld [vmem:[%s5075_s6 + $0x340] sm:$0xff] }
 0x197   : > { %3785 = vmatprep.subr.mxu0 %v7153_v13  ;;  %3820 = vmatprep.subr.mxu1 %v7153_v13 }
 0x198   : > { %3786 = vmatpush3.msra.mxu0 %v1321_v14  ;;  %3821 = vmatpush3.msra.mxu1 %v1337_v59  ;;  %v1364_v14 = vsub.f32 %v4479_v22, %v4478_v41  ;;  %v1380_v59 = vsub.f32 %v4481_v24, %v4480_v63  ;;  %v4501_v41 = vld [vmem:[%s5075_s6 + $0x3c0] sm:$0xff]  ;;  %v4503_v63 = vld [vmem:[%s5075_s6 + $0x338] sm:$0xff] }
 0x199   : > { %3787 = vmatprep.subr.mxu0 %v7153_v13  ;;  %3822 = vmatprep.subr.mxu1 %v7153_v13 }
 0x19a   : > { %3788 = vmatpush3.msra.mxu0 %v1320_v40  ;;  %3823 = vmatpush3.msra.mxu1 %v1336_v42  ;;  %v4486_v40 = vld [vmem:[%s5073_s17 + $0x358] sm:$0xff] }
 0x19b   : > { %3789 = vmatprep.subr.mxu0 %v7153_v13  ;;  %3824 = vmatprep.subr.mxu1 %v7153_v13  ;;  %v1362_v28 = vsub.f32 %v4487_v33, %v4486_v40  ;;  %v4488_v42 = vld [vmem:[%s5073_s17 + $0x3d8] sm:$0xff]  ;;  %v4509_v40 = vld [vmem:[%s5075_s6 + $0x3b0] sm:$0xff] }
 0x19c   : > { %3790 = vmatpush3.msra.mxu0 %v1319_v48  ;;  %3791 = vmatprep.mubr.msk.f32.mxu0 %vm4770_vm0, %v7153_v13  ;;  %v1378_v36 = vsub.f32 %v4489_v15, %v4488_v42  ;;  %v4490_v48 = vld [vmem:[%s5073_s17 + $0x350] sm:$0xff]  ;;  %v4511_v42 = vld [vmem:[%s5075_s6 + $0x328] sm:$0xff] }
 0x19d   : > { %3825 = vmatpush3.msra.mxu1 %v1335_v9  ;;  %3826 = vmatprep.mubr.msk.f32.mxu1 %vm4770_vm0, %v7153_v13  ;;  %v1361_v61 = vsub.f32 %v4491_v57, %v4490_v48  ;;  %v4492_v9 = vld [vmem:[%s5073_s17 + $0x3d0] sm:$0xff]  ;;  %v4513_v48 = vld [vmem:[%s5075_s6 + $0x3a8] sm:$0xff] }
 0x19e   : > { %3792 = vmatmul.mubr.f32.vlgmr.msra.gmra.mxu0 %v6111_v17  ;;  %3827 = vmatmul.mubr.f32.vlgmr.msra.gmra.mxu1 %v6117_v16  ;;  %v4482_v16 = vld [vmem:[%s5073_s17 + $0x360] sm:$0xff]  ;;  %v1377_v23 = vsub.f32 %v4493_v37, %v4492_v9  ;;  %v1371_v37 = vsub.f32 %v6004_v6, %v5995_v47  ;;  %v1353_v47 = vsub.f32 %v6038_v38, %v6029_v39  ;;  %v7247_v39 = vld [vmem:[#allocation33_spill] sm:$0xff] }
 0x19f   : > { %3829 = vmatprep.subr.mxu0 %v7153_v13  ;;  %3864 = vmatprep.subr.mxu1 %v7153_v13  ;;  %v4483_v17 = vld [vmem:[%s5075_s6 + $0x360] sm:$0xff]  ;;  %v1369_v6 = vsub.f32 %v6044_v34, %v6041_v51  ;;  %v1351_v34 = vsub.f32 %v6078_v20, %v6075_v21  ;;  %v1367_v38 = vsub.f32 %v6094_v55, %v6091_v25  ;;  %v7239_v21 = vld [vmem:[#allocation25_spill] sm:$0xff]  ;;  %v7244_v25 = vld [vmem:[#allocation30_spill] sm:$0xff] }
 0x1a0   : > { %3830 = vmatpush3.msra.mxu0 %v1366_v27  ;;  %3865 = vmatpush3.msra.mxu1 %v1382_v8  ;;  %v1363_v31 = vsub.f32 %v4483_v17, %v4482_v16  ;;  %v4494_v27 = vld [vmem:[%s5073_s17 + $0x348] sm:$0xff]  ;;  %v4505_v16 = vld [vmem:[%s5075_s6 + $0x3b8] sm:$0xff]  ;;  %v7238_v20 = vld [vmem:[#allocation24_spill] sm:$0xff] }
 0x1a1   : > { %3831 = vmatprep.subr.mxu0 %v7153_v13  ;;  %3866 = vmatprep.subr.mxu1 %v7153_v13  ;;  %v1360_v35 = vsub.f32 %v4495_v19, %v4494_v27  ;;  %v4496_v8 = vld [vmem:[%s5073_s17 + $0x3c8] sm:$0xff]  ;;  %v1370_v27 = vsub.f32 %v6026_v43, %v6023_v26  ;;  %v1368_v26 = vsub.f32 %v6072_v32, %v6063_v29  ;;  %v7245_v29 = vld [vmem:[#allocation31_spill] sm:$0xff]  ;;  %v7250_v32 = vld [vmem:[#allocation36_spill] sm:$0xff] }
 0x1a2   : > { %3832 = vmatpush3.msra.mxu0 %v1365_v3  ;;  %3867 = vmatpush3.msra.mxu1 %v1381_v2  ;;  %v1376_v46 = vsub.f32 %v4497_v1, %v4496_v8  ;;  %v4498_v3 = vld [vmem:[%s5073_s17 + $0x340] sm:$0xff]  ;;  %v7249_v51 = vld [vmem:[#allocation35_spill] sm:$0xff]  ;;  %v7251_v55 = vld [vmem:[#allocation37_spill] sm:$0xff] }
 0x1a3   : > { %3833 = vmatprep.subr.mxu0 %v7153_v13  ;;  %3868 = vmatprep.subr.mxu1 %v7153_v13  ;;  %v1359_v50 = vsub.f32 %v4499_v5, %v4498_v3  ;;  %v4500_v2 = vld [vmem:[%s5073_s17 + $0x3c0] sm:$0xff]  ;;  %v7255_v8 = vld [vmem:[#allocation41_spill] sm:$0xff]  ;;  %v7256_v3 = vld [vmem:[#allocation42_spill] sm:$0xff] }
 0x1a4   : > { %3834 = vmatpush3.msra.mxu0 %v1364_v14  ;;  %3869 = vmatpush3.msra.mxu1 %v1380_v59  ;;  %v1375_v22 = vsub.f32 %v4501_v41, %v4500_v2  ;;  %v4502_v14 = vld [vmem:[%s5073_s17 + $0x338] sm:$0xff]  ;;  %v7258_v41 = vld [vmem:[#allocation44_spill] sm:$0xff] }
 0x1a5   : > { %3835 = vmatprep.subr.mxu0 %v7153_v13  ;;  %3870 = vmatprep.subr.mxu1 %v7153_v13  ;;  %v1358_v24 = vsub.f32 %v4503_v63, %v4502_v14  ;;  %v4504_v59 = vld [vmem:[%s5073_s17 + $0x3b8] sm:$0xff]  ;;  %v7260_v14 = vld [vmem:[#allocation46_spill] sm:$0xff] }
 0x1a6   : > { %3836 = vmatpush3.msra.mxu0 %v1363_v31  ;;  %3871 = vmatpush3.msra.mxu1 %v1379_v62  ;;  %v1374_v17 = vsub.f32 %v4505_v16, %v4504_v59  ;;  %v4506_v31 = vld [vmem:[%s5073_s17 + $0x330] sm:$0xff]  ;;  %v7257_v5 = vld [vmem:[#allocation43_spill] sm:$0xff]  ;;  %v7263_v59 = vld [vmem:[#allocation49_spill] sm:$0xff] }
 0x1a7   : > { %3837 = vmatprep.subr.mxu0 %v7153_v13  ;;  %3872 = vmatprep.subr.mxu1 %v7153_v13  ;;  %v1357_v54 = vsub.f32 %v4507_v53, %v4506_v31  ;;  %v4508_v62 = vld [vmem:[%s5073_s17 + $0x3b0] sm:$0xff]  ;;  %v7261_v63 = vld [vmem:[#allocation47_spill] sm:$0xff]  ;;  %v4515_v31 = vld [vmem:[%s5067_s11] sm:$0xff] }
 0x1a8   : > { %3838 = vmatpush3.msra.mxu0 %v1362_v28  ;;  %3873 = vmatpush3.msra.mxu1 %v1378_v36  ;;  %v1373_v33 = vsub.f32 %v4509_v40, %v4508_v62  ;;  %v4510_v28 = vld [vmem:[%s5073_s17 + $0x328] sm:$0xff]  ;;  %v7264_v16 = vld [vmem:[#allocation50_spill] sm:$0xff] }
 0x1a9   : > { %3839 = vmatprep.subr.mxu0 %v7153_v13  ;;  %3874 = vmatprep.subr.mxu1 %v7153_v13  ;;  %v1356_v15 = vsub.f32 %v4511_v42, %v4510_v28  ;;  %v4512_v36 = vld [vmem:[%s5073_s17 + $0x3a8] sm:$0xff]  ;;  %v7268_v40 = vld [vmem:[#allocation54_spill] sm:$0xff]  ;;  %v7270_v28 = vld [vmem:[#allocation56_spill] sm:$0xff] }
 0x1aa   : > { %3840 = vmatpush3.msra.mxu0 %v1361_v61  ;;  %3875 = vmatpush3.msra.mxu1 %v1377_v23  ;;  %v1372_v57 = vsub.f32 %v4513_v48, %v4512_v36  ;;  %v4514_v61 = vld [vmem:[%s5073_s17 + $0x320] sm:$0xff]  ;;  %v1354_v23 = vsub.f32 %v6010_v60, %v6007_v49  ;;  %v1352_v49 = vsub.f32 %v6060_v30, %v6057_v44  ;;  %v7248_v44 = vld [vmem:[#allocation34_spill] sm:$0xff]  ;;  %v4516_v53 = vld [vmem:[%s5067_s11 + $0x8] sm:$0xff] }
 0x1ab   : > { %3841 = vmatprep.subr.mxu0 %v7153_v13  ;;  %3876 = vmatprep.subr.mxu1 %v7153_v13  ;;  %v1355_v9 = vsub.f32 %v5992_v58, %v4514_v61  ;;  %v7246_v30 = vld [vmem:[#allocation32_spill] sm:$0xff]  ;;  %v7267_v62 = vld [vmem:[#allocation53_spill] sm:$0xff]  ;;  %v7273_v36 = vld [vmem:[#allocation59_spill] sm:$0xff] }
 0x1ac   : > { %3842 = vmatpush3.msra.mxu0 %v1360_v35  ;;  %3877 = vmatpush3.msra.mxu1 %v1376_v46  ;;  %v7254_v35 = vld [vmem:[#allocation40_spill] sm:$0xff]  ;;  %v7271_v42 = vld [vmem:[#allocation57_spill] sm:$0xff]  ;;  %v7276_v61 = vld [vmem:[#allocation62_spill] sm:$0xff] }
 0x1ad   : > { %3843 = vmatprep.subr.mxu0 %v7153_v13  ;;  %3878 = vmatprep.subr.mxu1 %v7153_v13  ;;  %v7274_v48 = vld [vmem:[#allocation60_spill] sm:$0xff] }
 0x1ae   : > { %3844 = vmatpush3.msra.mxu0 %v1359_v50  ;;  %3879 = vmatpush3.msra.mxu1 %v1375_v22  ;;  %v7259_v22 = vld [vmem:[#allocation45_spill] sm:$0xff] }
 0x1af   : > { %3845 = vmatprep.subr.mxu0 %v7153_v13  ;;  %3880 = vmatprep.subr.mxu1 %v7153_v13 }
 0x1b0   : > { %3846 = vmatpush3.msra.mxu0 %v1358_v24  ;;  %3881 = vmatpush3.msra.mxu1 %v1374_v17  ;;  %v7262_v24 = vld [vmem:[#allocation48_spill] sm:$0xff]  ;;  %v7265_v17 = vld [vmem:[#allocation51_spill] sm:$0xff] }
 0x1b1   : > { %3847 = vmatprep.subr.mxu0 %v7153_v13  ;;  %3882 = vmatprep.subr.mxu1 %v7153_v13  ;;  %v6598_v19 = vpop.f32.mrf.mxu0 }
 0x1b2   : > { %3848 = vmatpush3.msra.mxu0 %v1357_v54  ;;  %3883 = vmatpush3.msra.mxu1 %v1373_v33  ;;  %v7266_v54 = vld [vmem:[#allocation52_spill] sm:$0xff]  ;;  %v7269_v33 = vld [vmem:[#allocation55_spill] sm:$0xff] }
 0x1b3   : > { %3849 = vmatprep.subr.mxu0 %v7153_v13  ;;  %3884 = vmatprep.subr.mxu1 %v7153_v13  ;;  %v3443_v60 = vpop.f32.mrf.mxu0 }
 0x1b4   : > { %3850 = vmatpush3.msra.mxu0 %v1356_v15  ;;  %3885 = vmatpush3.msra.mxu1 %v1372_v57  ;;  %v7272_v15 = vld [vmem:[#allocation58_spill] sm:$0xff]  ;;  %v7275_v57 = vld [vmem:[#allocation61_spill] sm:$0xff] }
 0x1b5   : > { %v6600_v58 = vpop.f32.mrf.mxu1  ;;  %3851 = vmatprep.subr.mxu0 %v7153_v13  ;;  %3886 = vmatprep.subr.mxu1 %v7153_v13  ;;  %v7283_v60 = vld [vmem:[#allocation69_spill] sm:$0xff] }
 0x1b6   : > { %3852 = vmatpush3.msra.mxu0 %v1355_v9  ;;  %3887 = vmatpush3.msra.mxu1 %v1371_v37  ;;  %v7277_v9 = vld [vmem:[#allocation63_spill] sm:$0xff]  ;;  %v7278_v37 = vld [vmem:[#allocation64_spill] sm:$0xff] }
 0x1b7   : > { %v3478_v43 = vpop.f32.mrf.mxu1  ;;  %3853 = vmatprep.subr.mxu0 %v7153_v13  ;;  %3888 = vmatprep.subr.mxu1 %v7153_v13 }
 0x1b8   : > { %3854 = vmatpush3.msra.mxu0 %v1354_v23  ;;  %3889 = vmatpush3.msra.mxu1 %v1370_v27  ;;  %v7279_v23 = vld [vmem:[#allocation65_spill] sm:$0xff]  ;;  %v7280_v27 = vld [vmem:[#allocation66_spill] sm:$0xff] }
 0x1b9   : > { %3855 = vmatprep.subr.mxu0 %v7153_v13  ;;  %3890 = vmatprep.subr.mxu1 %v7153_v13  ;;  %v7284_v43 = vld [vmem:[#allocation70_spill] sm:$0xff] }
 0x1ba   : > { %3856 = vmatpush3.msra.mxu0 %v1353_v47  ;;  %3891 = vmatpush3.msra.mxu1 %v1369_v6  ;;  %v7281_v47 = vld [vmem:[#allocation67_spill] sm:$0xff]  ;;  %v7282_v6 = vld [vmem:[#allocation68_spill] sm:$0xff] }
 0x1bb   : > { %3857 = vmatprep.subr.mxu0 %v7153_v13  ;;  %3892 = vmatprep.subr.mxu1 %v7153_v13 }
 0x1bc   : > { %3858 = vmatpush3.msra.mxu0 %v1352_v49  ;;  %3893 = vmatpush3.msra.mxu1 %v1368_v26  ;;  %v7285_v49 = vld [vmem:[#allocation71_spill] sm:$0xff]  ;;  %v7286_v26 = vld [vmem:[#allocation72_spill] sm:$0xff] }
 0x1bd   : > { %3859 = vmatprep.subr.mxu0 %v7153_v13  ;;  %3894 = vmatprep.subr.mxu1 %v7153_v13 }
 0x1be   : > { %3860 = vmatpush3.msra.mxu0 %v1351_v34  ;;  %3861 = vmatprep.mubr.msk.f32.mxu0 %vm4770_vm0, %v7153_v13  ;;  %v7287_v34 = vld [vmem:[#allocation73_spill] sm:$0xff] }
 0x1bf   : > { %3895 = vmatpush3.msra.mxu1 %v1367_v38  ;;  %3896 = vmatprep.mubr.msk.f32.mxu1 %vm4770_vm0, %v7153_v13 }
 0x1c0   : > { %3862 = vmatmul.mubr.f32.vlgmr.msra.gmra.mxu0 %v6189_v52  ;;  %3897 = vmatmul.mubr.f32.vlgmr.msra.gmra.mxu1 %v6195_v56  ;;  %v7252_v52 = vld [vmem:[#allocation38_spill] sm:$0xff]  ;;  %v7253_v56 = vld [vmem:[#allocation39_spill] sm:$0xff] }
 0x1c1   : > { %3899 = vmatprep.subr.mxu0 %v7153_v13  ;;  %3934 = vmatprep.subr.mxu1 %v7153_v13 }
 0x1c2   : > { %3900 = vmatpush3.msra.mxu0 %v5095_v4  ;;  %3935 = vmatpush3.msra.mxu1 %v5099_v7  ;;  %v7240_v4 = vld [vmem:[#allocation26_spill] sm:$0xff]  ;;  %v7241_v7 = vld [vmem:[#allocation27_spill] sm:$0xff] }
 0x1c3   : > { %3901 = vmatprep.subr.mxu0 %v7153_v13  ;;  %3936 = vmatprep.subr.mxu1 %v7153_v13 }
 0x1c4   : > { %3902 = vmatpush3.msra.mxu0 %v5106_v11  ;;  %3937 = vmatpush3.msra.mxu1 %v5108_v12  ;;  %v7242_v11 = vld [vmem:[#allocation28_spill] sm:$0xff]  ;;  %v7243_v12 = vld [vmem:[#allocation29_spill] sm:$0xff] }
 0x1c5   : > { %3903 = vmatprep.subr.mxu0 %v7153_v13  ;;  %3938 = vmatprep.subr.mxu1 %v7153_v13 }
 0x1c6   : > { %3904 = vmatpush3.msra.mxu0 %v7238_v20  ;;  %3939 = vmatpush3.msra.mxu1 %v7239_v21  ;;  %v7288_v21 = vld [vmem:[#allocation74_spill] sm:$0xff] }
 0x1c7   : > { %3905 = vmatprep.subr.mxu0 %v7153_v13  ;;  %3940 = vmatprep.subr.mxu1 %v7153_v13 }
 0x1c8   : > { %3906 = vmatpush3.msra.mxu0 %v7240_v4  ;;  %3941 = vmatpush3.msra.mxu1 %v7241_v7  ;;  %v7289_v4 = vld [vmem:[#allocation75_spill] sm:$0xff] }
 0x1c9   : > { %3907 = vmatprep.subr.mxu0 %v7153_v13  ;;  %3942 = vmatprep.subr.mxu1 %v7153_v13 }
 0x1ca   : > { %3908 = vmatpush3.msra.mxu0 %v7242_v11  ;;  %3943 = vmatpush3.msra.mxu1 %v7243_v12  ;;  %v7290_v12 = vld [vmem:[#allocation76_spill] sm:$0xff] }
 0x1cb   : > { %3909 = vmatprep.subr.mxu0 %v7153_v13  ;;  %3944 = vmatprep.subr.mxu1 %v7153_v13 }
 0x1cc   : > { %3910 = vmatpush3.msra.mxu0 %v7244_v25  ;;  %3945 = vmatpush3.msra.mxu1 %v7245_v29  ;;  %v7291_v25 = vld [vmem:[#allocation77_spill] sm:$0xff]  ;;  %v7292_v29 = vld [vmem:[#allocation78_spill] sm:$0xff] }
 0x1cd   : > { %3911 = vmatprep.subr.mxu0 %v7153_v13  ;;  %3946 = vmatprep.subr.mxu1 %v7153_v13 }
 0x1ce   : > { %3912 = vmatpush3.msra.mxu0 %v7246_v30  ;;  %3947 = vmatpush3.msra.mxu1 %v7247_v39  ;;  %v7293_v30 = vld [vmem:[#allocation79_spill] sm:$0xff]  ;;  %v7294_v39 = vld [vmem:[#allocation80_spill] sm:$0xff] }
 0x1cf   : > { %3913 = vmatprep.subr.mxu0 %v7153_v13  ;;  %3948 = vmatprep.subr.mxu1 %v7153_v13 }
 0x1d0   : > { %3914 = vmatpush3.msra.mxu0 %v7248_v44  ;;  %3949 = vmatpush3.msra.mxu1 %v7249_v51  ;;  %v7295_v44 = vld [vmem:[#allocation81_spill] sm:$0xff]  ;;  %v7296_v51 = vld [vmem:[#allocation82_spill] sm:$0xff] }
 0x1d1   : > { %3915 = vmatprep.subr.mxu0 %v7153_v13  ;;  %3950 = vmatprep.subr.mxu1 %v7153_v13 }
 0x1d2   : > { %3916 = vmatpush3.msra.mxu0 %v7250_v32  ;;  %3951 = vmatpush3.msra.mxu1 %v7251_v55  ;;  %v7297_v32 = vld [vmem:[#allocation83_spill] sm:$0xff]  ;;  %v4517_v55 = vld [vmem:[%s5067_s11 + $0x10] sm:$0xff] }
 0x1d3   : > { %3917 = vmatprep.subr.mxu0 %v7153_v13  ;;  %3952 = vmatprep.subr.mxu1 %v7153_v13  ;;  %v6674_v1 = vpop.f32.mrf.mxu0 }
 0x1d4   : > { %3918 = vmatpush3.msra.mxu0 %v7252_v52  ;;  %3953 = vmatpush3.msra.mxu1 %v7253_v56  ;;  %v4518_v52 = vld [vmem:[%s5067_s11 + $0x18] sm:$0xff]  ;;  %v7298_v56 = vld [vmem:[#allocation84_spill] sm:$0xff] }
 0x1d5   : > { %3919 = vmatprep.subr.mxu0 %v7153_v13  ;;  %3954 = vmatprep.subr.mxu1 %v7153_v13  ;;  %v3513_v50 = vpop.f32.mrf.mxu0 }
 0x1d6   : > { %3920 = vmatpush3.msra.mxu0 %v7254_v35  ;;  %3955 = vmatpush3.msra.mxu1 %v7255_v8  ;;  %v7299_v35 = vld [vmem:[#allocation85_spill] sm:$0xff]  ;;  %v7300_v8 = vld [vmem:[#allocation86_spill] sm:$0xff] }
 0x1d7   : > { %3921 = vmatprep.subr.mxu0 %v7153_v13  ;;  %3956 = vmatprep.subr.mxu1 %v7153_v13  ;;  %v7303_v50 = vld [vmem:[#allocation89_spill] sm:$0xff] }
 0x1d8   : > { %3922 = vmatpush3.msra.mxu0 %v7256_v3  ;;  %3957 = vmatpush3.msra.mxu1 %v7257_v5  ;;  %v7301_v3 = vld [vmem:[#allocation87_spill] sm:$0xff]  ;;  %v7302_v5 = vld [vmem:[#allocation88_spill] sm:$0xff] }
 0x1d9   : > { %3923 = vmatprep.subr.mxu0 %v7153_v13  ;;  %3958 = vmatprep.subr.mxu1 %v7153_v13 }
 0x1da   : > { %3924 = vmatpush3.msra.mxu0 %v7258_v41  ;;  %3959 = vmatpush3.msra.mxu1 %v7259_v22  ;;  %v7305_v41 = vld [vmem:[#allocation91_spill] sm:$0xff]  ;;  %v7306_v22 = vld [vmem:[#allocation92_spill] sm:$0xff] }
 0x1db   : > { %v6676_v46 = vpop.f32.mrf.mxu1  ;;  %3925 = vmatprep.subr.mxu0 %v7153_v13  ;;  %3960 = vmatprep.subr.mxu1 %v7153_v13 }
 0x1dc   : > { %3926 = vmatpush3.msra.mxu0 %v7260_v14  ;;  %3961 = vmatpush3.msra.mxu1 %v7261_v63  ;;  %v7307_v14 = vld [vmem:[#allocation93_spill] sm:$0xff]  ;;  %v7308_v63 = vld [vmem:[#allocation94_spill] sm:$0xff] }
 0x1dd   : > { %v3548_v2 = vpop.f32.mrf.mxu1  ;;  %3927 = vmatprep.subr.mxu0 %v7153_v13  ;;  %3962 = vmatprep.subr.mxu1 %v7153_v13 }
 0x1de   : > { %3928 = vmatpush3.msra.mxu0 %v7262_v24  ;;  %3963 = vmatpush3.msra.mxu1 %v7263_v59  ;;  %v7304_v2 = vld [vmem:[#allocation90_spill] sm:$0xff]  ;;  %v7309_v24 = vld [vmem:[#allocation95_spill] sm:$0xff]  ;;  %v7310_v59 = vld [vmem:[#allocation96_spill] sm:$0xff] }
 0x1df   : > { %3929 = vmatprep.subr.mxu0 %v7153_v13  ;;  %3964 = vmatprep.subr.mxu1 %v7153_v13 }
 0x1e0   : > { %3930 = vmatpush3.msra.mxu0 %v7264_v16  ;;  %3931 = vmatprep.mubr.msk.f32.mxu0 %vm4770_vm0, %v7153_v13  ;;  %v7311_v16 = vld [vmem:[#allocation97_spill] sm:$0xff] }
 0x1e1   : > { %3965 = vmatpush3.msra.mxu1 %v7265_v17  ;;  %3966 = vmatprep.mubr.msk.f32.mxu1 %vm4770_vm0, %v7153_v13  ;;  %v7312_v17 = vld [vmem:[#allocation98_spill] sm:$0xff] }
 0x1e2   : > { %3932 = vmatmul.mubr.f32.vlgmr.msra.gmra.mxu0 %v4515_v31  ;;  %3967 = vmatmul.mubr.f32.vlgmr.msra.gmra.mxu1 %v4516_v53  ;;  %v7313_v31 = vld [vmem:[#allocation99_spill] sm:$0xff]  ;;  %v7314_v53 = vld [vmem:[#allocation100_spill] sm:$0xff] }
 0x1e3   : > { %3969 = vmatprep.subr.mxu0 %v7153_v13  ;;  %4004 = vmatprep.subr.mxu1 %v7153_v13 }
 0x1e4   : > { %3970 = vmatpush3.msra.mxu0 %v7266_v54  ;;  %4005 = vmatpush3.msra.mxu1 %v7267_v62  ;;  %v7315_v54 = vld [vmem:[#allocation101_spill] sm:$0xff]  ;;  %v7316_v62 = vld [vmem:[#allocation102_spill] sm:$0xff] }
 0x1e5   : > { %3971 = vmatprep.subr.mxu0 %v7153_v13  ;;  %4006 = vmatprep.subr.mxu1 %v7153_v13 }
 0x1e6   : > { %3972 = vmatpush3.msra.mxu0 %v7268_v40  ;;  %4007 = vmatpush3.msra.mxu1 %v7269_v33  ;;  %v7317_v40 = vld [vmem:[#allocation103_spill] sm:$0xff]  ;;  %v7318_v33 = vld [vmem:[#allocation104_spill] sm:$0xff] }
 0x1e7   : > { %3973 = vmatprep.subr.mxu0 %v7153_v13  ;;  %4008 = vmatprep.subr.mxu1 %v7153_v13 }
 0x1e8   : > { %3974 = vmatpush3.msra.mxu0 %v7270_v28  ;;  %4009 = vmatpush3.msra.mxu1 %v7271_v42  ;;  %v7319_v28 = vld [vmem:[#allocation105_spill] sm:$0xff] }
 0x1e9   : > { %3975 = vmatprep.subr.mxu0 %v7153_v13  ;;  %4010 = vmatprep.subr.mxu1 %v7153_v13 }
 0x1ea   : > { %3976 = vmatpush3.msra.mxu0 %v7272_v15  ;;  %4011 = vmatpush3.msra.mxu1 %v7273_v36 }
 0x1eb   : > { %3977 = vmatprep.subr.mxu0 %v7153_v13  ;;  %4012 = vmatprep.subr.mxu1 %v7153_v13 }
 0x1ec   : > { %3978 = vmatpush3.msra.mxu0 %v7274_v48  ;;  %4013 = vmatpush3.msra.mxu1 %v7275_v57  ;;  %v7320_v57 = vld [vmem:[#allocation106_spill] sm:$0xff] }
 0x1ed   : > { %3979 = vmatprep.subr.mxu0 %v7153_v13  ;;  %4014 = vmatprep.subr.mxu1 %v7153_v13 }
 0x1ee   : > { %3980 = vmatpush3.msra.mxu0 %v7276_v61  ;;  %4015 = vmatpush3.msra.mxu1 %v7277_v9  ;;  %v7321_v61 = vld [vmem:[#allocation107_spill] sm:$0xff] }
 0x1ef   : > { %3981 = vmatprep.subr.mxu0 %v7153_v13  ;;  %4016 = vmatprep.subr.mxu1 %v7153_v13 }
 0x1f0   : > { %3982 = vmatpush3.msra.mxu0 %v7278_v37  ;;  %4017 = vmatpush3.msra.mxu1 %v7279_v23  ;;  %v7322_v23 = vld [vmem:[#allocation108_spill] sm:$0xff] }
 0x1f1   : > { %3983 = vmatprep.subr.mxu0 %v7153_v13  ;;  %4018 = vmatprep.subr.mxu1 %v7153_v13 }
 0x1f2   : > { %3984 = vmatpush3.msra.mxu0 %v7280_v27  ;;  %4019 = vmatpush3.msra.mxu1 %v7281_v47  ;;  %v7323_v27 = vld [vmem:[#allocation109_spill] sm:$0xff]  ;;  %v7324_v47 = vld [vmem:[#allocation110_spill] sm:$0xff] }
 0x1f3   : > { %3985 = vmatprep.subr.mxu0 %v7153_v13  ;;  %4020 = vmatprep.subr.mxu1 %v7153_v13 }
 0x1f4   : > { %3986 = vmatpush3.msra.mxu0 %v7282_v6  ;;  %4021 = vmatpush3.msra.mxu1 %v7283_v60  ;;  %v7325_v6 = vld [vmem:[#allocation111_spill] sm:$0xff]  ;;  %v7326_v60 = vld [vmem:[#allocation112_spill] sm:$0xff] }
 0x1f5   : > { %3987 = vmatprep.subr.mxu0 %v7153_v13  ;;  %4022 = vmatprep.subr.mxu1 %v7153_v13  ;;  %v6748_v38 = vpop.f32.mrf.mxu0 }
 0x1f6   : > { %3988 = vmatpush3.msra.mxu0 %v7284_v43  ;;  %4023 = vmatpush3.msra.mxu1 %v7285_v49  ;;  %v7327_v43 = vld [vmem:[#allocation113_spill] sm:$0xff]  ;;  %v7328_v49 = vld [vmem:[#allocation114_spill] sm:$0xff] }
 0x1f7   : > { %3989 = vmatprep.subr.mxu0 %v7153_v13  ;;  %4024 = vmatprep.subr.mxu1 %v7153_v13  ;;  %v3583_v7 = vpop.f32.mrf.mxu0 }
 0x1f8   : > { %3990 = vmatpush3.msra.mxu0 %v7286_v26  ;;  %4025 = vmatpush3.msra.mxu1 %v7287_v34  ;;  %v7329_v26 = vld [vmem:[#allocation115_spill] sm:$0xff]  ;;  %v4519_v34 = vld [vmem:[%s5067_s11 + $0x20] sm:$0xff]  ;;  %v7331_v7 = vld [vmem:[#allocation117_spill] sm:$0xff] }
 0x1f9   : > { %3991 = vmatprep.subr.mxu0 %v7153_v13  ;;  %4026 = vmatprep.subr.mxu1 %v7153_v13 }
 0x1fa   : > { %3992 = vmatpush3.msra.mxu0 %v7288_v21  ;;  %4027 = vmatpush3.msra.mxu1 %v7289_v4  ;;  %v4520_v21 = vld [vmem:[%s5067_s11 + $0x28] sm:$0xff]  ;;  %v7330_v4 = vld [vmem:[#allocation116_spill] sm:$0xff] }
 0x1fb   : > { %v6750_v20 = vpop.f32.mrf.mxu1  ;;  %3993 = vmatprep.subr.mxu0 %v7153_v13  ;;  %4028 = vmatprep.subr.mxu1 %v7153_v13 }
 0x1fc   : > { %3994 = vmatpush3.msra.mxu0 %v7290_v12  ;;  %4029 = vmatpush3.msra.mxu1 %v7291_v25  ;;  %v7333_v12 = vld [vmem:[#allocation119_spill] sm:$0xff]  ;;  %v7334_v25 = vld [vmem:[#allocation120_spill] sm:$0xff] }
 0x1fd   : > { %v3618_v11 = vpop.f32.mrf.mxu1  ;;  %3995 = vmatprep.subr.mxu0 %v7153_v13  ;;  %4030 = vmatprep.subr.mxu1 %v7153_v13 }
 0x1fe   : > { %3996 = vmatpush3.msra.mxu0 %v7292_v29  ;;  %4031 = vmatpush3.msra.mxu1 %v7293_v30  ;;  %v7332_v11 = vld [vmem:[#allocation118_spill] sm:$0xff]  ;;  %v7335_v29 = vld [vmem:[#allocation121_spill] sm:$0xff] }
 0x1ff   : > { %3997 = vmatprep.subr.mxu0 %v7153_v13  ;;  %4032 = vmatprep.subr.mxu1 %v7153_v13  ;;  %v7336_v30 = vld [vmem:[#allocation122_spill] sm:$0xff] }
 0x200   : > { %3998 = vmatpush3.msra.mxu0 %v7294_v39  ;;  %4033 = vmatpush3.msra.mxu1 %v7295_v44  ;;  %v7337_v39 = vld [vmem:[#allocation123_spill] sm:$0xff]  ;;  %v7338_v44 = vld [vmem:[#allocation124_spill] sm:$0xff] }
 0x201   : > { %3999 = vmatprep.subr.mxu0 %v7153_v13  ;;  %4034 = vmatprep.subr.mxu1 %v7153_v13 }
 0x202   : > { %4000 = vmatpush3.msra.mxu0 %v7296_v51  ;;  %4001 = vmatprep.mubr.msk.f32.mxu0 %vm4770_vm0, %v7153_v13  ;;  %v7339_v51 = vld [vmem:[#allocation125_spill] sm:$0xff] }
 0x203   : > { %4035 = vmatpush3.msra.mxu1 %v7297_v32  ;;  %4036 = vmatprep.mubr.msk.f32.mxu1 %vm4770_vm0, %v7153_v13  ;;  %v7340_v32 = vld [vmem:[#allocation126_spill] sm:$0xff] }
 0x204   : > { %4002 = vmatmul.mubr.f32.vlgmr.msra.gmra.mxu0 %v4517_v55  ;;  %4037 = vmatmul.mubr.f32.vlgmr.msra.gmra.mxu1 %v4518_v52  ;;  %v7341_v55 = vld [vmem:[#allocation127_spill] sm:$0xff]  ;;  %v7342_v52 = vld [vmem:[#allocation128_spill] sm:$0xff] }
 0x205   : > { %4039 = vmatprep.subr.mxu0 %v7153_v13  ;;  %4074 = vmatprep.subr.mxu1 %v7153_v13 }
 0x206   : > { %4040 = vmatpush3.msra.mxu0 %v7298_v56  ;;  %4075 = vmatpush3.msra.mxu1 %v7299_v35  ;;  %v7343_v56 = vld [vmem:[#allocation129_spill] sm:$0xff]  ;;  %v7344_v35 = vld [vmem:[#allocation130_spill] sm:$0xff] }
 0x207   : > { %4041 = vmatprep.subr.mxu0 %v7153_v13  ;;  %4076 = vmatprep.subr.mxu1 %v7153_v13 }
 0x208   : > { %4042 = vmatpush3.msra.mxu0 %v7300_v8  ;;  %4077 = vmatpush3.msra.mxu1 %v7301_v3  ;;  %v7345_v8 = vld [vmem:[#allocation131_spill] sm:$0xff]  ;;  %v7346_v3 = vld [vmem:[#allocation132_spill] sm:$0xff] }
 0x209   : > { %4043 = vmatprep.subr.mxu0 %v7153_v13  ;;  %4078 = vmatprep.subr.mxu1 %v7153_v13 }
 0x20a   : > { %4044 = vmatpush3.msra.mxu0 %v7302_v5  ;;  %4079 = vmatpush3.msra.mxu1 %v7303_v50  ;;  %v7347_v5 = vld [vmem:[#allocation133_spill] sm:$0xff]  ;;  %v7348_v50 = vld [vmem:[#allocation134_spill] sm:$0xff] }
 0x20b   : > { %4045 = vmatprep.subr.mxu0 %v7153_v13  ;;  %4080 = vmatprep.subr.mxu1 %v7153_v13 }
 0x20c   : > { %4046 = vmatpush3.msra.mxu0 %v7304_v2  ;;  %4081 = vmatpush3.msra.mxu1 %v7305_v41  ;;  %v7349_v2 = vld [vmem:[#allocation135_spill] sm:$0xff]  ;;  %v7350_v41 = vld [vmem:[#allocation136_spill] sm:$0xff] }
 0x20d   : > { %4047 = vmatprep.subr.mxu0 %v7153_v13  ;;  %4082 = vmatprep.subr.mxu1 %v7153_v13 }
 0x20e   : > { %4048 = vmatpush3.msra.mxu0 %v7306_v22  ;;  %4083 = vmatpush3.msra.mxu1 %v7307_v14  ;;  %v7351_v22 = vld [vmem:[#allocation137_spill] sm:$0xff] }
 0x20f   : > { %4049 = vmatprep.subr.mxu0 %v7153_v13  ;;  %4084 = vmatprep.subr.mxu1 %v7153_v13 }
 0x210   : > { %4050 = vmatpush3.msra.mxu0 %v7308_v63  ;;  %4085 = vmatpush3.msra.mxu1 %v7309_v24 }
 0x211   : > { %4051 = vmatprep.subr.mxu0 %v7153_v13  ;;  %4086 = vmatprep.subr.mxu1 %v7153_v13 }
 0x212   : > { %4052 = vmatpush3.msra.mxu0 %v7310_v59  ;;  %4087 = vmatpush3.msra.mxu1 %v7311_v16  ;;  %v7352_v16 = vld [vmem:[#allocation138_spill] sm:$0xff] }
 0x213   : > { %4053 = vmatprep.subr.mxu0 %v7153_v13  ;;  %4088 = vmatprep.subr.mxu1 %v7153_v13 }
 0x214   : > { %4054 = vmatpush3.msra.mxu0 %v7312_v17  ;;  %4089 = vmatpush3.msra.mxu1 %v7313_v31  ;;  %v7353_v17 = vld [vmem:[#allocation139_spill] sm:$0xff] }
 0x215   : > { %4055 = vmatprep.subr.mxu0 %v7153_v13  ;;  %4090 = vmatprep.subr.mxu1 %v7153_v13 }
 0x216   : > { %4056 = vmatpush3.msra.mxu0 %v7314_v53  ;;  %4091 = vmatpush3.msra.mxu1 %v7315_v54  ;;  %v7354_v54 = vld [vmem:[#allocation140_spill] sm:$0xff] }
 0x217   : > { %4057 = vmatprep.subr.mxu0 %v7153_v13  ;;  %4092 = vmatprep.subr.mxu1 %v7153_v13 }
 0x218   : > { %4058 = vmatpush3.msra.mxu0 %v7316_v62  ;;  %4093 = vmatpush3.msra.mxu1 %v7317_v40  ;;  %v7355_v62 = vld [vmem:[#allocation141_spill] sm:$0xff]  ;;  %v7356_v40 = vld [vmem:[#allocation142_spill] sm:$0xff] }
 0x219   : > { %4059 = vmatprep.subr.mxu0 %v7153_v13  ;;  %4094 = vmatprep.subr.mxu1 %v7153_v13  ;;  %v1449_v42 = vpop.f32.mrf.mxu0 }
 0x21a   : > { %4060 = vmatpush3.msra.mxu0 %v7318_v33  ;;  %4095 = vmatpush3.msra.mxu1 %v7319_v28  ;;  %v2647_v36 = vadd.f32 %v1449_v42, %v6492_v18  ;;  %v7357_v33 = vld [vmem:[#allocation143_spill] sm:$0xff]  ;;  %v7358_v28 = vld [vmem:[#allocation144_spill] sm:$0xff]  ;;  %v7359_v42 = vld [vmem:[#allocation145_spill] sm:$0xff] }
 0x21b   : > { %v1519_v15 = vpop.f32.mrf.mxu1  ;;  %4061 = vmatprep.subr.mxu0 %v7153_v13  ;;  %4096 = vmatprep.subr.mxu1 %v7153_v13  ;;  %v3653_v9 = vpop.f32.mrf.mxu0 }
 0x21c   : > { %v2648_v48 = vadd.f32 %v1519_v15, %v6494_v0  ;;  %4062 = vmatpush3.msra.mxu0 %v7320_v57  ;;  %4097 = vmatpush3.msra.mxu1 %v7321_v61  ;;  %2655 = vst [vmem:[%s5087_s12] sm:$0xff] %v2647_v36  ;;  %v4521_v15 = vld [vmem:[%s5067_s11 + $0x30] sm:$0xff]  ;;  %v4522_v36 = vld [vmem:[%s5067_s11 + $0x38] sm:$0xff] }
 0x21d   : > { %v3688_v37 = vpop.f32.mrf.mxu1  ;;  %4063 = vmatprep.subr.mxu0 %v7153_v13  ;;  %4098 = vmatprep.subr.mxu1 %v7153_v13 }
 0x21e   : > { %2656 = vst [vmem:[%s5087_s12 + $0x8] sm:$0xff] %v2648_v48  ;;  %4064 = vmatpush3.msra.mxu0 %v7322_v23  ;;  %4099 = vmatpush3.msra.mxu1 %v7323_v27 }
 0x21f   : > { %4065 = vmatprep.subr.mxu0 %v7153_v13  ;;  %4100 = vmatprep.subr.mxu1 %v7153_v13 }
 0x220   : > { %4066 = vmatpush3.msra.mxu0 %v7324_v47  ;;  %4101 = vmatpush3.msra.mxu1 %v7325_v6 }
 0x221   : > { %4067 = vmatprep.subr.mxu0 %v7153_v13  ;;  %4102 = vmatprep.subr.mxu1 %v7153_v13 }
 0x222   : > { %4068 = vmatpush3.msra.mxu0 %v7326_v60  ;;  %4103 = vmatpush3.msra.mxu1 %v7327_v43 }
 0x223   : > { %4069 = vmatprep.subr.mxu0 %v7153_v13  ;;  %4104 = vmatprep.subr.mxu1 %v7153_v13 }
 0x224   : > { %4070 = vmatpush3.msra.mxu0 %v7328_v49  ;;  %4071 = vmatprep.mubr.msk.f32.mxu0 %vm4770_vm0, %v7153_v13 }
 0x225   : > { %4105 = vmatpush3.msra.mxu1 %v7329_v26  ;;  %4106 = vmatprep.mubr.msk.f32.mxu1 %vm4770_vm0, %v7153_v13 }
 0x226   : > { %4072 = vmatmul.mubr.f32.vlgmr.msra.gmra.mxu0 %v4519_v34  ;;  %4107 = vmatmul.mubr.f32.vlgmr.msra.gmra.mxu1 %v4520_v21 }
 0x227   : > { %4109 = vmatprep.subr.mxu0 %v7153_v13  ;;  %4144 = vmatprep.subr.mxu1 %v7153_v13 }
 0x228   : > { %4110 = vmatpush3.msra.mxu0 %v7330_v4  ;;  %4145 = vmatpush3.msra.mxu1 %v7331_v7 }
 0x229   : > { %4111 = vmatprep.subr.mxu0 %v7153_v13  ;;  %4146 = vmatprep.subr.mxu1 %v7153_v13 }
 0x22a   : > { %4112 = vmatpush3.msra.mxu0 %v7332_v11  ;;  %4147 = vmatpush3.msra.mxu1 %v7333_v12 }
 0x22b   : > { %4113 = vmatprep.subr.mxu0 %v7153_v13  ;;  %4148 = vmatprep.subr.mxu1 %v7153_v13 }
 0x22c   : > { %4114 = vmatpush3.msra.mxu0 %v7334_v25  ;;  %4149 = vmatpush3.msra.mxu1 %v7335_v29 }
 0x22d   : > { %4115 = vmatprep.subr.mxu0 %v7153_v13  ;;  %4150 = vmatprep.subr.mxu1 %v7153_v13 }
 0x22e   : > { %4116 = vmatpush3.msra.mxu0 %v7336_v30  ;;  %4151 = vmatpush3.msra.mxu1 %v7337_v39 }
 0x22f   : > { %4117 = vmatprep.subr.mxu0 %v7153_v13  ;;  %4152 = vmatprep.subr.mxu1 %v7153_v13 }
 0x230   : > { %4118 = vmatpush3.msra.mxu0 %v7338_v44  ;;  %4153 = vmatpush3.msra.mxu1 %v7339_v51 }
 0x231   : > { %4119 = vmatprep.subr.mxu0 %v7153_v13  ;;  %4154 = vmatprep.subr.mxu1 %v7153_v13 }
 0x232   : > { %4120 = vmatpush3.msra.mxu0 %v7340_v32  ;;  %4155 = vmatpush3.msra.mxu1 %v7341_v55 }
 0x233   : > { %4121 = vmatprep.subr.mxu0 %v7153_v13  ;;  %4156 = vmatprep.subr.mxu1 %v7153_v13 }
 0x234   : > { %4122 = vmatpush3.msra.mxu0 %v7342_v52  ;;  %4157 = vmatpush3.msra.mxu1 %v7343_v56 }
 0x235   : > { %4123 = vmatprep.subr.mxu0 %v7153_v13  ;;  %4158 = vmatprep.subr.mxu1 %v7153_v13 }
 0x236   : > { %4124 = vmatpush3.msra.mxu0 %v7344_v35  ;;  %4159 = vmatpush3.msra.mxu1 %v7345_v8 }
 0x237   : > { %4125 = vmatprep.subr.mxu0 %v7153_v13  ;;  %4160 = vmatprep.subr.mxu1 %v7153_v13 }
 0x238   : > { %4126 = vmatpush3.msra.mxu0 %v7346_v3  ;;  %4161 = vmatpush3.msra.mxu1 %v7347_v5 }
 0x239   : > { %4127 = vmatprep.subr.mxu0 %v7153_v13  ;;  %4162 = vmatprep.subr.mxu1 %v7153_v13 }
 0x23a   : > { %4128 = vmatpush3.msra.mxu0 %v7348_v50  ;;  %4163 = vmatpush3.msra.mxu1 %v7349_v2 }
 0x23b   : > { %4129 = vmatprep.subr.mxu0 %v7153_v13  ;;  %4164 = vmatprep.subr.mxu1 %v7153_v13 }
 0x23c   : > { %4130 = vmatpush3.msra.mxu0 %v7350_v41  ;;  %4165 = vmatpush3.msra.mxu1 %v7351_v22  ;;  %v1589_v14 = vpop.f32.mrf.mxu0  ;;  %v1659_v63 = vpop.f32.mrf.mxu1 }
 0x23d   : > { %4131 = vmatprep.subr.mxu0 %v7153_v13  ;;  %4166 = vmatprep.subr.mxu1 %v7153_v13  ;;  %v2649_v24 = vadd.f32 %v1589_v14, %v6598_v19  ;;  %v2650_v59 = vadd.f32 %v1659_v63, %v6600_v58 }
 0x23e   : > { %4132 = vmatpush3.msra.mxu0 %v7352_v16  ;;  %4167 = vmatpush3.msra.mxu1 %v7353_v17  ;;  %v3723_v31 = vpop.f32.mrf.mxu0  ;;  %v3758_v53 = vpop.f32.mrf.mxu1 }
 0x23f   : > { %4133 = vmatprep.subr.mxu0 %v7153_v13  ;;  %4168 = vmatprep.subr.mxu1 %v7153_v13  ;;  %2657 = vst [vmem:[%s5087_s12 + $0x10] sm:$0xff] %v2649_v24  ;;  %2658 = vst [vmem:[%s5087_s12 + $0x18] sm:$0xff] %v2650_v59 }
 0x240   : > { %4134 = vmatpush3.msra.mxu0 %v7354_v54  ;;  %4169 = vmatpush3.msra.mxu1 %v7355_v62 }
 0x241   : > { %4135 = vmatprep.subr.mxu0 %v7153_v13  ;;  %4170 = vmatprep.subr.mxu1 %v7153_v13 }
 0x242   : > { %4136 = vmatpush3.msra.mxu0 %v7356_v40  ;;  %4171 = vmatpush3.msra.mxu1 %v7357_v33 }
 0x243   : > { %4137 = vmatprep.subr.mxu0 %v7153_v13  ;;  %4172 = vmatprep.subr.mxu1 %v7153_v13 }
 0x244   : > { %4138 = vmatpush3.msra.mxu0 %v7358_v28  ;;  %4173 = vmatpush3.msra.mxu1 %v6084_v45 }
 0x245   : > { %4139 = vmatprep.subr.mxu0 %v7153_v13  ;;  %4174 = vmatprep.subr.mxu1 %v7153_v13 }
 0x246   : > { %4140 = vmatpush3.msra.mxu0 %v6088_v10  ;;  %4141 = vmatprep.mubr.msk.f32.mxu0 %vm4770_vm0, %v7153_v13 }
 0x247   : > { %4175 = vmatpush3.msra.mxu1 %v7359_v42  ;;  %4176 = vmatprep.mubr.msk.f32.mxu1 %vm4770_vm0, %v7153_v13 }
 0x248   : > { %4142 = vmatmul.mubr.f32.vlgmr.msra.gmra.mxu0 %v4521_v15  ;;  %4177 = vmatmul.mubr.f32.vlgmr.msra.gmra.mxu1 %v4522_v36 }
 0x25e   : > { %v1729_v45 = vpop.f32.mrf.mxu0  ;;  %v1799_v48 = vpop.f32.mrf.mxu1 }
 0x25f   : > { %v2651_v57 = vadd.f32 %v1729_v45, %v6674_v1  ;;  %v2652_v10 = vadd.f32 %v1799_v48, %v6676_v46 }
 0x260   : > { %v3793_v61 = vpop.f32.mrf.mxu0  ;;  %v3828_v9 = vpop.f32.mrf.mxu1 }
 0x261   : > { %2659 = vst [vmem:[%s5087_s12 + $0x20] sm:$0xff] %v2651_v57  ;;  %2660 = vst [vmem:[%s5087_s12 + $0x28] sm:$0xff] %v2652_v10 }
 0x280   : > { %v1869_v37 = vpop.f32.mrf.mxu0  ;;  %v1939_v13 = vpop.f32.mrf.mxu1 }
 0x281   : > { %v2653_v23 = vadd.f32 %v1869_v37, %v6748_v38  ;;  %v2654_v27 = vadd.f32 %v1939_v13, %v6750_v20 }
 0x282   : > { %v3863_v47 = vpop.f32.mrf.mxu0  ;;  %v3898_v6 = vpop.f32.mrf.mxu1 }
 0x283   : > { %2661 = vst [vmem:[%s5087_s12 + $0x30] sm:$0xff] %v2653_v23  ;;  %2662 = vst [vmem:[%s5087_s12 + $0x38] sm:$0xff] %v2654_v27 }
 0x2a2   : > { %v2137_v60 = vpop.f32.mrf.mxu0  ;;  %v2207_v43 = vpop.f32.mrf.mxu1 }
 0x2a3   : > { %v2631_v49 = vsub.f32 %v6492_v18, %v2137_v60  ;;  %v2632_v26 = vsub.f32 %v6494_v0, %v2207_v43 }
 0x2a4   : > { %v3933_v34 = vpop.f32.mrf.mxu0  ;;  %v3968_v21 = vpop.f32.mrf.mxu1 }
 0x2a5   : > { %2639 = vst [vmem:[%s5085_s30] sm:$0xff] %v2631_v49  ;;  %2640 = vst [vmem:[%s5085_s30 + $0x8] sm:$0xff] %v2632_v26 }
 0x2c4   : > { %v2277_v4 = vpop.f32.mrf.mxu0  ;;  %v2347_v7 = vpop.f32.mrf.mxu1 }
 0x2c5   : > { %v2633_v11 = vsub.f32 %v6598_v19, %v2277_v4  ;;  %v2634_v12 = vsub.f32 %v6600_v58, %v2347_v7 }
 0x2c6   : > { %v4003_v25 = vpop.f32.mrf.mxu0  ;;  %v4038_v29 = vpop.f32.mrf.mxu1 }
 0x2c7   : > { %2641 = vst [vmem:[%s5085_s30 + $0x10] sm:$0xff] %v2633_v11  ;;  %2642 = vst [vmem:[%s5085_s30 + $0x18] sm:$0xff] %v2634_v12 }
 0x2e6   : > { %v2417_v18 = vpop.f32.mrf.mxu0  ;;  %v2487_v0 = vpop.f32.mrf.mxu1 }
 0x2e7   : > { %v2635_v30 = vsub.f32 %v6674_v1, %v2417_v18  ;;  %v2636_v39 = vsub.f32 %v6676_v46, %v2487_v0 }
 0x2e8   : > { %v4073_v44 = vpop.f32.mrf.mxu0  ;;  %v4108_v51 = vpop.f32.mrf.mxu1 }
 0x2e9   : > { %2643 = vst [vmem:[%s5085_s30 + $0x20] sm:$0xff] %v2635_v30  ;;  %2644 = vst [vmem:[%s5085_s30 + $0x28] sm:$0xff] %v2636_v39 }
 0x308   : > { %v2557_v32 = vpop.f32.mrf.mxu0  ;;  %v2627_v19 = vpop.f32.mrf.mxu1 }
 0x309   : > { %v2637_v58 = vsub.f32 %v6748_v38, %v2557_v32  ;;  %v2638_v55 = vsub.f32 %v6750_v20, %v2627_v19 }
 0x30a   : > { %v4143_v52 = vpop.f32.mrf.mxu0  ;;  %v4178_v56 = vpop.f32.mrf.mxu1 }
 0x30b   : > { %2645 = vst [vmem:[%s5085_s30 + $0x30] sm:$0xff] %v2637_v58  ;;  %2646 = vst [vmem:[%s5085_s30 + $0x38] sm:$0xff] %v2638_v55 }
 0x30c PF: > { %p2914_p2 = scmp.lt.s32.totalorder %s4840_s25, 1 }
 0x30e   : > { %2666 = sbr.rel (%p2914_p2) target bundleno = 796 (0x31c), region = 60 }
 0x313   : > { %v4771_v1 = vmov 0.0  }
 0x314   : > { %2667 = vst [vmem:[%s5085_s30] sm:$0xff] %v4771_v1  ;;  %2668 = vst [vmem:[%s5085_s30 + $0x8] sm:$0xff] %v4771_v1 }
 0x315   : > { %2669 = vst [vmem:[%s5085_s30 + $0x10] sm:$0xff] %v4771_v1  ;;  %2670 = vst [vmem:[%s5085_s30 + $0x18] sm:$0xff] %v4771_v1 }
 0x316   : > { %2671 = vst [vmem:[%s5085_s30 + $0x20] sm:$0xff] %v4771_v1  ;;  %2672 = vst [vmem:[%s5085_s30 + $0x28] sm:$0xff] %v4771_v1 }
 0x317   : > { %2673 = vst [vmem:[%s5085_s30 + $0x30] sm:$0xff] %v4771_v1  ;;  %2674 = vst [vmem:[%s5085_s30 + $0x38] sm:$0xff] %v4771_v1 }
 0x318   : > { %2675 = vst [vmem:[%s5087_s12] sm:$0xff] %v4771_v1  ;;  %2676 = vst [vmem:[%s5087_s12 + $0x8] sm:$0xff] %v4771_v1 }
 0x319   : > { %2677 = vst [vmem:[%s5087_s12 + $0x10] sm:$0xff] %v4771_v1  ;;  %2678 = vst [vmem:[%s5087_s12 + $0x18] sm:$0xff] %v4771_v1 }
 0x31a   : > { %2679 = vst [vmem:[%s5087_s12 + $0x20] sm:$0xff] %v4771_v1  ;;  %2680 = vst [vmem:[%s5087_s12 + $0x28] sm:$0xff] %v4771_v1 }
 0x31b   : > { %2681 = vst [vmem:[%s5087_s12 + $0x30] sm:$0xff] %v4771_v1  ;;  %2682 = vst [vmem:[%s5087_s12 + $0x38] sm:$0xff] %v4771_v1 }
 0x31c PF: > { %s2929_s10 = sshll.u32 %s4840_s25, 10  ;;  %s2702_s27 = sshll.u32 %s5085_s30, 4  ;;  %s6976_s27 = int_to_ptr.vmem [resolvable:$true] %s2702_s27 }
 0x31d   : > { %s6973_s0 = scalar_lea.hbm %s7069_s4, %s2929_s10  ;;  %s2684_s20 = scalar_lea.sflag [#allocation4], %s5082_s26 }
 0x31e   : > { %s4635_s23 = scalar_lea.vmem %s6976_s27, 1024  ;;  %p7360_p10 = scmp.ne.s32.totalorder %s7098_s13, 0 }
 0x31f   : > { %p4636_p7 = scmp.ne.s32.totalorder %s6976_s27, %s4635_s23  ;;  %s4772_s8 = smov [#allocation10]  }
 0x320   : > { %s4639_s28 = sshll.u32 %s4772_s8, 4  ;;  %s4640_s28 = int_to_ptr.vmem [resolvable:$false] %s4639_s28 }
 0x321   : > { %p4637_p0 = pnand %p4636_p7, %p7360_p10  ;;  %s4641_s1 = scalar_lea.vmem %s4640_s28, 2048 }
 0x322   : > { %p4642_p3 = scmp.lt.s32.totalorder %s6976_s27, %s4640_s28  ;;  %p4643_p5 = scmp.lt.s32.totalorder %s4641_s1, %s4635_s23 }
 0x323   : > { %p4638_p8 = pneg %p4637_p0 }
 0x324   : > { %p4644_p1 = por %p4643_p5, %p4642_p3 }
 0x326   : > { %p4645_p6 = pnand %p4644_p1, %p4638_p8 }
 0x328   : > { %4648 = shalt.err (!%p4645_p6)
}
 0x329   : > { %s4649_s21 = scalar_lea.hbm %s6973_s0, 1024  ;;  %s4653_s16 = scalar_lea.hbm %s7069_s4, 2048 }
 0x32a   : > { %p4650_p11 = scmp.ne.s32.totalorder %s6973_s0, %s4649_s21  ;;  %p4654_p13 = scmp.lt.s32.totalorder %s6973_s0, %s7069_s4 }
 0x32b   : > { %p4655_p4 = scmp.lt.s32.totalorder %s4653_s16, %s4649_s21 }
 0x32c   : > { %p4651_p12 = pnand %p4650_p11, %p7360_p10 }
 0x32d   : > { %p4656_p2 = por %p4655_p4, %p4654_p13 }
 0x32e   : > { %p4652_p9 = pneg %p4651_p12 }
 0x330   : > { %p4657_p7 = pnand %p4656_p2, %p4652_p9 }
 0x332   : > { %4660 = shalt.err (!%p4657_p7)
}
 0x333   : > { %s4773_s6 = smov 128   ;;  %s4774_s7 = smov 8  }
 0x334   : > { %4187 = dma.vmem_to_hbm [thread:$0]  (%p7360_p10), %s6976_s27, 1024, %s6973_s0, %s2684_s20, %s4773_s6, %s4773_s6, %s4774_s7  }
 0x335   : > { %s7009_s15 = scalar_lea.hbm %s7070_s5, %s2929_s10  ;;  %s2718_s23 = sshll.u32 %s5087_s12, 4  ;;  %s7012_s23 = int_to_ptr.vmem [resolvable:$true] %s2718_s23 }
 0x336   : > { %s2689_s8 = scalar_lea.sflag [#allocation12], %s5082_s26  ;;  %s4661_s28 = scalar_lea.vmem %s7012_s23, 1024 }
 0x337   : > { %p4662_p0 = scmp.ne.s32.totalorder %s7012_s23, %s4661_s28  ;;  %s4775_s1 = smov [#allocation11]  }
 0x338   : > { %s4665_s0 = sshll.u32 %s4775_s1, 4  ;;  %s4666_s0 = int_to_ptr.vmem [resolvable:$false] %s4665_s0 }
 0x339   : > { %p4663_p8 = pnand %p4662_p0, %p7360_p10  ;;  %s4667_s25 = scalar_lea.vmem %s4666_s0, 2048 }
 0x33a   : > { %p4668_p5 = scmp.lt.s32.totalorder %s7012_s23, %s4666_s0  ;;  %p4669_p1 = scmp.lt.s32.totalorder %s4667_s25, %s4661_s28 }
 0x33b   : > { %p4664_p3 = pneg %p4663_p8 }
 0x33c   : > { %p4670_p6 = por %p4669_p1, %p4668_p5 }
 0x33e   : > { %p4671_p11 = pnand %p4670_p6, %p4664_p3 }
 0x340   : > { %4674 = shalt.err (!%p4671_p11)
}
 0x341   : > { %s4675_s12 = scalar_lea.hbm %s7009_s15, 1024  ;;  %s4679_s27 = scalar_lea.hbm %s7070_s5, 2048 }
 0x342   : > { %p4676_p12 = scmp.ne.s32.totalorder %s7009_s15, %s4675_s12  ;;  %p4680_p4 = scmp.lt.s32.totalorder %s7009_s15, %s7070_s5 }
 0x343   : > { %p4681_p2 = scmp.lt.s32.totalorder %s4679_s27, %s4675_s12 }
 0x344   : > { %p4677_p9 = pnand %p4676_p12, %p7360_p10 }
 0x345   : > { %p4682_p7 = por %p4681_p2, %p4680_p4 }
 0x346   : > { %p4678_p13 = pneg %p4677_p9 }
 0x348   : > { %p4683_p0 = pnand %p4682_p7, %p4678_p13 }
 0x34a   : > { %4686 = shalt.err (!%p4683_p0)
}
 0x34b   : > { %4188 = dma.vmem_to_hbm [thread:$0]  (%p7360_p10), %s7012_s23, 1024, %s7009_s15, %s2689_s8, %s4773_s6, %s4773_s6, %s4774_s7  }
 0x34c PF: > { %s7361_s29 = sld [smem:[#allocation20_spill]]  ;;  %s2733_s11 = sand.u32 1, %s4737_s18  }
 0x34d   : > { %p7362_p8 = scmp.ne.s32.totalorder %s7099_s14, 0  ;;  %s2734_s16 = scalar_lea.sflag [#allocation4], %s2733_s11 }
 0x352   : > { %p7363_p3 = scmp.ge.s32.totalorder %s7361_s29, 2 }
 0x354   : > { %p4205_p5 = pnand %p7363_p3, %p7362_p8 }
 0x356   : > { %p4206_p1 = pneg %p4205_p5 }
 0x358   : > { %4728 = dma.done.wait (%p4206_p1), %s2734_s16, 1024  }
 0x359   : > { %4730 = vsyncadd (%p4206_p1), %s2734_s16, 4294966272  ;;  %s2743_s17 = scalar_lea.sflag [#allocation12], %s2733_s11 }
 0x35a   : > { %4732 = dma.done.wait (%p4206_p1), %s2743_s17, 1024  }
 0x35b   : > { %4734 = vsyncadd (%p4206_p1), %s2743_s17, 4294966272  ;;  %s7364_s24 = sld [smem:[#allocation21_spill]]  ;;  %s7369_s18 = smov %s4741_s19 }
 0x35c   : > { %s7365_s13 = sld [smem:[#allocation18_spill]]  ;;  %s7371_s21 = smov %s4753_s22 }
 0x35d   : > { %s7366_s20 = sld [smem:[#allocation23_spill]] }
 0x35e   : > { %s7367_s6 = sld [smem:[#allocation19_spill]] }
 0x35f   : > { %s7368_s23 = sld [smem:[#allocation22_spill]] }
 0x361   : > { %p28_p10 = scmp.ge.s32.totalorder %s7364_s24, 4  }
 0x362   : > { %s7370_s19 = smov %s7365_s13 }
 0x363   :  { %30 = sbr.rel (!%p28_p10) target bundleno = 16 (0x10), region = 143 }
 0x364   : > { %s7372_s22 = smov %s7367_s6 }
 0x368   :  { %2748 = vsyncpa [#allocation3], 1 }
 0x369   :  { %2750 = vsyncpa [#allocation3 + $0x1], 1 }
 0x36a   :  { %2751 = vsyncpa [#allocation6], 1 }
 0x36b   :  { %2753 = vsyncpa [#allocation6 + $0x1], 1 }
 0x36c   :  { %2754 = vsyncpa [#allocation9], 1 }
 0x36d   :  { %2756 = vsyncpa [#allocation9 + $0x1], 1 }
 0x36e   :  { %2757 = vsyncpa [#allocation4], 1 }
 0x36f   :  { %2759 = vsyncpa [#allocation4 + $0x1], 1 }
 0x370   :  { %2760 = vsyncpa [#allocation12], 1 }
 0x371   :  { %2762 = vsyncpa [#allocation12 + $0x1], 1 }

</bundles_post_ra>
